<compile_context>
chip_gen: v7x
topology: tpu7x:2x2x1
jax: 0.10.0
libtpu: 0.0.40
codegen_flags: <defaults>
</compile_context>

<pallas_src>
import functools

import jax
import jax.numpy as jnp
from jax import lax
from jax.experimental import pallas as pl
from jax.experimental.pallas import tpu as pltpu


# -----------------------------------------------------------------------------
# Fused kernel: BiLSTM -> FC -> GroupNorm(num_groups=1) -> + residual
# One grid program == one batch element, time-major layout (T, N, F).
# -----------------------------------------------------------------------------
def _make_fused_block_kernel(T, N, F, H, eps, unroll):
    G4 = 4 * H
    G8 = 8 * H

    def kernel(x_ref, wih_ref, b_ref, whhf_ref, whhb_ref,
               wfc_ref, bfc_ref, gamma_ref, beta_ref,
               out_ref, pre_s, h_s):
        x = x_ref[...]                                   # (T, N, F)
        x2 = x.reshape(T * N, F)

        # Input projection for both directions at once: (T*N, F) x (F, 8H) -> one big MXU matmul.
        pre = jnp.dot(x2, wih_ref[...], preferred_element_type=jnp.float32) + b_ref[...]
        pre_s[...] = pre.reshape(T, N, G8)

        # Hoist recurrent weights out of the loop (JAX does not CSE these).
        whh_f = whhf_ref[...]
        whh_b = whhb_ref[...]

        def lstm_cell(gates, c):
            # Gate column order [i, f, o, g]: one fused sigmoid over 3H, one tanh over H.
            sg = jax.nn.sigmoid(gates[:, 0:3 * H])
            i = sg[:, 0:H]
            f = sg[:, H:2 * H]
            o = sg[:, 2 * H:3 * H]
            g = jnp.tanh(gates[:, 3 * H:4 * H])
            c_new = f * c + i * g
            h_new = o * jnp.tanh(c_new)
            return h_new, c_new

        def body(t, carry):
            hf, cf, hb, cb = carry
            tb = T - 1 - t
            # Two small independent matmuls per step -> interleaving hides MXU drain latency.
            gates_f = pre_s[t, :, pl.ds(0, G4)] + jnp.dot(
                hf, whh_f, preferred_element_type=jnp.float32)
            gates_b = pre_s[tb, :, pl.ds(G4, G4)] + jnp.dot(
                hb, whh_b, preferred_element_type=jnp.float32)
            hf, cf = lstm_cell(gates_f, cf)
            hb, cb = lstm_cell(gates_b, cb)
            h_s[t, :, pl.ds(0, H)] = hf
            h_s[tb, :, pl.ds(H, H)] = hb
            return (hf, cf, hb, cb)

        zeros = jnp.zeros((N, H), jnp.float32)
        lax.fori_loop(0, T, body, (zeros, zeros, zeros, zeros), unroll=unroll)

        # Single FC matmul on concat([h_fwd, h_bwd]) stored contiguously in h_s.
        h2 = h_s[...].reshape(T * N, 2 * H)
        y = jnp.dot(h2, wfc_ref[...], preferred_element_type=jnp.float32) + bfc_ref[...]

        # GroupNorm(num_groups=1): stats over ALL (T, N, F) elements of this batch element
        # (layout-invariant vs. the PyTorch channels-first view), per-feature affine, + residual.
        mu = jnp.mean(y)
        var = jnp.mean(jnp.square(y - mu))               # biased variance (matches GroupNorm)
        y_hat = (y - mu) * lax.rsqrt(var + eps)
        out = y_hat * gamma_ref[...] + beta_ref[...] + x2
        out_ref[...] = out.reshape(T, N, F)

    return kernel


def _bilstm_fc_gn_res(x_btnf, p, eps):
    """x_btnf: (B, T, N, F) f32.  Returns (B, T, N, F) f32 = GN(FC(BiLSTM(x))) + x per batch element."""
    B, T, N, F = x_btnf.shape
    H = p["whh_f"].shape[0]
    unroll = True if T <= 16 else 4
    kernel = _make_fused_block_kernel(T, N, F, H, eps, unroll)

    weights = (p["w_ih"], p["b_ih"], p["whh_f"], p["whh_b"],
               p["w_fc"], p["b_fc"], p["gamma"], p["beta"])

    def resident(w):  # full-shape block, constant index_map -> fetched once, stays in VMEM
        return pl.BlockSpec(w.shape, lambda b: (0, 0))

    data_spec = pl.BlockSpec((None, T, N, F), lambda b: (b, 0, 0, 0))
    in_specs = [data_spec] + [resident(w) for w in weights]

    # Explicit VMEM sizing (v7x has 64 MiB physical / 32 MiB default scoped).
    bytes_f32 = 4
    block_bytes = bytes_f32 * T * N * F
    scratch_bytes = bytes_f32 * T * N * (8 * H + 2 * H)
    weight_bytes = bytes_f32 * sum(int(w.size) for w in weights)
    est = 2 * 2 * block_bytes + scratch_bytes + weight_bytes   # dbl-buffered in+out blocks
    vmem_limit = int(min(max(2 * est, 16 * 1024 * 1024), 48 * 1024 * 1024))

    return pl.pallas_call(
        kernel,
        out_shape=jax.ShapeDtypeStruct((B, T, N, F), jnp.float32),
        grid=(B,),
        in_specs=in_specs,
        out_specs=data_spec,
        scratch_shapes=[
            pltpu.VMEM((T, N, 8 * H), jnp.float32),   # fwd|bwd pre-activations
            pltpu.VMEM((T, N, 2 * H), jnp.float32),   # fwd|bwd hidden states
        ],
        compiler_params=pltpu.CompilerParams(
            dimension_semantics=("parallel",),
            vmem_limit_bytes=vmem_limit,
        ),
    )(x_btnf, *weights)


# -----------------------------------------------------------------------------
# BandSplitRNNBlock forward (glue: layout transposes only).
# -----------------------------------------------------------------------------
def band_split_rnn_block(x, params, *, eps=1e-5):
    """x: (B, num_features, n_bands, n_frames) f32 -> same shape."""
    # --- band block (IntraRNN): BiLSTM over bands K, per (batch, frame) ---
    xb = jnp.transpose(x, (0, 2, 3, 1))                      # (B, K, S, F): T=K, N=S
    x1 = _bilstm_fc_gn_res(xb, params["band"], eps)          # (B, K, S, F)
    # --- temporal block (InterRNN): BiLSTM over frames S, per (batch, band) ---
    xt = jnp.transpose(x1, (0, 2, 1, 3))                     # (B, S, K, F): T=S, N=K
    x2 = _bilstm_fc_gn_res(xt, params["temporal"], eps)      # (B, S, K, F)
    return jnp.transpose(x2, (0, 3, 2, 1))                   # (B, F, K, S)


# -----------------------------------------------------------------------------
# Deterministic parameter init (PyTorch-style uniform bounds).
# Kernel weight layout:
#   w_ih : (F, 8H)  = [fwd 4H | bwd 4H], gate columns [i, f, o, g] inside each 4H block
#   b_ih : (1, 8H)  = folded (b_ih + b_hh), same layout
#   whh_*: (H, 4H)  per direction, gate columns [i, f, o, g]
#   w_fc : (2H, F)  acting on concat([h_fwd, h_bwd]);  b_fc: (1, F)
#   gamma/beta: (1, F) GroupNorm affine
# -----------------------------------------------------------------------------
def init_block_params(key, F, H):
    ks = jax.random.split(key, 12)
    bh = 1.0 / (H ** 0.5)          # nn.LSTM init bound
    bl = 1.0 / ((2 * H) ** 0.5)    # nn.Linear(2H -> F) init bound

    def U(k_, shape, bound):
        return jax.random.uniform(k_, shape, jnp.float32, minval=-bound, maxval=bound)

    return dict(
        w_ih=jnp.concatenate([U(ks[0], (F, 4 * H), bh), U(ks[1], (F, 4 * H), bh)], axis=1),
        b_ih=(jnp.concatenate([U(ks[2], (1, 4 * H), bh), U(ks[3], (1, 4 * H), bh)], axis=1)
              + jnp.concatenate([U(ks[4], (1, 4 * H), bh), U(ks[5], (1, 4 * H), bh)], axis=1)),
        whh_f=U(ks[6], (H, 4 * H), bh),
        whh_b=U(ks[7], (H, 4 * H), bh),
        w_fc=U(ks[8], (2 * H, F), bl),
        b_fc=U(ks[9], (1, F), bl),
        gamma=jnp.ones((1, F), jnp.float32),               # GroupNorm default affine init
        beta=jnp.zeros((1, F), jnp.float32),
    )


if __name__ == "__main__":
    key = jax.random.PRNGKey(0)
    kx, kband, ktemp = jax.random.split(key, 3)

    batch, num_features, n_bands, n_frames = 2, 16, 8, 8
    hidden_channels = 32

    x = jax.random.normal(kx, (batch, num_features, n_bands, n_frames), jnp.float32)
    params = dict(
        band=init_block_params(kband, num_features, hidden_channels),
        temporal=init_block_params(ktemp, num_features, hidden_channels),
    )

    fwd = jax.jit(functools.partial(band_split_rnn_block, eps=1e-5))
    out = jax.block_until_ready(fwd(x, params))

    assert out.shape == (batch, num_features, n_bands, n_frames)
    assert bool(jnp.all(jnp.isfinite(out)))
    print("KERNEL_OK")
</pallas_src>

<mosaic_0001>
module attributes {stable_mosaic.version = 11 : i64} {
  func.func @kernel(%arg0: i32, %arg1: memref<1x8x8x16xf32, #tpu.memory_space<vmem>>, %arg2: memref<16x256xf32, #tpu.memory_space<vmem>>, %arg3: memref<1x256xf32, #tpu.memory_space<vmem>>, %arg4: memref<32x128xf32, #tpu.memory_space<vmem>>, %arg5: memref<32x128xf32, #tpu.memory_space<vmem>>, %arg6: memref<64x16xf32, #tpu.memory_space<vmem>>, %arg7: memref<1x16xf32, #tpu.memory_space<vmem>>, %arg8: memref<1x16xf32, #tpu.memory_space<vmem>>, %arg9: memref<1x16xf32, #tpu.memory_space<vmem>>, %arg10: memref<1x8x8x16xf32, #tpu.memory_space<vmem>>, %arg11: memref<8x8x256xf32, #tpu.memory_space<vmem>>, %arg12: memref<8x8x64xf32, #tpu.memory_space<vmem>>) attributes {dimension_semantics = [#tpu.dimension_semantics<parallel>], iteration_bounds = array<i64: 2>, scalar_prefetch = 0 : i64, scratch_operands = 2 : i64, tpu.core_type = #tpu.core_type<tc>, window_params = [{transform_indices = @transform_0, window_bounds = array<i64: 1, 8, 8, 16>}, {pipeline_mode = #tpu.pipeline_mode<synchronous>, transform_indices = @transform_1, window_bounds = array<i64: 16, 256>}, {pipeline_mode = #tpu.pipeline_mode<synchronous>, transform_indices = @transform_2, window_bounds = array<i64: 1, 256>}, {pipeline_mode = #tpu.pipeline_mode<synchronous>, transform_indices = @transform_3, window_bounds = array<i64: 32, 128>}, {pipeline_mode = #tpu.pipeline_mode<synchronous>, transform_indices = @transform_4, window_bounds = array<i64: 32, 128>}, {pipeline_mode = #tpu.pipeline_mode<synchronous>, transform_indices = @transform_5, window_bounds = array<i64: 64, 16>}, {pipeline_mode = #tpu.pipeline_mode<synchronous>, transform_indices = @transform_6, window_bounds = array<i64: 1, 16>}, {pipeline_mode = #tpu.pipeline_mode<synchronous>, transform_indices = @transform_7, window_bounds = array<i64: 1, 16>}, {pipeline_mode = #tpu.pipeline_mode<synchronous>, transform_indices = @transform_8, window_bounds = array<i64: 1, 16>}, {transform_indices = @transform_9, window_bounds = array<i64: 1, 8, 8, 16>}]} {
    %c0 = arith.constant 0 : index
    %c0_0 = arith.constant 0 : index
    %c0_1 = arith.constant 0 : index
    %c0_2 = arith.constant 0 : index
    %0 = vector.load %arg1[%c0, %c0_0, %c0_1, %c0_2] : memref<1x8x8x16xf32, #tpu.memory_space<vmem>>, vector<1x8x8x16xf32>
    %1 = vector.shape_cast %0 : vector<1x8x8x16xf32> to vector<8x8x16xf32>
    %2 = vector.shape_cast %1 : vector<8x8x16xf32> to vector<64x16xf32>
    %c0_3 = arith.constant 0 : index
    %c0_4 = arith.constant 0 : index
    %3 = vector.load %arg2[%c0_3, %c0_4] : memref<16x256xf32, #tpu.memory_space<vmem>>, vector<16x256xf32>
    %cst = arith.constant dense<0.000000e+00> : vector<64x256xf32>
    %4 = tpu.matmul %2, %3, %cst {dimension_numbers = #tpu.dot_dimension_numbers<[1], [0], [0], [1], [0, 0, 1, 1], [], []>} : vector<64x16xf32>, vector<16x256xf32>, vector<64x256xf32> -> vector<64x256xf32>
    %c0_5 = arith.constant 0 : index
    %c0_6 = arith.constant 0 : index
    %5 = vector.load %arg3[%c0_5, %c0_6] : memref<1x256xf32, #tpu.memory_space<vmem>>, vector<1x256xf32>
    %6 = vector.broadcast %5 : vector<1x256xf32> to vector<64x256xf32>
    %7 = arith.addf %4, %6 : vector<64x256xf32>
    %8 = vector.shape_cast %7 : vector<64x256xf32> to vector<8x8x256xf32>
    %c0_7 = arith.constant 0 : index
    %c0_8 = arith.constant 0 : index
    %c0_9 = arith.constant 0 : index
    %9 = vector.load %arg11[%c0_7, %c0_8, %c0_9] : memref<8x8x256xf32, #tpu.memory_space<vmem>>, vector<8x8x256xf32>
    tpu.vector_store %arg11[%c0_7, %c0_8, %c0_9], %8 {strides = array<i32>} : memref<8x8x256xf32, #tpu.memory_space<vmem>>, vector<8x8x256xf32>,
    %c0_10 = arith.constant 0 : index
    %c0_11 = arith.constant 0 : index
    %10 = vector.load %arg4[%c0_10, %c0_11] : memref<32x128xf32, #tpu.memory_space<vmem>>, vector<32x128xf32>
    %c0_12 = arith.constant 0 : index
    %c0_13 = arith.constant 0 : index
    %11 = vector.load %arg5[%c0_12, %c0_13] : memref<32x128xf32, #tpu.memory_space<vmem>>, vector<32x128xf32>
    %cst_14 = arith.constant 0.000000e+00 : f32
    %12 = vector.broadcast %cst_14 : f32 to vector<8x32xf32>
    %c0_i32 = arith.constant 0 : i32
    %c7_i32 = arith.constant 7 : i32
    %13 = arith.subi %c7_i32, %c0_i32 : i32
    %14 = arith.index_cast %c0_i32 : i32 to index
    %c0_15 = arith.constant 0 : index
    %c0_16 = arith.constant 0 : index
    %15 = vector.load %arg11[%14, %c0_15, %c0_16] : memref<8x8x256xf32, #tpu.memory_space<vmem>>, vector<1x8x128xf32>
    %16 = vector.shape_cast %15 : vector<1x8x128xf32> to vector<8x128xf32>
    %cst_17 = arith.constant dense<0.000000e+00> : vector<8x128xf32>
    %17 = tpu.matmul %12, %10, %cst_17 {dimension_numbers = #tpu.dot_dimension_numbers<[1], [0], [0], [1], [0, 0, 1, 1], [], []>} : vector<8x32xf32>, vector<32x128xf32>, vector<8x128xf32> -> vector<8x128xf32>
    %18 = arith.addf %16, %17 : vector<8x128xf32>
    %19 = arith.index_cast %13 : i32 to index
    %c0_18 = arith.constant 0 : index
    %c128 = arith.constant 128 : index
    %20 = vector.load %arg11[%19, %c0_18, %c128] : memref<8x8x256xf32, #tpu.memory_space<vmem>>, vector<1x8x128xf32>
    %21 = vector.shape_cast %20 : vector<1x8x128xf32> to vector<8x128xf32>
    %cst_19 = arith.constant dense<0.000000e+00> : vector<8x128xf32>
    %22 = tpu.matmul %12, %11, %cst_19 {dimension_numbers = #tpu.dot_dimension_numbers<[1], [0], [0], [1], [0, 0, 1, 1], [], []>} : vector<8x32xf32>, vector<32x128xf32>, vector<8x128xf32> -> vector<8x128xf32>
    %23 = arith.addf %21, %22 : vector<8x128xf32>
    %24 = vector.extract_strided_slice %18 {offsets = [0, 0], sizes = [8, 96], strides = [1, 1]} : vector<8x128xf32> to vector<8x96xf32>
    %25 = arith.negf %24 : vector<8x96xf32>
    %26 = math.exp %25 : vector<8x96xf32>
    %cst_20 = arith.constant 1.000000e+00 : f32
    %27 = vector.broadcast %cst_20 : f32 to vector<8x96xf32>
    %28 = arith.addf %27, %26 : vector<8x96xf32>
    %29 = arith.divf %27, %28 : vector<8x96xf32>
    %30 = vector.extract_strided_slice %29 {offsets = [0, 0], sizes = [8, 32], strides = [1, 1]} : vector<8x96xf32> to vector<8x32xf32>
    %31 = vector.extract_strided_slice %29 {offsets = [0, 32], sizes = [8, 32], strides = [1, 1]} : vector<8x96xf32> to vector<8x32xf32>
    %32 = vector.extract_strided_slice %29 {offsets = [0, 64], sizes = [8, 32], strides = [1, 1]} : vector<8x96xf32> to vector<8x32xf32>
    %33 = vector.extract_strided_slice %18 {offsets = [0, 96], sizes = [8, 32], strides = [1, 1]} : vector<8x128xf32> to vector<8x32xf32>
    %34 = math.tanh %33 : vector<8x32xf32>
    %35 = arith.mulf %31, %12 : vector<8x32xf32>
    %36 = arith.mulf %30, %34 : vector<8x32xf32>
    %37 = arith.addf %35, %36 : vector<8x32xf32>
    %38 = math.tanh %37 : vector<8x32xf32>
    %39 = arith.mulf %32, %38 : vector<8x32xf32>
    %40 = vector.extract_strided_slice %23 {offsets = [0, 0], sizes = [8, 96], strides = [1, 1]} : vector<8x128xf32> to vector<8x96xf32>
    %41 = arith.negf %40 : vector<8x96xf32>
    %42 = math.exp %41 : vector<8x96xf32>
    %cst_21 = arith.constant 1.000000e+00 : f32
    %43 = vector.broadcast %cst_21 : f32 to vector<8x96xf32>
    %44 = arith.addf %43, %42 : vector<8x96xf32>
    %45 = arith.divf %43, %44 : vector<8x96xf32>
    %46 = vector.extract_strided_slice %45 {offsets = [0, 0], sizes = [8, 32], strides = [1, 1]} : vector<8x96xf32> to vector<8x32xf32>
    %47 = vector.extract_strided_slice %45 {offsets = [0, 32], sizes = [8, 32], strides = [1, 1]} : vector<8x96xf32> to vector<8x32xf32>
    %48 = vector.extract_strided_slice %45 {offsets = [0, 64], sizes = [8, 32], strides = [1, 1]} : vector<8x96xf32> to vector<8x32xf32>
    %49 = vector.extract_strided_slice %23 {offsets = [0, 96], sizes = [8, 32], strides = [1, 1]} : vector<8x128xf32> to vector<8x32xf32>
    %50 = math.tanh %49 : vector<8x32xf32>
    %51 = arith.mulf %47, %12 : vector<8x32xf32>
    %52 = arith.mulf %46, %50 : vector<8x32xf32>
    %53 = arith.addf %51, %52 : vector<8x32xf32>
    %54 = math.tanh %53 : vector<8x32xf32>
    %55 = arith.mulf %48, %54 : vector<8x32xf32>
    %56 = arith.index_cast %c0_i32 : i32 to index
    %c0_22 = arith.constant 0 : index
    %c0_23 = arith.constant 0 : index
    %57 = vector.load %arg12[%56, %c0_22, %c0_23] : memref<8x8x64xf32, #tpu.memory_space<vmem>>, vector<1x8x32xf32>
    %58 = vector.shape_cast %57 : vector<1x8x32xf32> to vector<8x32xf32>
    %59 = vector.shape_cast %39 : vector<8x32xf32> to vector<1x8x32xf32>
    tpu.vector_store %arg12[%56, %c0_22, %c0_23], %59 {strides = array<i32>} : memref<8x8x64xf32, #tpu.memory_space<vmem>>, vector<1x8x32xf32>,
    %60 = arith.index_cast %13 : i32 to index
    %c0_24 = arith.constant 0 : index
    %c32 = arith.constant 32 : index
    %61 = vector.load %arg12[%60, %c0_24, %c32] : memref<8x8x64xf32, #tpu.memory_space<vmem>>, vector<1x8x32xf32>
    %62 = vector.shape_cast %61 : vector<1x8x32xf32> to vector<8x32xf32>
    %63 = vector.shape_cast %55 : vector<8x32xf32> to vector<1x8x32xf32>
    tpu.vector_store %arg12[%60, %c0_24, %c32], %63 {strides = array<i32>} : memref<8x8x64xf32, #tpu.memory_space<vmem>>, vector<1x8x32xf32>,
    %c1_i32 = arith.constant 1 : i32
    %c7_i32_25 = arith.constant 7 : i32
    %64 = arith.subi %c7_i32_25, %c1_i32 : i32
    %65 = arith.index_cast %c1_i32 : i32 to index
    %c0_26 = arith.constant 0 : index
    %c0_27 = arith.constant 0 : index
    %66 = vector.load %arg11[%65, %c0_26, %c0_27] : memref<8x8x256xf32, #tpu.memory_space<vmem>>, vector<1x8x128xf32>
    %67 = vector.shape_cast %66 : vector<1x8x128xf32> to vector<8x128xf32>
    %cst_28 = arith.constant dense<0.000000e+00> : vector<8x128xf32>
    %68 = tpu.matmul %39, %10, %cst_28 {dimension_numbers = #tpu.dot_dimension_numbers<[1], [0], [0], [1], [0, 0, 1, 1], [], []>} : vector<8x32xf32>, vector<32x128xf32>, vector<8x128xf32> -> vector<8x128xf32>
    %69 = arith.addf %67, %68 : vector<8x128xf32>
    %70 = arith.index_cast %64 : i32 to index
    %c0_29 = arith.constant 0 : index
    %c128_30 = arith.constant 128 : index
    %71 = vector.load %arg11[%70, %c0_29, %c128_30] : memref<8x8x256xf32, #tpu.memory_space<vmem>>, vector<1x8x128xf32>
    %72 = vector.shape_cast %71 : vector<1x8x128xf32> to vector<8x128xf32>
    %cst_31 = arith.constant dense<0.000000e+00> : vector<8x128xf32>
    %73 = tpu.matmul %55, %11, %cst_31 {dimension_numbers = #tpu.dot_dimension_numbers<[1], [0], [0], [1], [0, 0, 1, 1], [], []>} : vector<8x32xf32>, vector<32x128xf32>, vector<8x128xf32> -> vector<8x128xf32>
    %74 = arith.addf %72, %73 : vector<8x128xf32>
    %75 = vector.extract_strided_slice %69 {offsets = [0, 0], sizes = [8, 96], strides = [1, 1]} : vector<8x128xf32> to vector<8x96xf32>
    %76 = arith.negf %75 : vector<8x96xf32>
    %77 = math.exp %76 : vector<8x96xf32>
    %cst_32 = arith.constant 1.000000e+00 : f32
    %78 = vector.broadcast %cst_32 : f32 to vector<8x96xf32>
    %79 = arith.addf %78, %77 : vector<8x96xf32>
    %80 = arith.divf %78, %79 : vector<8x96xf32>
    %81 = vector.extract_strided_slice %80 {offsets = [0, 0], sizes = [8, 32], strides = [1, 1]} : vector<8x96xf32> to vector<8x32xf32>
    %82 = vector.extract_strided_slice %80 {offsets = [0, 32], sizes = [8, 32], strides = [1, 1]} : vector<8x96xf32> to vector<8x32xf32>
    %83 = vector.extract_strided_slice %80 {offsets = [0, 64], sizes = [8, 32], strides = [1, 1]} : vector<8x96xf32> to vector<8x32xf32>
    %84 = vector.extract_strided_slice %69 {offsets = [0, 96], sizes = [8, 32], strides = [1, 1]} : vector<8x128xf32> to vector<8x32xf32>
    %85 = math.tanh %84 : vector<8x32xf32>
    %86 = arith.mulf %82, %37 : vector<8x32xf32>
    %87 = arith.mulf %81, %85 : vector<8x32xf32>
    %88 = arith.addf %86, %87 : vector<8x32xf32>
    %89 = math.tanh %88 : vector<8x32xf32>
    %90 = arith.mulf %83, %89 : vector<8x32xf32>
    %91 = vector.extract_strided_slice %74 {offsets = [0, 0], sizes = [8, 96], strides = [1, 1]} : vector<8x128xf32> to vector<8x96xf32>
    %92 = arith.negf %91 : vector<8x96xf32>
    %93 = math.exp %92 : vector<8x96xf32>
    %cst_33 = arith.constant 1.000000e+00 : f32
    %94 = vector.broadcast %cst_33 : f32 to vector<8x96xf32>
    %95 = arith.addf %94, %93 : vector<8x96xf32>
    %96 = arith.divf %94, %95 : vector<8x96xf32>
    %97 = vector.extract_strided_slice %96 {offsets = [0, 0], sizes = [8, 32], strides = [1, 1]} : vector<8x96xf32> to vector<8x32xf32>
    %98 = vector.extract_strided_slice %96 {offsets = [0, 32], sizes = [8, 32], strides = [1, 1]} : vector<8x96xf32> to vector<8x32xf32>
    %99 = vector.extract_strided_slice %96 {offsets = [0, 64], sizes = [8, 32], strides = [1, 1]} : vector<8x96xf32> to vector<8x32xf32>
    %100 = vector.extract_strided_slice %74 {offsets = [0, 96], sizes = [8, 32], strides = [1, 1]} : vector<8x128xf32> to vector<8x32xf32>
    %101 = math.tanh %100 : vector<8x32xf32>
    %102 = arith.mulf %98, %53 : vector<8x32xf32>
    %103 = arith.mulf %97, %101 : vector<8x32xf32>
    %104 = arith.addf %102, %103 : vector<8x32xf32>
    %105 = math.tanh %104 : vector<8x32xf32>
    %106 = arith.mulf %99, %105 : vector<8x32xf32>
    %107 = arith.index_cast %c1_i32 : i32 to index
    %c0_34 = arith.constant 0 : index
    %c0_35 = arith.constant 0 : index
    %108 = vector.load %arg12[%107, %c0_34, %c0_35] : memref<8x8x64xf32, #tpu.memory_space<vmem>>, vector<1x8x32xf32>
    %109 = vector.shape_cast %108 : vector<1x8x32xf32> to vector<8x32xf32>
    %110 = vector.shape_cast %90 : vector<8x32xf32> to vector<1x8x32xf32>
    tpu.vector_store %arg12[%107, %c0_34, %c0_35], %110 {strides = array<i32>} : memref<8x8x64xf32, #tpu.memory_space<vmem>>, vector<1x8x32xf32>,
    %111 = arith.index_cast %64 : i32 to index
    %c0_36 = arith.constant 0 : index
    %c32_37 = arith.constant 32 : index
    %112 = vector.load %arg12[%111, %c0_36, %c32_37] : memref<8x8x64xf32, #tpu.memory_space<vmem>>, vector<1x8x32xf32>
    %113 = vector.shape_cast %112 : vector<1x8x32xf32> to vector<8x32xf32>
    %114 = vector.shape_cast %106 : vector<8x32xf32> to vector<1x8x32xf32>
    tpu.vector_store %arg12[%111, %c0_36, %c32_37], %114 {strides = array<i32>} : memref<8x8x64xf32, #tpu.memory_space<vmem>>, vector<1x8x32xf32>,
    %c2_i32 = arith.constant 2 : i32
    %c7_i32_38 = arith.constant 7 : i32
    %115 = arith.subi %c7_i32_38, %c2_i32 : i32
    %116 = arith.index_cast %c2_i32 : i32 to index
    %c0_39 = arith.constant 0 : index
    %c0_40 = arith.constant 0 : index
    %117 = vector.load %arg11[%116, %c0_39, %c0_40] : memref<8x8x256xf32, #tpu.memory_space<vmem>>, vector<1x8x128xf32>
    %118 = vector.shape_cast %117 : vector<1x8x128xf32> to vector<8x128xf32>
    %cst_41 = arith.constant dense<0.000000e+00> : vector<8x128xf32>
    %119 = tpu.matmul %90, %10, %cst_41 {dimension_numbers = #tpu.dot_dimension_numbers<[1], [0], [0], [1], [0, 0, 1, 1], [], []>} : vector<8x32xf32>, vector<32x128xf32>, vector<8x128xf32> -> vector<8x128xf32>
    %120 = arith.addf %118, %119 : vector<8x128xf32>
    %121 = arith.index_cast %115 : i32 to index
    %c0_42 = arith.constant 0 : index
    %c128_43 = arith.constant 128 : index
    %122 = vector.load %arg11[%121, %c0_42, %c128_43] : memref<8x8x256xf32, #tpu.memory_space<vmem>>, vector<1x8x128xf32>
    %123 = vector.shape_cast %122 : vector<1x8x128xf32> to vector<8x128xf32>
    %cst_44 = arith.constant dense<0.000000e+00> : vector<8x128xf32>
    %124 = tpu.matmul %106, %11, %cst_44 {dimension_numbers = #tpu.dot_dimension_numbers<[1], [0], [0], [1], [0, 0, 1, 1], [], []>} : vector<8x32xf32>, vector<32x128xf32>, vector<8x128xf32> -> vector<8x128xf32>
    %125 = arith.addf %123, %124 : vector<8x128xf32>
    %126 = vector.extract_strided_slice %120 {offsets = [0, 0], sizes = [8, 96], strides = [1, 1]} : vector<8x128xf32> to vector<8x96xf32>
    %127 = arith.negf %126 : vector<8x96xf32>
    %128 = math.exp %127 : vector<8x96xf32>
    %cst_45 = arith.constant 1.000000e+00 : f32
    %129 = vector.broadcast %cst_45 : f32 to vector<8x96xf32>
    %130 = arith.addf %129, %128 : vector<8x96xf32>
    %131 = arith.divf %129, %130 : vector<8x96xf32>
    %132 = vector.extract_strided_slice %131 {offsets = [0, 0], sizes = [8, 32], strides = [1, 1]} : vector<8x96xf32> to vector<8x32xf32>
    %133 = vector.extract_strided_slice %131 {offsets = [0, 32], sizes = [8, 32], strides = [1, 1]} : vector<8x96xf32> to vector<8x32xf32>
    %134 = vector.extract_strided_slice %131 {offsets = [0, 64], sizes = [8, 32], strides = [1, 1]} : vector<8x96xf32> to vector<8x32xf32>
    %135 = vector.extract_strided_slice %120 {offsets = [0, 96], sizes = [8, 32], strides = [1, 1]} : vector<8x128xf32> to vector<8x32xf32>
    %136 = math.tanh %135 : vector<8x32xf32>
    %137 = arith.mulf %133, %88 : vector<8x32xf32>
    %138 = arith.mulf %132, %136 : vector<8x32xf32>
    %139 = arith.addf %137, %138 : vector<8x32xf32>
    %140 = math.tanh %139 : vector<8x32xf32>
    %141 = arith.mulf %134, %140 : vector<8x32xf32>
    %142 = vector.extract_strided_slice %125 {offsets = [0, 0], sizes = [8, 96], strides = [1, 1]} : vector<8x128xf32> to vector<8x96xf32>
    %143 = arith.negf %142 : vector<8x96xf32>
    %144 = math.exp %143 : vector<8x96xf32>
    %cst_46 = arith.constant 1.000000e+00 : f32
    %145 = vector.broadcast %cst_46 : f32 to vector<8x96xf32>
    %146 = arith.addf %145, %144 : vector<8x96xf32>
    %147 = arith.divf %145, %146 : vector<8x96xf32>
    %148 = vector.extract_strided_slice %147 {offsets = [0, 0], sizes = [8, 32], strides = [1, 1]} : vector<8x96xf32> to vector<8x32xf32>
    %149 = vector.extract_strided_slice %147 {offsets = [0, 32], sizes = [8, 32], strides = [1, 1]} : vector<8x96xf32> to vector<8x32xf32>
    %150 = vector.extract_strided_slice %147 {offsets = [0, 64], sizes = [8, 32], strides = [1, 1]} : vector<8x96xf32> to vector<8x32xf32>
    %151 = vector.extract_strided_slice %125 {offsets = [0, 96], sizes = [8, 32], strides = [1, 1]} : vector<8x128xf32> to vector<8x32xf32>
    %152 = math.tanh %151 : vector<8x32xf32>
    %153 = arith.mulf %149, %104 : vector<8x32xf32>
    %154 = arith.mulf %148, %152 : vector<8x32xf32>
    %155 = arith.addf %153, %154 : vector<8x32xf32>
    %156 = math.tanh %155 : vector<8x32xf32>
    %157 = arith.mulf %150, %156 : vector<8x32xf32>
    %158 = arith.index_cast %c2_i32 : i32 to index
    %c0_47 = arith.constant 0 : index
    %c0_48 = arith.constant 0 : index
    %159 = vector.load %arg12[%158, %c0_47, %c0_48] : memref<8x8x64xf32, #tpu.memory_space<vmem>>, vector<1x8x32xf32>
    %160 = vector.shape_cast %159 : vector<1x8x32xf32> to vector<8x32xf32>
    %161 = vector.shape_cast %141 : vector<8x32xf32> to vector<1x8x32xf32>
    tpu.vector_store %arg12[%158, %c0_47, %c0_48], %161 {strides = array<i32>} : memref<8x8x64xf32, #tpu.memory_space<vmem>>, vector<1x8x32xf32>,
    %162 = arith.index_cast %115 : i32 to index
    %c0_49 = arith.constant 0 : index
    %c32_50 = arith.constant 32 : index
    %163 = vector.load %arg12[%162, %c0_49, %c32_50] : memref<8x8x64xf32, #tpu.memory_space<vmem>>, vector<1x8x32xf32>
    %164 = vector.shape_cast %163 : vector<1x8x32xf32> to vector<8x32xf32>
    %165 = vector.shape_cast %157 : vector<8x32xf32> to vector<1x8x32xf32>
    tpu.vector_store %arg12[%162, %c0_49, %c32_50], %165 {strides = array<i32>} : memref<8x8x64xf32, #tpu.memory_space<vmem>>, vector<1x8x32xf32>,
    %c3_i32 = arith.constant 3 : i32
    %c7_i32_51 = arith.constant 7 : i32
    %166 = arith.subi %c7_i32_51, %c3_i32 : i32
    %167 = arith.index_cast %c3_i32 : i32 to index
    %c0_52 = arith.constant 0 : index
    %c0_53 = arith.constant 0 : index
    %168 = vector.load %arg11[%167, %c0_52, %c0_53] : memref<8x8x256xf32, #tpu.memory_space<vmem>>, vector<1x8x128xf32>
    %169 = vector.shape_cast %168 : vector<1x8x128xf32> to vector<8x128xf32>
    %cst_54 = arith.constant dense<0.000000e+00> : vector<8x128xf32>
    %170 = tpu.matmul %141, %10, %cst_54 {dimension_numbers = #tpu.dot_dimension_numbers<[1], [0], [0], [1], [0, 0, 1, 1], [], []>} : vector<8x32xf32>, vector<32x128xf32>, vector<8x128xf32> -> vector<8x128xf32>
    %171 = arith.addf %169, %170 : vector<8x128xf32>
    %172 = arith.index_cast %166 : i32 to index
    %c0_55 = arith.constant 0 : index
    %c128_56 = arith.constant 128 : index
    %173 = vector.load %arg11[%172, %c0_55, %c128_56] : memref<8x8x256xf32, #tpu.memory_space<vmem>>, vector<1x8x128xf32>
    %174 = vector.shape_cast %173 : vector<1x8x128xf32> to vector<8x128xf32>
    %cst_57 = arith.constant dense<0.000000e+00> : vector<8x128xf32>
    %175 = tpu.matmul %157, %11, %cst_57 {dimension_numbers = #tpu.dot_dimension_numbers<[1], [0], [0], [1], [0, 0, 1, 1], [], []>} : vector<8x32xf32>, vector<32x128xf32>, vector<8x128xf32> -> vector<8x128xf32>
    %176 = arith.addf %174, %175 : vector<8x128xf32>
    %177 = vector.extract_strided_slice %171 {offsets = [0, 0], sizes = [8, 96], strides = [1, 1]} : vector<8x128xf32> to vector<8x96xf32>
    %178 = arith.negf %177 : vector<8x96xf32>
    %179 = math.exp %178 : vector<8x96xf32>
    %cst_58 = arith.constant 1.000000e+00 : f32
    %180 = vector.broadcast %cst_58 : f32 to vector<8x96xf32>
    %181 = arith.addf %180, %179 : vector<8x96xf32>
    %182 = arith.divf %180, %181 : vector<8x96xf32>
    %183 = vector.extract_strided_slice %182 {offsets = [0, 0], sizes = [8, 32], strides = [1, 1]} : vector<8x96xf32> to vector<8x32xf32>
    %184 = vector.extract_strided_slice %182 {offsets = [0, 32], sizes = [8, 32], strides = [1, 1]} : vector<8x96xf32> to vector<8x32xf32>
    %185 = vector.extract_strided_slice %182 {offsets = [0, 64], sizes = [8, 32], strides = [1, 1]} : vector<8x96xf32> to vector<8x32xf32>
    %186 = vector.extract_strided_slice %171 {offsets = [0, 96], sizes = [8, 32], strides = [1, 1]} : vector<8x128xf32> to vector<8x32xf32>
    %187 = math.tanh %186 : vector<8x32xf32>
    %188 = arith.mulf %184, %139 : vector<8x32xf32>
    %189 = arith.mulf %183, %187 : vector<8x32xf32>
    %190 = arith.addf %188, %189 : vector<8x32xf32>
    %191 = math.tanh %190 : vector<8x32xf32>
    %192 = arith.mulf %185, %191 : vector<8x32xf32>
    %193 = vector.extract_strided_slice %176 {offsets = [0, 0], sizes = [8, 96], strides = [1, 1]} : vector<8x128xf32> to vector<8x96xf32>
    %194 = arith.negf %193 : vector<8x96xf32>
    %195 = math.exp %194 : vector<8x96xf32>
    %cst_59 = arith.constant 1.000000e+00 : f32
    %196 = vector.broadcast %cst_59 : f32 to vector<8x96xf32>
    %197 = arith.addf %196, %195 : vector<8x96xf32>
    %198 = arith.divf %196, %197 : vector<8x96xf32>
    %199 = vector.extract_strided_slice %198 {offsets = [0, 0], sizes = [8, 32], strides = [1, 1]} : vector<8x96xf32> to vector<8x32xf32>
    %200 = vector.extract_strided_slice %198 {offsets = [0, 32], sizes = [8, 32], strides = [1, 1]} : vector<8x96xf32> to vector<8x32xf32>
    %201 = vector.extract_strided_slice %198 {offsets = [0, 64], sizes = [8, 32], strides = [1, 1]} : vector<8x96xf32> to vector<8x32xf32>
    %202 = vector.extract_strided_slice %176 {offsets = [0, 96], sizes = [8, 32], strides = [1, 1]} : vector<8x128xf32> to vector<8x32xf32>
    %203 = math.tanh %202 : vector<8x32xf32>
    %204 = arith.mulf %200, %155 : vector<8x32xf32>
    %205 = arith.mulf %199, %203 : vector<8x32xf32>
    %206 = arith.addf %204, %205 : vector<8x32xf32>
    %207 = math.tanh %206 : vector<8x32xf32>
    %208 = arith.mulf %201, %207 : vector<8x32xf32>
    %209 = arith.index_cast %c3_i32 : i32 to index
    %c0_60 = arith.constant 0 : index
    %c0_61 = arith.constant 0 : index
    %210 = vector.load %arg12[%209, %c0_60, %c0_61] : memref<8x8x64xf32, #tpu.memory_space<vmem>>, vector<1x8x32xf32>
    %211 = vector.shape_cast %210 : vector<1x8x32xf32> to vector<8x32xf32>
    %212 = vector.shape_cast %192 : vector<8x32xf32> to vector<1x8x32xf32>
    tpu.vector_store %arg12[%209, %c0_60, %c0_61], %212 {strides = array<i32>} : memref<8x8x64xf32, #tpu.memory_space<vmem>>, vector<1x8x32xf32>,
    %213 = arith.index_cast %166 : i32 to index
    %c0_62 = arith.constant 0 : index
    %c32_63 = arith.constant 32 : index
    %214 = vector.load %arg12[%213, %c0_62, %c32_63] : memref<8x8x64xf32, #tpu.memory_space<vmem>>, vector<1x8x32xf32>
    %215 = vector.shape_cast %214 : vector<1x8x32xf32> to vector<8x32xf32>
    %216 = vector.shape_cast %208 : vector<8x32xf32> to vector<1x8x32xf32>
    tpu.vector_store %arg12[%213, %c0_62, %c32_63], %216 {strides = array<i32>} : memref<8x8x64xf32, #tpu.memory_space<vmem>>, vector<1x8x32xf32>,
    %c4_i32 = arith.constant 4 : i32
    %c7_i32_64 = arith.constant 7 : i32
    %217 = arith.subi %c7_i32_64, %c4_i32 : i32
    %218 = arith.index_cast %c4_i32 : i32 to index
    %c0_65 = arith.constant 0 : index
    %c0_66 = arith.constant 0 : index
    %219 = vector.load %arg11[%218, %c0_65, %c0_66] : memref<8x8x256xf32, #tpu.memory_space<vmem>>, vector<1x8x128xf32>
    %220 = vector.shape_cast %219 : vector<1x8x128xf32> to vector<8x128xf32>
    %cst_67 = arith.constant dense<0.000000e+00> : vector<8x128xf32>
    %221 = tpu.matmul %192, %10, %cst_67 {dimension_numbers = #tpu.dot_dimension_numbers<[1], [0], [0], [1], [0, 0, 1, 1], [], []>} : vector<8x32xf32>, vector<32x128xf32>, vector<8x128xf32> -> vector<8x128xf32>
    %222 = arith.addf %220, %221 : vector<8x128xf32>
    %223 = arith.index_cast %217 : i32 to index
    %c0_68 = arith.constant 0 : index
    %c128_69 = arith.constant 128 : index
    %224 = vector.load %arg11[%223, %c0_68, %c128_69] : memref<8x8x256xf32, #tpu.memory_space<vmem>>, vector<1x8x128xf32>
    %225 = vector.shape_cast %224 : vector<1x8x128xf32> to vector<8x128xf32>
    %cst_70 = arith.constant dense<0.000000e+00> : vector<8x128xf32>
    %226 = tpu.matmul %208, %11, %cst_70 {dimension_numbers = #tpu.dot_dimension_numbers<[1], [0], [0], [1], [0, 0, 1, 1], [], []>} : vector<8x32xf32>, vector<32x128xf32>, vector<8x128xf32> -> vector<8x128xf32>
    %227 = arith.addf %225, %226 : vector<8x128xf32>
    %228 = vector.extract_strided_slice %222 {offsets = [0, 0], sizes = [8, 96], strides = [1, 1]} : vector<8x128xf32> to vector<8x96xf32>
    %229 = arith.negf %228 : vector<8x96xf32>
    %230 = math.exp %229 : vector<8x96xf32>
    %cst_71 = arith.constant 1.000000e+00 : f32
    %231 = vector.broadcast %cst_71 : f32 to vector<8x96xf32>
    %232 = arith.addf %231, %230 : vector<8x96xf32>
    %233 = arith.divf %231, %232 : vector<8x96xf32>
    %234 = vector.extract_strided_slice %233 {offsets = [0, 0], sizes = [8, 32], strides = [1, 1]} : vector<8x96xf32> to vector<8x32xf32>
    %235 = vector.extract_strided_slice %233 {offsets = [0, 32], sizes = [8, 32], strides = [1, 1]} : vector<8x96xf32> to vector<8x32xf32>
    %236 = vector.extract_strided_slice %233 {offsets = [0, 64], sizes = [8, 32], strides = [1, 1]} : vector<8x96xf32> to vector<8x32xf32>
    %237 = vector.extract_strided_slice %222 {offsets = [0, 96], sizes = [8, 32], strides = [1, 1]} : vector<8x128xf32> to vector<8x32xf32>
    %238 = math.tanh %237 : vector<8x32xf32>
    %239 = arith.mulf %235, %190 : vector<8x32xf32>
    %240 = arith.mulf %234, %238 : vector<8x32xf32>
    %241 = arith.addf %239, %240 : vector<8x32xf32>
    %242 = math.tanh %241 : vector<8x32xf32>
    %243 = arith.mulf %236, %242 : vector<8x32xf32>
    %244 = vector.extract_strided_slice %227 {offsets = [0, 0], sizes = [8, 96], strides = [1, 1]} : vector<8x128xf32> to vector<8x96xf32>
    %245 = arith.negf %244 : vector<8x96xf32>
    %246 = math.exp %245 : vector<8x96xf32>
    %cst_72 = arith.constant 1.000000e+00 : f32
    %247 = vector.broadcast %cst_72 : f32 to vector<8x96xf32>
    %248 = arith.addf %247, %246 : vector<8x96xf32>
    %249 = arith.divf %247, %248 : vector<8x96xf32>
    %250 = vector.extract_strided_slice %249 {offsets = [0, 0], sizes = [8, 32], strides = [1, 1]} : vector<8x96xf32> to vector<8x32xf32>
    %251 = vector.extract_strided_slice %249 {offsets = [0, 32], sizes = [8, 32], strides = [1, 1]} : vector<8x96xf32> to vector<8x32xf32>
    %252 = vector.extract_strided_slice %249 {offsets = [0, 64], sizes = [8, 32], strides = [1, 1]} : vector<8x96xf32> to vector<8x32xf32>
    %253 = vector.extract_strided_slice %227 {offsets = [0, 96], sizes = [8, 32], strides = [1, 1]} : vector<8x128xf32> to vector<8x32xf32>
    %254 = math.tanh %253 : vector<8x32xf32>
    %255 = arith.mulf %251, %206 : vector<8x32xf32>
    %256 = arith.mulf %250, %254 : vector<8x32xf32>
    %257 = arith.addf %255, %256 : vector<8x32xf32>
    %258 = math.tanh %257 : vector<8x32xf32>
    %259 = arith.mulf %252, %258 : vector<8x32xf32>
    %260 = arith.index_cast %c4_i32 : i32 to index
    %c0_73 = arith.constant 0 : index
    %c0_74 = arith.constant 0 : index
    %261 = vector.load %arg12[%260, %c0_73, %c0_74] : memref<8x8x64xf32, #tpu.memory_space<vmem>>, vector<1x8x32xf32>
    %262 = vector.shape_cast %261 : vector<1x8x32xf32> to vector<8x32xf32>
    %263 = vector.shape_cast %243 : vector<8x32xf32> to vector<1x8x32xf32>
    tpu.vector_store %arg12[%260, %c0_73, %c0_74], %263 {strides = array<i32>} : memref<8x8x64xf32, #tpu.memory_space<vmem>>, vector<1x8x32xf32>,
    %264 = arith.index_cast %217 : i32 to index
    %c0_75 = arith.constant 0 : index
    %c32_76 = arith.constant 32 : index
    %265 = vector.load %arg12[%264, %c0_75, %c32_76] : memref<8x8x64xf32, #tpu.memory_space<vmem>>, vector<1x8x32xf32>
    %266 = vector.shape_cast %265 : vector<1x8x32xf32> to vector<8x32xf32>
    %267 = vector.shape_cast %259 : vector<8x32xf32> to vector<1x8x32xf32>
    tpu.vector_store %arg12[%264, %c0_75, %c32_76], %267 {strides = array<i32>} : memref<8x8x64xf32, #tpu.memory_space<vmem>>, vector<1x8x32xf32>,
    %c5_i32 = arith.constant 5 : i32
    %c7_i32_77 = arith.constant 7 : i32
    %268 = arith.subi %c7_i32_77, %c5_i32 : i32
    %269 = arith.index_cast %c5_i32 : i32 to index
    %c0_78 = arith.constant 0 : index
    %c0_79 = arith.constant 0 : index
    %270 = vector.load %arg11[%269, %c0_78, %c0_79] : memref<8x8x256xf32, #tpu.memory_space<vmem>>, vector<1x8x128xf32>
    %271 = vector.shape_cast %270 : vector<1x8x128xf32> to vector<8x128xf32>
    %cst_80 = arith.constant dense<0.000000e+00> : vector<8x128xf32>
    %272 = tpu.matmul %243, %10, %cst_80 {dimension_numbers = #tpu.dot_dimension_numbers<[1], [0], [0], [1], [0, 0, 1, 1], [], []>} : vector<8x32xf32>, vector<32x128xf32>, vector<8x128xf32> -> vector<8x128xf32>
    %273 = arith.addf %271, %272 : vector<8x128xf32>
    %274 = arith.index_cast %268 : i32 to index
    %c0_81 = arith.constant 0 : index
    %c128_82 = arith.constant 128 : index
    %275 = vector.load %arg11[%274, %c0_81, %c128_82] : memref<8x8x256xf32, #tpu.memory_space<vmem>>, vector<1x8x128xf32>
    %276 = vector.shape_cast %275 : vector<1x8x128xf32> to vector<8x128xf32>
    %cst_83 = arith.constant dense<0.000000e+00> : vector<8x128xf32>
    %277 = tpu.matmul %259, %11, %cst_83 {dimension_numbers = #tpu.dot_dimension_numbers<[1], [0], [0], [1], [0, 0, 1, 1], [], []>} : vector<8x32xf32>, vector<32x128xf32>, vector<8x128xf32> -> vector<8x128xf32>
    %278 = arith.addf %276, %277 : vector<8x128xf32>
    %279 = vector.extract_strided_slice %273 {offsets = [0, 0], sizes = [8, 96], strides = [1, 1]} : vector<8x128xf32> to vector<8x96xf32>
    %280 = arith.negf %279 : vector<8x96xf32>
    %281 = math.exp %280 : vector<8x96xf32>
    %cst_84 = arith.constant 1.000000e+00 : f32
    %282 = vector.broadcast %cst_84 : f32 to vector<8x96xf32>
    %283 = arith.addf %282, %281 : vector<8x96xf32>
    %284 = arith.divf %282, %283 : vector<8x96xf32>
    %285 = vector.extract_strided_slice %284 {offsets = [0, 0], sizes = [8, 32], strides = [1, 1]} : vector<8x96xf32> to vector<8x32xf32>
    %286 = vector.extract_strided_slice %284 {offsets = [0, 32], sizes = [8, 32], strides = [1, 1]} : vector<8x96xf32> to vector<8x32xf32>
    %287 = vector.extract_strided_slice %284 {offsets = [0, 64], sizes = [8, 32], strides = [1, 1]} : vector<8x96xf32> to vector<8x32xf32>
    %288 = vector.extract_strided_slice %273 {offsets = [0, 96], sizes = [8, 32], strides = [1, 1]} : vector<8x128xf32> to vector<8x32xf32>
    %289 = math.tanh %288 : vector<8x32xf32>
    %290 = arith.mulf %286, %241 : vector<8x32xf32>
    %291 = arith.mulf %285, %289 : vector<8x32xf32>
    %292 = arith.addf %290, %291 : vector<8x32xf32>
    %293 = math.tanh %292 : vector<8x32xf32>
    %294 = arith.mulf %287, %293 : vector<8x32xf32>
    %295 = vector.extract_strided_slice %278 {offsets = [0, 0], sizes = [8, 96], strides = [1, 1]} : vector<8x128xf32> to vector<8x96xf32>
    %296 = arith.negf %295 : vector<8x96xf32>
    %297 = math.exp %296 : vector<8x96xf32>
    %cst_85 = arith.constant 1.000000e+00 : f32
    %298 = vector.broadcast %cst_85 : f32 to vector<8x96xf32>
    %299 = arith.addf %298, %297 : vector<8x96xf32>
    %300 = arith.divf %298, %299 : vector<8x96xf32>
    %301 = vector.extract_strided_slice %300 {offsets = [0, 0], sizes = [8, 32], strides = [1, 1]} : vector<8x96xf32> to vector<8x32xf32>
    %302 = vector.extract_strided_slice %300 {offsets = [0, 32], sizes = [8, 32], strides = [1, 1]} : vector<8x96xf32> to vector<8x32xf32>
    %303 = vector.extract_strided_slice %300 {offsets = [0, 64], sizes = [8, 32], strides = [1, 1]} : vector<8x96xf32> to vector<8x32xf32>
    %304 = vector.extract_strided_slice %278 {offsets = [0, 96], sizes = [8, 32], strides = [1, 1]} : vector<8x128xf32> to vector<8x32xf32>
    %305 = math.tanh %304 : vector<8x32xf32>
    %306 = arith.mulf %302, %257 : vector<8x32xf32>
    %307 = arith.mulf %301, %305 : vector<8x32xf32>
    %308 = arith.addf %306, %307 : vector<8x32xf32>
    %309 = math.tanh %308 : vector<8x32xf32>
    %310 = arith.mulf %303, %309 : vector<8x32xf32>
    %311 = arith.index_cast %c5_i32 : i32 to index
    %c0_86 = arith.constant 0 : index
    %c0_87 = arith.constant 0 : index
    %312 = vector.load %arg12[%311, %c0_86, %c0_87] : memref<8x8x64xf32, #tpu.memory_space<vmem>>, vector<1x8x32xf32>
    %313 = vector.shape_cast %312 : vector<1x8x32xf32> to vector<8x32xf32>
    %314 = vector.shape_cast %294 : vector<8x32xf32> to vector<1x8x32xf32>
    tpu.vector_store %arg12[%311, %c0_86, %c0_87], %314 {strides = array<i32>} : memref<8x8x64xf32, #tpu.memory_space<vmem>>, vector<1x8x32xf32>,
    %315 = arith.index_cast %268 : i32 to index
    %c0_88 = arith.constant 0 : index
    %c32_89 = arith.constant 32 : index
    %316 = vector.load %arg12[%315, %c0_88, %c32_89] : memref<8x8x64xf32, #tpu.memory_space<vmem>>, vector<1x8x32xf32>
    %317 = vector.shape_cast %316 : vector<1x8x32xf32> to vector<8x32xf32>
    %318 = vector.shape_cast %310 : vector<8x32xf32> to vector<1x8x32xf32>
    tpu.vector_store %arg12[%315, %c0_88, %c32_89], %318 {strides = array<i32>} : memref<8x8x64xf32, #tpu.memory_space<vmem>>, vector<1x8x32xf32>,
    %c6_i32 = arith.constant 6 : i32
    %c7_i32_90 = arith.constant 7 : i32
    %319 = arith.subi %c7_i32_90, %c6_i32 : i32
    %320 = arith.index_cast %c6_i32 : i32 to index
    %c0_91 = arith.constant 0 : index
    %c0_92 = arith.constant 0 : index
    %321 = vector.load %arg11[%320, %c0_91, %c0_92] : memref<8x8x256xf32, #tpu.memory_space<vmem>>, vector<1x8x128xf32>
    %322 = vector.shape_cast %321 : vector<1x8x128xf32> to vector<8x128xf32>
    %cst_93 = arith.constant dense<0.000000e+00> : vector<8x128xf32>
    %323 = tpu.matmul %294, %10, %cst_93 {dimension_numbers = #tpu.dot_dimension_numbers<[1], [0], [0], [1], [0, 0, 1, 1], [], []>} : vector<8x32xf32>, vector<32x128xf32>, vector<8x128xf32> -> vector<8x128xf32>
    %324 = arith.addf %322, %323 : vector<8x128xf32>
    %325 = arith.index_cast %319 : i32 to index
    %c0_94 = arith.constant 0 : index
    %c128_95 = arith.constant 128 : index
    %326 = vector.load %arg11[%325, %c0_94, %c128_95] : memref<8x8x256xf32, #tpu.memory_space<vmem>>, vector<1x8x128xf32>
    %327 = vector.shape_cast %326 : vector<1x8x128xf32> to vector<8x128xf32>
    %cst_96 = arith.constant dense<0.000000e+00> : vector<8x128xf32>
    %328 = tpu.matmul %310, %11, %cst_96 {dimension_numbers = #tpu.dot_dimension_numbers<[1], [0], [0], [1], [0, 0, 1, 1], [], []>} : vector<8x32xf32>, vector<32x128xf32>, vector<8x128xf32> -> vector<8x128xf32>
    %329 = arith.addf %327, %328 : vector<8x128xf32>
    %330 = vector.extract_strided_slice %324 {offsets = [0, 0], sizes = [8, 96], strides = [1, 1]} : vector<8x128xf32> to vector<8x96xf32>
    %331 = arith.negf %330 : vector<8x96xf32>
    %332 = math.exp %331 : vector<8x96xf32>
    %cst_97 = arith.constant 1.000000e+00 : f32
    %333 = vector.broadcast %cst_97 : f32 to vector<8x96xf32>
    %334 = arith.addf %333, %332 : vector<8x96xf32>
    %335 = arith.divf %333, %334 : vector<8x96xf32>
    %336 = vector.extract_strided_slice %335 {offsets = [0, 0], sizes = [8, 32], strides = [1, 1]} : vector<8x96xf32> to vector<8x32xf32>
    %337 = vector.extract_strided_slice %335 {offsets = [0, 32], sizes = [8, 32], strides = [1, 1]} : vector<8x96xf32> to vector<8x32xf32>
    %338 = vector.extract_strided_slice %335 {offsets = [0, 64], sizes = [8, 32], strides = [1, 1]} : vector<8x96xf32> to vector<8x32xf32>
    %339 = vector.extract_strided_slice %324 {offsets = [0, 96], sizes = [8, 32], strides = [1, 1]} : vector<8x128xf32> to vector<8x32xf32>
    %340 = math.tanh %339 : vector<8x32xf32>
    %341 = arith.mulf %337, %292 : vector<8x32xf32>
    %342 = arith.mulf %336, %340 : vector<8x32xf32>
    %343 = arith.addf %341, %342 : vector<8x32xf32>
    %344 = math.tanh %343 : vector<8x32xf32>
    %345 = arith.mulf %338, %344 : vector<8x32xf32>
    %346 = vector.extract_strided_slice %329 {offsets = [0, 0], sizes = [8, 96], strides = [1, 1]} : vector<8x128xf32> to vector<8x96xf32>
    %347 = arith.negf %346 : vector<8x96xf32>
    %348 = math.exp %347 : vector<8x96xf32>
    %cst_98 = arith.constant 1.000000e+00 : f32
    %349 = vector.broadcast %cst_98 : f32 to vector<8x96xf32>
    %350 = arith.addf %349, %348 : vector<8x96xf32>
    %351 = arith.divf %349, %350 : vector<8x96xf32>
    %352 = vector.extract_strided_slice %351 {offsets = [0, 0], sizes = [8, 32], strides = [1, 1]} : vector<8x96xf32> to vector<8x32xf32>
    %353 = vector.extract_strided_slice %351 {offsets = [0, 32], sizes = [8, 32], strides = [1, 1]} : vector<8x96xf32> to vector<8x32xf32>
    %354 = vector.extract_strided_slice %351 {offsets = [0, 64], sizes = [8, 32], strides = [1, 1]} : vector<8x96xf32> to vector<8x32xf32>
    %355 = vector.extract_strided_slice %329 {offsets = [0, 96], sizes = [8, 32], strides = [1, 1]} : vector<8x128xf32> to vector<8x32xf32>
    %356 = math.tanh %355 : vector<8x32xf32>
    %357 = arith.mulf %353, %308 : vector<8x32xf32>
    %358 = arith.mulf %352, %356 : vector<8x32xf32>
    %359 = arith.addf %357, %358 : vector<8x32xf32>
    %360 = math.tanh %359 : vector<8x32xf32>
    %361 = arith.mulf %354, %360 : vector<8x32xf32>
    %362 = arith.index_cast %c6_i32 : i32 to index
    %c0_99 = arith.constant 0 : index
    %c0_100 = arith.constant 0 : index
    %363 = vector.load %arg12[%362, %c0_99, %c0_100] : memref<8x8x64xf32, #tpu.memory_space<vmem>>, vector<1x8x32xf32>
    %364 = vector.shape_cast %363 : vector<1x8x32xf32> to vector<8x32xf32>
    %365 = vector.shape_cast %345 : vector<8x32xf32> to vector<1x8x32xf32>
    tpu.vector_store %arg12[%362, %c0_99, %c0_100], %365 {strides = array<i32>} : memref<8x8x64xf32, #tpu.memory_space<vmem>>, vector<1x8x32xf32>,
    %366 = arith.index_cast %319 : i32 to index
    %c0_101 = arith.constant 0 : index
    %c32_102 = arith.constant 32 : index
    %367 = vector.load %arg12[%366, %c0_101, %c32_102] : memref<8x8x64xf32, #tpu.memory_space<vmem>>, vector<1x8x32xf32>
    %368 = vector.shape_cast %367 : vector<1x8x32xf32> to vector<8x32xf32>
    %369 = vector.shape_cast %361 : vector<8x32xf32> to vector<1x8x32xf32>
    tpu.vector_store %arg12[%366, %c0_101, %c32_102], %369 {strides = array<i32>} : memref<8x8x64xf32, #tpu.memory_space<vmem>>, vector<1x8x32xf32>,
    %c7_i32_103 = arith.constant 7 : i32
    %c7_i32_104 = arith.constant 7 : i32
    %370 = arith.subi %c7_i32_104, %c7_i32_103 : i32
    %371 = arith.index_cast %c7_i32_103 : i32 to index
    %c0_105 = arith.constant 0 : index
    %c0_106 = arith.constant 0 : index
    %372 = vector.load %arg11[%371, %c0_105, %c0_106] : memref<8x8x256xf32, #tpu.memory_space<vmem>>, vector<1x8x128xf32>
    %373 = vector.shape_cast %372 : vector<1x8x128xf32> to vector<8x128xf32>
    %cst_107 = arith.constant dense<0.000000e+00> : vector<8x128xf32>
    %374 = tpu.matmul %345, %10, %cst_107 {dimension_numbers = #tpu.dot_dimension_numbers<[1], [0], [0], [1], [0, 0, 1, 1], [], []>} : vector<8x32xf32>, vector<32x128xf32>, vector<8x128xf32> -> vector<8x128xf32>
    %375 = arith.addf %373, %374 : vector<8x128xf32>
    %376 = arith.index_cast %370 : i32 to index
    %c0_108 = arith.constant 0 : index
    %c128_109 = arith.constant 128 : index
    %377 = vector.load %arg11[%376, %c0_108, %c128_109] : memref<8x8x256xf32, #tpu.memory_space<vmem>>, vector<1x8x128xf32>
    %378 = vector.shape_cast %377 : vector<1x8x128xf32> to vector<8x128xf32>
    %cst_110 = arith.constant dense<0.000000e+00> : vector<8x128xf32>
    %379 = tpu.matmul %361, %11, %cst_110 {dimension_numbers = #tpu.dot_dimension_numbers<[1], [0], [0], [1], [0, 0, 1, 1], [], []>} : vector<8x32xf32>, vector<32x128xf32>, vector<8x128xf32> -> vector<8x128xf32>
    %380 = arith.addf %378, %379 : vector<8x128xf32>
    %381 = vector.extract_strided_slice %375 {offsets = [0, 0], sizes = [8, 96], strides = [1, 1]} : vector<8x128xf32> to vector<8x96xf32>
    %382 = arith.negf %381 : vector<8x96xf32>
    %383 = math.exp %382 : vector<8x96xf32>
    %cst_111 = arith.constant 1.000000e+00 : f32
    %384 = vector.broadcast %cst_111 : f32 to vector<8x96xf32>
    %385 = arith.addf %384, %383 : vector<8x96xf32>
    %386 = arith.divf %384, %385 : vector<8x96xf32>
    %387 = vector.extract_strided_slice %386 {offsets = [0, 0], sizes = [8, 32], strides = [1, 1]} : vector<8x96xf32> to vector<8x32xf32>
    %388 = vector.extract_strided_slice %386 {offsets = [0, 32], sizes = [8, 32], strides = [1, 1]} : vector<8x96xf32> to vector<8x32xf32>
    %389 = vector.extract_strided_slice %386 {offsets = [0, 64], sizes = [8, 32], strides = [1, 1]} : vector<8x96xf32> to vector<8x32xf32>
    %390 = vector.extract_strided_slice %375 {offsets = [0, 96], sizes = [8, 32], strides = [1, 1]} : vector<8x128xf32> to vector<8x32xf32>
    %391 = math.tanh %390 : vector<8x32xf32>
    %392 = arith.mulf %388, %343 : vector<8x32xf32>
    %393 = arith.mulf %387, %391 : vector<8x32xf32>
    %394 = arith.addf %392, %393 : vector<8x32xf32>
    %395 = math.tanh %394 : vector<8x32xf32>
    %396 = arith.mulf %389, %395 : vector<8x32xf32>
    %397 = vector.extract_strided_slice %380 {offsets = [0, 0], sizes = [8, 96], strides = [1, 1]} : vector<8x128xf32> to vector<8x96xf32>
    %398 = arith.negf %397 : vector<8x96xf32>
    %399 = math.exp %398 : vector<8x96xf32>
    %cst_112 = arith.constant 1.000000e+00 : f32
    %400 = vector.broadcast %cst_112 : f32 to vector<8x96xf32>
    %401 = arith.addf %400, %399 : vector<8x96xf32>
    %402 = arith.divf %400, %401 : vector<8x96xf32>
    %403 = vector.extract_strided_slice %402 {offsets = [0, 0], sizes = [8, 32], strides = [1, 1]} : vector<8x96xf32> to vector<8x32xf32>
    %404 = vector.extract_strided_slice %402 {offsets = [0, 32], sizes = [8, 32], strides = [1, 1]} : vector<8x96xf32> to vector<8x32xf32>
    %405 = vector.extract_strided_slice %402 {offsets = [0, 64], sizes = [8, 32], strides = [1, 1]} : vector<8x96xf32> to vector<8x32xf32>
    %406 = vector.extract_strided_slice %380 {offsets = [0, 96], sizes = [8, 32], strides = [1, 1]} : vector<8x128xf32> to vector<8x32xf32>
    %407 = math.tanh %406 : vector<8x32xf32>
    %408 = arith.mulf %404, %359 : vector<8x32xf32>
    %409 = arith.mulf %403, %407 : vector<8x32xf32>
    %410 = arith.addf %408, %409 : vector<8x32xf32>
    %411 = math.tanh %410 : vector<8x32xf32>
    %412 = arith.mulf %405, %411 : vector<8x32xf32>
    %413 = arith.index_cast %c7_i32_103 : i32 to index
    %c0_113 = arith.constant 0 : index
    %c0_114 = arith.constant 0 : index
    %414 = vector.load %arg12[%413, %c0_113, %c0_114] : memref<8x8x64xf32, #tpu.memory_space<vmem>>, vector<1x8x32xf32>
    %415 = vector.shape_cast %414 : vector<1x8x32xf32> to vector<8x32xf32>
    %416 = vector.shape_cast %396 : vector<8x32xf32> to vector<1x8x32xf32>
    tpu.vector_store %arg12[%413, %c0_113, %c0_114], %416 {strides = array<i32>} : memref<8x8x64xf32, #tpu.memory_space<vmem>>, vector<1x8x32xf32>,
    %417 = arith.index_cast %370 : i32 to index
    %c0_115 = arith.constant 0 : index
    %c32_116 = arith.constant 32 : index
    %418 = vector.load %arg12[%417, %c0_115, %c32_116] : memref<8x8x64xf32, #tpu.memory_space<vmem>>, vector<1x8x32xf32>
    %419 = vector.shape_cast %418 : vector<1x8x32xf32> to vector<8x32xf32>
    %420 = vector.shape_cast %412 : vector<8x32xf32> to vector<1x8x32xf32>
    tpu.vector_store %arg12[%417, %c0_115, %c32_116], %420 {strides = array<i32>} : memref<8x8x64xf32, #tpu.memory_space<vmem>>, vector<1x8x32xf32>,
    %c8_i32 = arith.constant 8 : i32
    %c0_117 = arith.constant 0 : index
    %c0_118 = arith.constant 0 : index
    %c0_119 = arith.constant 0 : index
    %421 = vector.load %arg12[%c0_117, %c0_118, %c0_119] : memref<8x8x64xf32, #tpu.memory_space<vmem>>, vector<8x8x64xf32>
    %422 = vector.shape_cast %421 : vector<8x8x64xf32> to vector<64x64xf32>
    %c0_120 = arith.constant 0 : index
    %c0_121 = arith.constant 0 : index
    %423 = vector.load %arg6[%c0_120, %c0_121] : memref<64x16xf32, #tpu.memory_space<vmem>>, vector<64x16xf32>
    %cst_122 = arith.constant dense<0.000000e+00> : vector<64x16xf32>
    %424 = tpu.matmul %422, %423, %cst_122 {dimension_numbers = #tpu.dot_dimension_numbers<[1], [0], [0], [1], [0, 0, 1, 1], [], []>} : vector<64x64xf32>, vector<64x16xf32>, vector<64x16xf32> -> vector<64x16xf32>
    %c0_123 = arith.constant 0 : index
    %c0_124 = arith.constant 0 : index
    %425 = vector.load %arg7[%c0_123, %c0_124] : memref<1x16xf32, #tpu.memory_space<vmem>>, vector<1x16xf32>
    %426 = vector.broadcast %425 : vector<1x16xf32> to vector<64x16xf32>
    %427 = arith.addf %424, %426 : vector<64x16xf32>
    %428 = vector.shape_cast %427 : vector<64x16xf32> to vector<1x64x16xf32>
    %cst_125 = arith.constant dense<0.000000e+00> : vector<1xf32>
    %429 = vector.multi_reduction <add>, %428, %cst_125 [1, 2] : vector<1x64x16xf32> to vector<1xf32>
    %430 = vector.shape_cast %429 : vector<1xf32> to vector<1x1x1xf32>
    %431 = vector.extract %430[0, 0, 0] : f32 from vector<1x1x1xf32>
    %cst_126 = arith.constant 1.024000e+03 : f32
    %432 = arith.divf %431, %cst_126 : f32
    %433 = vector.broadcast %432 : f32 to vector<64x16xf32>
    %434 = arith.subf %427, %433 : vector<64x16xf32>
    %435 = arith.mulf %434, %434 : vector<64x16xf32>
    %436 = vector.shape_cast %435 : vector<64x16xf32> to vector<1x64x16xf32>
    %cst_127 = arith.constant dense<0.000000e+00> : vector<1xf32>
    %437 = vector.multi_reduction <add>, %436, %cst_127 [1, 2] : vector<1x64x16xf32> to vector<1xf32>
    %438 = vector.shape_cast %437 : vector<1xf32> to vector<1x1x1xf32>
    %439 = vector.extract %438[0, 0, 0] : f32 from vector<1x1x1xf32>
    %cst_128 = arith.constant 1.024000e+03 : f32
    %440 = arith.divf %439, %cst_128 : f32
    %441 = vector.broadcast %432 : f32 to vector<64x16xf32>
    %442 = arith.subf %427, %441 : vector<64x16xf32>
    %cst_129 = arith.constant 9.99999974E-6 : f32
    %443 = arith.addf %440, %cst_129 : f32
    %444 = math.rsqrt %443 : f32
    %445 = vector.broadcast %444 : f32 to vector<64x16xf32>
    %446 = arith.mulf %442, %445 : vector<64x16xf32>
    %c0_130 = arith.constant 0 : index
    %c0_131 = arith.constant 0 : index
    %447 = vector.load %arg8[%c0_130, %c0_131] : memref<1x16xf32, #tpu.memory_space<vmem>>, vector<1x16xf32>
    %448 = vector.broadcast %447 : vector<1x16xf32> to vector<64x16xf32>
    %449 = arith.mulf %446, %448 : vector<64x16xf32>
    %c0_132 = arith.constant 0 : index
    %c0_133 = arith.constant 0 : index
    %450 = vector.load %arg9[%c0_132, %c0_133] : memref<1x16xf32, #tpu.memory_space<vmem>>, vector<1x16xf32>
    %451 = vector.broadcast %450 : vector<1x16xf32> to vector<64x16xf32>
    %452 = arith.addf %449, %451 : vector<64x16xf32>
    %453 = arith.addf %452, %2 : vector<64x16xf32>
    %454 = vector.shape_cast %453 : vector<64x16xf32> to vector<8x8x16xf32>
    %c0_134 = arith.constant 0 : index
    %c0_135 = arith.constant 0 : index
    %c0_136 = arith.constant 0 : index
    %c0_137 = arith.constant 0 : index
    %455 = vector.load %arg10[%c0_134, %c0_135, %c0_136, %c0_137] : memref<1x8x8x16xf32, #tpu.memory_space<vmem>>, vector<1x8x8x16xf32>
    %456 = vector.shape_cast %455 : vector<1x8x8x16xf32> to vector<8x8x16xf32>
    %457 = vector.shape_cast %454 : vector<8x8x16xf32> to vector<1x8x8x16xf32>
    tpu.vector_store %arg10[%c0_134, %c0_135, %c0_136, %c0_137], %457 {strides = array<i32>} : memref<1x8x8x16xf32, #tpu.memory_space<vmem>>, vector<1x8x8x16xf32>,
    return
  }
  func.func @transform_0(%arg0: i32) -> (i32, i32, i32, i32) {
    %c0_i32 = arith.constant 0 : i32
    %c0_i32_0 = arith.constant 0 : i32
    %c0_i32_1 = arith.constant 0 : i32
    %c0_i32_2 = arith.constant 0 : i32
    return %arg0, %c0_i32, %c0_i32_0, %c0_i32_1 : i32, i32, i32, i32
  }
  func.func @transform_1(%arg0: i32) -> (i32, i32) {
    %c0_i32 = arith.constant 0 : i32
    %c0_i32_0 = arith.constant 0 : i32
    %c0_i32_1 = arith.constant 0 : i32
    return %c0_i32, %c0_i32_0 : i32, i32
  }
  func.func @transform_2(%arg0: i32) -> (i32, i32) {
    %c0_i32 = arith.constant 0 : i32
    %c0_i32_0 = arith.constant 0 : i32
    %c0_i32_1 = arith.constant 0 : i32
    return %c0_i32, %c0_i32_0 : i32, i32
  }
  func.func @transform_3(%arg0: i32) -> (i32, i32) {
    %c0_i32 = arith.constant 0 : i32
    %c0_i32_0 = arith.constant 0 : i32
    %c0_i32_1 = arith.constant 0 : i32
    return %c0_i32, %c0_i32_0 : i32, i32
  }
  func.func @transform_4(%arg0: i32) -> (i32, i32) {
    %c0_i32 = arith.constant 0 : i32
    %c0_i32_0 = arith.constant 0 : i32
    %c0_i32_1 = arith.constant 0 : i32
    return %c0_i32, %c0_i32_0 : i32, i32
  }
  func.func @transform_5(%arg0: i32) -> (i32, i32) {
    %c0_i32 = arith.constant 0 : i32
    %c0_i32_0 = arith.constant 0 : i32
    %c0_i32_1 = arith.constant 0 : i32
    return %c0_i32, %c0_i32_0 : i32, i32
  }
  func.func @transform_6(%arg0: i32) -> (i32, i32) {
    %c0_i32 = arith.constant 0 : i32
    %c0_i32_0 = arith.constant 0 : i32
    %c0_i32_1 = arith.constant 0 : i32
    return %c0_i32, %c0_i32_0 : i32, i32
  }
  func.func @transform_7(%arg0: i32) -> (i32, i32) {
    %c0_i32 = arith.constant 0 : i32
    %c0_i32_0 = arith.constant 0 : i32
    %c0_i32_1 = arith.constant 0 : i32
    return %c0_i32, %c0_i32_0 : i32, i32
  }
  func.func @transform_8(%arg0: i32) -> (i32, i32) {
    %c0_i32 = arith.constant 0 : i32
    %c0_i32_0 = arith.constant 0 : i32
    %c0_i32_1 = arith.constant 0 : i32
    return %c0_i32, %c0_i32_0 : i32, i32
  }
  func.func @transform_9(%arg0: i32) -> (i32, i32, i32, i32) {
    %c0_i32 = arith.constant 0 : i32
    %c0_i32_0 = arith.constant 0 : i32
    %c0_i32_1 = arith.constant 0 : i32
    %c0_i32_2 = arith.constant 0 : i32
    return %arg0, %c0_i32, %c0_i32_0, %c0_i32_1 : i32, i32, i32, i32
  }
}

module attributes {stable_mosaic.version = 11 : i64} {
  func.func @kernel(%arg0: i32, %arg1: memref<1x8x8x16xf32, #tpu.memory_space<vmem>>, %arg2: memref<16x256xf32, #tpu.memory_space<vmem>>, %arg3: memref<1x256xf32, #tpu.memory_space<vmem>>, %arg4: memref<32x128xf32, #tpu.memory_space<vmem>>, %arg5: memref<32x128xf32, #tpu.memory_space<vmem>>, %arg6: memref<64x16xf32, #tpu.memory_space<vmem>>, %arg7: memref<1x16xf32, #tpu.memory_space<vmem>>, %arg8: memref<1x16xf32, #tpu.memory_space<vmem>>, %arg9: memref<1x16xf32, #tpu.memory_space<vmem>>, %arg10: memref<1x8x8x16xf32, #tpu.memory_space<vmem>>, %arg11: memref<8x8x256xf32, #tpu.memory_space<vmem>>, %arg12: memref<8x8x64xf32, #tpu.memory_space<vmem>>) attributes {dimension_semantics = [#tpu.dimension_semantics<parallel>], iteration_bounds = array<i64: 2>, scalar_prefetch = 0 : i64, scratch_operands = 2 : i64, tpu.core_type = #tpu.core_type<tc>, window_params = [{transform_indices = @transform_0, window_bounds = array<i64: 1, 8, 8, 16>}, {pipeline_mode = #tpu.pipeline_mode<synchronous>, transform_indices = @transform_1, window_bounds = array<i64: 16, 256>}, {pipeline_mode = #tpu.pipeline_mode<synchronous>, transform_indices = @transform_2, window_bounds = array<i64: 1, 256>}, {pipeline_mode = #tpu.pipeline_mode<synchronous>, transform_indices = @transform_3, window_bounds = array<i64: 32, 128>}, {pipeline_mode = #tpu.pipeline_mode<synchronous>, transform_indices = @transform_4, window_bounds = array<i64: 32, 128>}, {pipeline_mode = #tpu.pipeline_mode<synchronous>, transform_indices = @transform_5, window_bounds = array<i64: 64, 16>}, {pipeline_mode = #tpu.pipeline_mode<synchronous>, transform_indices = @transform_6, window_bounds = array<i64: 1, 16>}, {pipeline_mode = #tpu.pipeline_mode<synchronous>, transform_indices = @transform_7, window_bounds = array<i64: 1, 16>}, {pipeline_mode = #tpu.pipeline_mode<synchronous>, transform_indices = @transform_8, window_bounds = array<i64: 1, 16>}, {transform_indices = @transform_9, window_bounds = array<i64: 1, 8, 8, 16>}]} {
    %c0 = arith.constant 0 : index
    %c0_0 = arith.constant 0 : index
    %c0_1 = arith.constant 0 : index
    %c0_2 = arith.constant 0 : index
    %0 = vector.load %arg1[%c0, %c0_0, %c0_1, %c0_2] : memref<1x8x8x16xf32, #tpu.memory_space<vmem>>, vector<1x8x8x16xf32>
    %1 = vector.shape_cast %0 : vector<1x8x8x16xf32> to vector<8x8x16xf32>
    %2 = vector.shape_cast %1 : vector<8x8x16xf32> to vector<64x16xf32>
    %c0_3 = arith.constant 0 : index
    %c0_4 = arith.constant 0 : index
    %3 = vector.load %arg2[%c0_3, %c0_4] : memref<16x256xf32, #tpu.memory_space<vmem>>, vector<16x256xf32>
    %cst = arith.constant dense<0.000000e+00> : vector<64x256xf32>
    %4 = tpu.matmul %2, %3, %cst {dimension_numbers = #tpu.dot_dimension_numbers<[1], [0], [0], [1], [0, 0, 1, 1], [], []>} : vector<64x16xf32>, vector<16x256xf32>, vector<64x256xf32> -> vector<64x256xf32>
    %c0_5 = arith.constant 0 : index
    %c0_6 = arith.constant 0 : index
    %5 = vector.load %arg3[%c0_5, %c0_6] : memref<1x256xf32, #tpu.memory_space<vmem>>, vector<1x256xf32>
    %6 = vector.broadcast %5 : vector<1x256xf32> to vector<64x256xf32>
    %7 = arith.addf %4, %6 : vector<64x256xf32>
    %8 = vector.shape_cast %7 : vector<64x256xf32> to vector<8x8x256xf32>
    %c0_7 = arith.constant 0 : index
    %c0_8 = arith.constant 0 : index
    %c0_9 = arith.constant 0 : index
    %9 = vector.load %arg11[%c0_7, %c0_8, %c0_9] : memref<8x8x256xf32, #tpu.memory_space<vmem>>, vector<8x8x256xf32>
    tpu.vector_store %arg11[%c0_7, %c0_8, %c0_9], %8 {strides = array<i32>} : memref<8x8x256xf32, #tpu.memory_space<vmem>>, vector<8x8x256xf32>,
    %c0_10 = arith.constant 0 : index
    %c0_11 = arith.constant 0 : index
    %10 = vector.load %arg4[%c0_10, %c0_11] : memref<32x128xf32, #tpu.memory_space<vmem>>, vector<32x128xf32>
    %c0_12 = arith.constant 0 : index
    %c0_13 = arith.constant 0 : index
    %11 = vector.load %arg5[%c0_12, %c0_13] : memref<32x128xf32, #tpu.memory_space<vmem>>, vector<32x128xf32>
    %cst_14 = arith.constant 0.000000e+00 : f32
    %12 = vector.broadcast %cst_14 : f32 to vector<8x32xf32>
    %c0_i32 = arith.constant 0 : i32
    %c7_i32 = arith.constant 7 : i32
    %13 = arith.subi %c7_i32, %c0_i32 : i32
    %14 = arith.index_cast %c0_i32 : i32 to index
    %c0_15 = arith.constant 0 : index
    %c0_16 = arith.constant 0 : index
    %15 = vector.load %arg11[%14, %c0_15, %c0_16] : memref<8x8x256xf32, #tpu.memory_space<vmem>>, vector<1x8x128xf32>
    %16 = vector.shape_cast %15 : vector<1x8x128xf32> to vector<8x128xf32>
    %cst_17 = arith.constant dense<0.000000e+00> : vector<8x128xf32>
    %17 = tpu.matmul %12, %10, %cst_17 {dimension_numbers = #tpu.dot_dimension_numbers<[1], [0], [0], [1], [0, 0, 1, 1], [], []>} : vector<8x32xf32>, vector<32x128xf32>, vector<8x128xf32> -> vector<8x128xf32>
    %18 = arith.addf %16, %17 : vector<8x128xf32>
    %19 = arith.index_cast %13 : i32 to index
    %c0_18 = arith.constant 0 : index
    %c128 = arith.constant 128 : index
    %20 = vector.load %arg11[%19, %c0_18, %c128] : memref<8x8x256xf32, #tpu.memory_space<vmem>>, vector<1x8x128xf32>
    %21 = vector.shape_cast %20 : vector<1x8x128xf32> to vector<8x128xf32>
    %cst_19 = arith.constant dense<0.000000e+00> : vector<8x128xf32>
    %22 = tpu.matmul %12, %11, %cst_19 {dimension_numbers = #tpu.dot_dimension_numbers<[1], [0], [0], [1], [0, 0, 1, 1], [], []>} : vector<8x32xf32>, vector<32x128xf32>, vector<8x128xf32> -> vector<8x128xf32>
    %23 = arith.addf %21, %22 : vector<8x128xf32>
    %24 = vector.extract_strided_slice %18 {offsets = [0, 0], sizes = [8, 96], strides = [1, 1]} : vector<8x128xf32> to vector<8x96xf32>
    %25 = arith.negf %24 : vector<8x96xf32>
    %26 = math.exp %25 : vector<8x96xf32>
    %cst_20 = arith.constant 1.000000e+00 : f32
    %27 = vector.broadcast %cst_20 : f32 to vector<8x96xf32>
    %28 = arith.addf %27, %26 : vector<8x96xf32>
    %29 = arith.divf %27, %28 : vector<8x96xf32>
    %30 = vector.extract_strided_slice %29 {offsets = [0, 0], sizes = [8, 32], strides = [1, 1]} : vector<8x96xf32> to vector<8x32xf32>
    %31 = vector.extract_strided_slice %29 {offsets = [0, 32], sizes = [8, 32], strides = [1, 1]} : vector<8x96xf32> to vector<8x32xf32>
    %32 = vector.extract_strided_slice %29 {offsets = [0, 64], sizes = [8, 32], strides = [1, 1]} : vector<8x96xf32> to vector<8x32xf32>
    %33 = vector.extract_strided_slice %18 {offsets = [0, 96], sizes = [8, 32], strides = [1, 1]} : vector<8x128xf32> to vector<8x32xf32>
    %34 = math.tanh %33 : vector<8x32xf32>
    %35 = arith.mulf %31, %12 : vector<8x32xf32>
    %36 = arith.mulf %30, %34 : vector<8x32xf32>
    %37 = arith.addf %35, %36 : vector<8x32xf32>
    %38 = math.tanh %37 : vector<8x32xf32>
    %39 = arith.mulf %32, %38 : vector<8x32xf32>
    %40 = vector.extract_strided_slice %23 {offsets = [0, 0], sizes = [8, 96], strides = [1, 1]} : vector<8x128xf32> to vector<8x96xf32>
    %41 = arith.negf %40 : vector<8x96xf32>
    %42 = math.exp %41 : vector<8x96xf32>
    %cst_21 = arith.constant 1.000000e+00 : f32
    %43 = vector.broadcast %cst_21 : f32 to vector<8x96xf32>
    %44 = arith.addf %43, %42 : vector<8x96xf32>
    %45 = arith.divf %43, %44 : vector<8x96xf32>
    %46 = vector.extract_strided_slice %45 {offsets = [0, 0], sizes = [8, 32], strides = [1, 1]} : vector<8x96xf32> to vector<8x32xf32>
    %47 = vector.extract_strided_slice %45 {offsets = [0, 32], sizes = [8, 32], strides = [1, 1]} : vector<8x96xf32> to vector<8x32xf32>
    %48 = vector.extract_strided_slice %45 {offsets = [0, 64], sizes = [8, 32], strides = [1, 1]} : vector<8x96xf32> to vector<8x32xf32>
    %49 = vector.extract_strided_slice %23 {offsets = [0, 96], sizes = [8, 32], strides = [1, 1]} : vector<8x128xf32> to vector<8x32xf32>
    %50 = math.tanh %49 : vector<8x32xf32>
    %51 = arith.mulf %47, %12 : vector<8x32xf32>
    %52 = arith.mulf %46, %50 : vector<8x32xf32>
    %53 = arith.addf %51, %52 : vector<8x32xf32>
    %54 = math.tanh %53 : vector<8x32xf32>
    %55 = arith.mulf %48, %54 : vector<8x32xf32>
    %56 = arith.index_cast %c0_i32 : i32 to index
    %c0_22 = arith.constant 0 : index
    %c0_23 = arith.constant 0 : index
    %57 = vector.load %arg12[%56, %c0_22, %c0_23] : memref<8x8x64xf32, #tpu.memory_space<vmem>>, vector<1x8x32xf32>
    %58 = vector.shape_cast %57 : vector<1x8x32xf32> to vector<8x32xf32>
    %59 = vector.shape_cast %39 : vector<8x32xf32> to vector<1x8x32xf32>
    tpu.vector_store %arg12[%56, %c0_22, %c0_23], %59 {strides = array<i32>} : memref<8x8x64xf32, #tpu.memory_space<vmem>>, vector<1x8x32xf32>,
    %60 = arith.index_cast %13 : i32 to index
    %c0_24 = arith.constant 0 : index
    %c32 = arith.constant 32 : index
    %61 = vector.load %arg12[%60, %c0_24, %c32] : memref<8x8x64xf32, #tpu.memory_space<vmem>>, vector<1x8x32xf32>
    %62 = vector.shape_cast %61 : vector<1x8x32xf32> to vector<8x32xf32>
    %63 = vector.shape_cast %55 : vector<8x32xf32> to vector<1x8x32xf32>
    tpu.vector_store %arg12[%60, %c0_24, %c32], %63 {strides = array<i32>} : memref<8x8x64xf32, #tpu.memory_space<vmem>>, vector<1x8x32xf32>,
    %c1_i32 = arith.constant 1 : i32
    %c7_i32_25 = arith.constant 7 : i32
    %64 = arith.subi %c7_i32_25, %c1_i32 : i32
    %65 = arith.index_cast %c1_i32 : i32 to index
    %c0_26 = arith.constant 0 : index
    %c0_27 = arith.constant 0 : index
    %66 = vector.load %arg11[%65, %c0_26, %c0_27] : memref<8x8x256xf32, #tpu.memory_space<vmem>>, vector<1x8x128xf32>
    %67 = vector.shape_cast %66 : vector<1x8x128xf32> to vector<8x128xf32>
    %cst_28 = arith.constant dense<0.000000e+00> : vector<8x128xf32>
    %68 = tpu.matmul %39, %10, %cst_28 {dimension_numbers = #tpu.dot_dimension_numbers<[1], [0], [0], [1], [0, 0, 1, 1], [], []>} : vector<8x32xf32>, vector<32x128xf32>, vector<8x128xf32> -> vector<8x128xf32>
    %69 = arith.addf %67, %68 : vector<8x128xf32>
    %70 = arith.index_cast %64 : i32 to index
    %c0_29 = arith.constant 0 : index
    %c128_30 = arith.constant 128 : index
    %71 = vector.load %arg11[%70, %c0_29, %c128_30] : memref<8x8x256xf32, #tpu.memory_space<vmem>>, vector<1x8x128xf32>
    %72 = vector.shape_cast %71 : vector<1x8x128xf32> to vector<8x128xf32>
    %cst_31 = arith.constant dense<0.000000e+00> : vector<8x128xf32>
    %73 = tpu.matmul %55, %11, %cst_31 {dimension_numbers = #tpu.dot_dimension_numbers<[1], [0], [0], [1], [0, 0, 1, 1], [], []>} : vector<8x32xf32>, vector<32x128xf32>, vector<8x128xf32> -> vector<8x128xf32>
    %74 = arith.addf %72, %73 : vector<8x128xf32>
    %75 = vector.extract_strided_slice %69 {offsets = [0, 0], sizes = [8, 96], strides = [1, 1]} : vector<8x128xf32> to vector<8x96xf32>
    %76 = arith.negf %75 : vector<8x96xf32>
    %77 = math.exp %76 : vector<8x96xf32>
    %cst_32 = arith.constant 1.000000e+00 : f32
    %78 = vector.broadcast %cst_32 : f32 to vector<8x96xf32>
    %79 = arith.addf %78, %77 : vector<8x96xf32>
    %80 = arith.divf %78, %79 : vector<8x96xf32>
    %81 = vector.extract_strided_slice %80 {offsets = [0, 0], sizes = [8, 32], strides = [1, 1]} : vector<8x96xf32> to vector<8x32xf32>
    %82 = vector.extract_strided_slice %80 {offsets = [0, 32], sizes = [8, 32], strides = [1, 1]} : vector<8x96xf32> to vector<8x32xf32>
    %83 = vector.extract_strided_slice %80 {offsets = [0, 64], sizes = [8, 32], strides = [1, 1]} : vector<8x96xf32> to vector<8x32xf32>
    %84 = vector.extract_strided_slice %69 {offsets = [0, 96], sizes = [8, 32], strides = [1, 1]} : vector<8x128xf32> to vector<8x32xf32>
    %85 = math.tanh %84 : vector<8x32xf32>
    %86 = arith.mulf %82, %37 : vector<8x32xf32>
    %87 = arith.mulf %81, %85 : vector<8x32xf32>
    %88 = arith.addf %86, %87 : vector<8x32xf32>
    %89 = math.tanh %88 : vector<8x32xf32>
    %90 = arith.mulf %83, %89 : vector<8x32xf32>
    %91 = vector.extract_strided_slice %74 {offsets = [0, 0], sizes = [8, 96], strides = [1, 1]} : vector<8x128xf32> to vector<8x96xf32>
    %92 = arith.negf %91 : vector<8x96xf32>
    %93 = math.exp %92 : vector<8x96xf32>
    %cst_33 = arith.constant 1.000000e+00 : f32
    %94 = vector.broadcast %cst_33 : f32 to vector<8x96xf32>
    %95 = arith.addf %94, %93 : vector<8x96xf32>
    %96 = arith.divf %94, %95 : vector<8x96xf32>
    %97 = vector.extract_strided_slice %96 {offsets = [0, 0], sizes = [8, 32], strides = [1, 1]} : vector<8x96xf32> to vector<8x32xf32>
    %98 = vector.extract_strided_slice %96 {offsets = [0, 32], sizes = [8, 32], strides = [1, 1]} : vector<8x96xf32> to vector<8x32xf32>
    %99 = vector.extract_strided_slice %96 {offsets = [0, 64], sizes = [8, 32], strides = [1, 1]} : vector<8x96xf32> to vector<8x32xf32>
    %100 = vector.extract_strided_slice %74 {offsets = [0, 96], sizes = [8, 32], strides = [1, 1]} : vector<8x128xf32> to vector<8x32xf32>
    %101 = math.tanh %100 : vector<8x32xf32>
    %102 = arith.mulf %98, %53 : vector<8x32xf32>
    %103 = arith.mulf %97, %101 : vector<8x32xf32>
    %104 = arith.addf %102, %103 : vector<8x32xf32>
    %105 = math.tanh %104 : vector<8x32xf32>
    %106 = arith.mulf %99, %105 : vector<8x32xf32>
    %107 = arith.index_cast %c1_i32 : i32 to index
    %c0_34 = arith.constant 0 : index
    %c0_35 = arith.constant 0 : index
    %108 = vector.load %arg12[%107, %c0_34, %c0_35] : memref<8x8x64xf32, #tpu.memory_space<vmem>>, vector<1x8x32xf32>
    %109 = vector.shape_cast %108 : vector<1x8x32xf32> to vector<8x32xf32>
    %110 = vector.shape_cast %90 : vector<8x32xf32> to vector<1x8x32xf32>
    tpu.vector_store %arg12[%107, %c0_34, %c0_35], %110 {strides = array<i32>} : memref<8x8x64xf32, #tpu.memory_space<vmem>>, vector<1x8x32xf32>,
    %111 = arith.index_cast %64 : i32 to index
    %c0_36 = arith.constant 0 : index
    %c32_37 = arith.constant 32 : index
    %112 = vector.load %arg12[%111, %c0_36, %c32_37] : memref<8x8x64xf32, #tpu.memory_space<vmem>>, vector<1x8x32xf32>
    %113 = vector.shape_cast %112 : vector<1x8x32xf32> to vector<8x32xf32>
    %114 = vector.shape_cast %106 : vector<8x32xf32> to vector<1x8x32xf32>
    tpu.vector_store %arg12[%111, %c0_36, %c32_37], %114 {strides = array<i32>} : memref<8x8x64xf32, #tpu.memory_space<vmem>>, vector<1x8x32xf32>,
    %c2_i32 = arith.constant 2 : i32
    %c7_i32_38 = arith.constant 7 : i32
    %115 = arith.subi %c7_i32_38, %c2_i32 : i32
    %116 = arith.index_cast %c2_i32 : i32 to index
    %c0_39 = arith.constant 0 : index
    %c0_40 = arith.constant 0 : index
    %117 = vector.load %arg11[%116, %c0_39, %c0_40] : memref<8x8x256xf32, #tpu.memory_space<vmem>>, vector<1x8x128xf32>
    %118 = vector.shape_cast %117 : vector<1x8x128xf32> to vector<8x128xf32>
    %cst_41 = arith.constant dense<0.000000e+00> : vector<8x128xf32>
    %119 = tpu.matmul %90, %10, %cst_41 {dimension_numbers = #tpu.dot_dimension_numbers<[1], [0], [0], [1], [0, 0, 1, 1], [], []>} : vector<8x32xf32>, vector<32x128xf32>, vector<8x128xf32> -> vector<8x128xf32>
    %120 = arith.addf %118, %119 : vector<8x128xf32>
    %121 = arith.index_cast %115 : i32 to index
    %c0_42 = arith.constant 0 : index
    %c128_43 = arith.constant 128 : index
    %122 = vector.load %arg11[%121, %c0_42, %c128_43] : memref<8x8x256xf32, #tpu.memory_space<vmem>>, vector<1x8x128xf32>
    %123 = vector.shape_cast %122 : vector<1x8x128xf32> to vector<8x128xf32>
    %cst_44 = arith.constant dense<0.000000e+00> : vector<8x128xf32>
    %124 = tpu.matmul %106, %11, %cst_44 {dimension_numbers = #tpu.dot_dimension_numbers<[1], [0], [0], [1], [0, 0, 1, 1], [], []>} : vector<8x32xf32>, vector<32x128xf32>, vector<8x128xf32> -> vector<8x128xf32>
    %125 = arith.addf %123, %124 : vector<8x128xf32>
    %126 = vector.extract_strided_slice %120 {offsets = [0, 0], sizes = [8, 96], strides = [1, 1]} : vector<8x128xf32> to vector<8x96xf32>
    %127 = arith.negf %126 : vector<8x96xf32>
    %128 = math.exp %127 : vector<8x96xf32>
    %cst_45 = arith.constant 1.000000e+00 : f32
    %129 = vector.broadcast %cst_45 : f32 to vector<8x96xf32>
    %130 = arith.addf %129, %128 : vector<8x96xf32>
    %131 = arith.divf %129, %130 : vector<8x96xf32>
    %132 = vector.extract_strided_slice %131 {offsets = [0, 0], sizes = [8, 32], strides = [1, 1]} : vector<8x96xf32> to vector<8x32xf32>
    %133 = vector.extract_strided_slice %131 {offsets = [0, 32], sizes = [8, 32], strides = [1, 1]} : vector<8x96xf32> to vector<8x32xf32>
    %134 = vector.extract_strided_slice %131 {offsets = [0, 64], sizes = [8, 32], strides = [1, 1]} : vector<8x96xf32> to vector<8x32xf32>
    %135 = vector.extract_strided_slice %120 {offsets = [0, 96], sizes = [8, 32], strides = [1, 1]} : vector<8x128xf32> to vector<8x32xf32>
    %136 = math.tanh %135 : vector<8x32xf32>
    %137 = arith.mulf %133, %88 : vector<8x32xf32>
    %138 = arith.mulf %132, %136 : vector<8x32xf32>
    %139 = arith.addf %137, %138 : vector<8x32xf32>
    %140 = math.tanh %139 : vector<8x32xf32>
    %141 = arith.mulf %134, %140 : vector<8x32xf32>
    %142 = vector.extract_strided_slice %125 {offsets = [0, 0], sizes = [8, 96], strides = [1, 1]} : vector<8x128xf32> to vector<8x96xf32>
    %143 = arith.negf %142 : vector<8x96xf32>
    %144 = math.exp %143 : vector<8x96xf32>
    %cst_46 = arith.constant 1.000000e+00 : f32
    %145 = vector.broadcast %cst_46 : f32 to vector<8x96xf32>
    %146 = arith.addf %145, %144 : vector<8x96xf32>
    %147 = arith.divf %145, %146 : vector<8x96xf32>
    %148 = vector.extract_strided_slice %147 {offsets = [0, 0], sizes = [8, 32], strides = [1, 1]} : vector<8x96xf32> to vector<8x32xf32>
    %149 = vector.extract_strided_slice %147 {offsets = [0, 32], sizes = [8, 32], strides = [1, 1]} : vector<8x96xf32> to vector<8x32xf32>
    %150 = vector.extract_strided_slice %147 {offsets = [0, 64], sizes = [8, 32], strides = [1, 1]} : vector<8x96xf32> to vector<8x32xf32>
    %151 = vector.extract_strided_slice %125 {offsets = [0, 96], sizes = [8, 32], strides = [1, 1]} : vector<8x128xf32> to vector<8x32xf32>
    %152 = math.tanh %151 : vector<8x32xf32>
    %153 = arith.mulf %149, %104 : vector<8x32xf32>
    %154 = arith.mulf %148, %152 : vector<8x32xf32>
    %155 = arith.addf %153, %154 : vector<8x32xf32>
    %156 = math.tanh %155 : vector<8x32xf32>
    %157 = arith.mulf %150, %156 : vector<8x32xf32>
    %158 = arith.index_cast %c2_i32 : i32 to index
    %c0_47 = arith.constant 0 : index
    %c0_48 = arith.constant 0 : index
    %159 = vector.load %arg12[%158, %c0_47, %c0_48] : memref<8x8x64xf32, #tpu.memory_space<vmem>>, vector<1x8x32xf32>
    %160 = vector.shape_cast %159 : vector<1x8x32xf32> to vector<8x32xf32>
    %161 = vector.shape_cast %141 : vector<8x32xf32> to vector<1x8x32xf32>
    tpu.vector_store %arg12[%158, %c0_47, %c0_48], %161 {strides = array<i32>} : memref<8x8x64xf32, #tpu.memory_space<vmem>>, vector<1x8x32xf32>,
    %162 = arith.index_cast %115 : i32 to index
    %c0_49 = arith.constant 0 : index
    %c32_50 = arith.constant 32 : index
    %163 = vector.load %arg12[%162, %c0_49, %c32_50] : memref<8x8x64xf32, #tpu.memory_space<vmem>>, vector<1x8x32xf32>
    %164 = vector.shape_cast %163 : vector<1x8x32xf32> to vector<8x32xf32>
    %165 = vector.shape_cast %157 : vector<8x32xf32> to vector<1x8x32xf32>
    tpu.vector_store %arg12[%162, %c0_49, %c32_50], %165 {strides = array<i32>} : memref<8x8x64xf32, #tpu.memory_space<vmem>>, vector<1x8x32xf32>,
    %c3_i32 = arith.constant 3 : i32
    %c7_i32_51 = arith.constant 7 : i32
    %166 = arith.subi %c7_i32_51, %c3_i32 : i32
    %167 = arith.index_cast %c3_i32 : i32 to index
    %c0_52 = arith.constant 0 : index
    %c0_53 = arith.constant 0 : index
    %168 = vector.load %arg11[%167, %c0_52, %c0_53] : memref<8x8x256xf32, #tpu.memory_space<vmem>>, vector<1x8x128xf32>
    %169 = vector.shape_cast %168 : vector<1x8x128xf32> to vector<8x128xf32>
    %cst_54 = arith.constant dense<0.000000e+00> : vector<8x128xf32>
    %170 = tpu.matmul %141, %10, %cst_54 {dimension_numbers = #tpu.dot_dimension_numbers<[1], [0], [0], [1], [0, 0, 1, 1], [], []>} : vector<8x32xf32>, vector<32x128xf32>, vector<8x128xf32> -> vector<8x128xf32>
    %171 = arith.addf %169, %170 : vector<8x128xf32>
    %172 = arith.index_cast %166 : i32 to index
    %c0_55 = arith.constant 0 : index
    %c128_56 = arith.constant 128 : index
    %173 = vector.load %arg11[%172, %c0_55, %c128_56] : memref<8x8x256xf32, #tpu.memory_space<vmem>>, vector<1x8x128xf32>
    %174 = vector.shape_cast %173 : vector<1x8x128xf32> to vector<8x128xf32>
    %cst_57 = arith.constant dense<0.000000e+00> : vector<8x128xf32>
    %175 = tpu.matmul %157, %11, %cst_57 {dimension_numbers = #tpu.dot_dimension_numbers<[1], [0], [0], [1], [0, 0, 1, 1], [], []>} : vector<8x32xf32>, vector<32x128xf32>, vector<8x128xf32> -> vector<8x128xf32>
    %176 = arith.addf %174, %175 : vector<8x128xf32>
    %177 = vector.extract_strided_slice %171 {offsets = [0, 0], sizes = [8, 96], strides = [1, 1]} : vector<8x128xf32> to vector<8x96xf32>
    %178 = arith.negf %177 : vector<8x96xf32>
    %179 = math.exp %178 : vector<8x96xf32>
    %cst_58 = arith.constant 1.000000e+00 : f32
    %180 = vector.broadcast %cst_58 : f32 to vector<8x96xf32>
    %181 = arith.addf %180, %179 : vector<8x96xf32>
    %182 = arith.divf %180, %181 : vector<8x96xf32>
    %183 = vector.extract_strided_slice %182 {offsets = [0, 0], sizes = [8, 32], strides = [1, 1]} : vector<8x96xf32> to vector<8x32xf32>
    %184 = vector.extract_strided_slice %182 {offsets = [0, 32], sizes = [8, 32], strides = [1, 1]} : vector<8x96xf32> to vector<8x32xf32>
    %185 = vector.extract_strided_slice %182 {offsets = [0, 64], sizes = [8, 32], strides = [1, 1]} : vector<8x96xf32> to vector<8x32xf32>
    %186 = vector.extract_strided_slice %171 {offsets = [0, 96], sizes = [8, 32], strides = [1, 1]} : vector<8x128xf32> to vector<8x32xf32>
    %187 = math.tanh %186 : vector<8x32xf32>
    %188 = arith.mulf %184, %139 : vector<8x32xf32>
    %189 = arith.mulf %183, %187 : vector<8x32xf32>
    %190 = arith.addf %188, %189 : vector<8x32xf32>
    %191 = math.tanh %190 : vector<8x32xf32>
    %192 = arith.mulf %185, %191 : vector<8x32xf32>
    %193 = vector.extract_strided_slice %176 {offsets = [0, 0], sizes = [8, 96], strides = [1, 1]} : vector<8x128xf32> to vector<8x96xf32>
    %194 = arith.negf %193 : vector<8x96xf32>
    %195 = math.exp %194 : vector<8x96xf32>
    %cst_59 = arith.constant 1.000000e+00 : f32
    %196 = vector.broadcast %cst_59 : f32 to vector<8x96xf32>
    %197 = arith.addf %196, %195 : vector<8x96xf32>
    %198 = arith.divf %196, %197 : vector<8x96xf32>
    %199 = vector.extract_strided_slice %198 {offsets = [0, 0], sizes = [8, 32], strides = [1, 1]} : vector<8x96xf32> to vector<8x32xf32>
    %200 = vector.extract_strided_slice %198 {offsets = [0, 32], sizes = [8, 32], strides = [1, 1]} : vector<8x96xf32> to vector<8x32xf32>
    %201 = vector.extract_strided_slice %198 {offsets = [0, 64], sizes = [8, 32], strides = [1, 1]} : vector<8x96xf32> to vector<8x32xf32>
    %202 = vector.extract_strided_slice %176 {offsets = [0, 96], sizes = [8, 32], strides = [1, 1]} : vector<8x128xf32> to vector<8x32xf32>
    %203 = math.tanh %202 : vector<8x32xf32>
    %204 = arith.mulf %200, %155 : vector<8x32xf32>
    %205 = arith.mulf %199, %203 : vector<8x32xf32>
    %206 = arith.addf %204, %205 : vector<8x32xf32>
    %207 = math.tanh %206 : vector<8x32xf32>
    %208 = arith.mulf %201, %207 : vector<8x32xf32>
    %209 = arith.index_cast %c3_i32 : i32 to index
    %c0_60 = arith.constant 0 : index
    %c0_61 = arith.constant 0 : index
    %210 = vector.load %arg12[%209, %c0_60, %c0_61] : memref<8x8x64xf32, #tpu.memory_space<vmem>>, vector<1x8x32xf32>
    %211 = vector.shape_cast %210 : vector<1x8x32xf32> to vector<8x32xf32>
    %212 = vector.shape_cast %192 : vector<8x32xf32> to vector<1x8x32xf32>
    tpu.vector_store %arg12[%209, %c0_60, %c0_61], %212 {strides = array<i32>} : memref<8x8x64xf32, #tpu.memory_space<vmem>>, vector<1x8x32xf32>,
    %213 = arith.index_cast %166 : i32 to index
    %c0_62 = arith.constant 0 : index
    %c32_63 = arith.constant 32 : index
    %214 = vector.load %arg12[%213, %c0_62, %c32_63] : memref<8x8x64xf32, #tpu.memory_space<vmem>>, vector<1x8x32xf32>
    %215 = vector.shape_cast %214 : vector<1x8x32xf32> to vector<8x32xf32>
    %216 = vector.shape_cast %208 : vector<8x32xf32> to vector<1x8x32xf32>
    tpu.vector_store %arg12[%213, %c0_62, %c32_63], %216 {strides = array<i32>} : memref<8x8x64xf32, #tpu.memory_space<vmem>>, vector<1x8x32xf32>,
    %c4_i32 = arith.constant 4 : i32
    %c7_i32_64 = arith.constant 7 : i32
    %217 = arith.subi %c7_i32_64, %c4_i32 : i32
    %218 = arith.index_cast %c4_i32 : i32 to index
    %c0_65 = arith.constant 0 : index
    %c0_66 = arith.constant 0 : index
    %219 = vector.load %arg11[%218, %c0_65, %c0_66] : memref<8x8x256xf32, #tpu.memory_space<vmem>>, vector<1x8x128xf32>
    %220 = vector.shape_cast %219 : vector<1x8x128xf32> to vector<8x128xf32>
    %cst_67 = arith.constant dense<0.000000e+00> : vector<8x128xf32>
    %221 = tpu.matmul %192, %10, %cst_67 {dimension_numbers = #tpu.dot_dimension_numbers<[1], [0], [0], [1], [0, 0, 1, 1], [], []>} : vector<8x32xf32>, vector<32x128xf32>, vector<8x128xf32> -> vector<8x128xf32>
    %222 = arith.addf %220, %221 : vector<8x128xf32>
    %223 = arith.index_cast %217 : i32 to index
    %c0_68 = arith.constant 0 : index
    %c128_69 = arith.constant 128 : index
    %224 = vector.load %arg11[%223, %c0_68, %c128_69] : memref<8x8x256xf32, #tpu.memory_space<vmem>>, vector<1x8x128xf32>
    %225 = vector.shape_cast %224 : vector<1x8x128xf32> to vector<8x128xf32>
    %cst_70 = arith.constant dense<0.000000e+00> : vector<8x128xf32>
    %226 = tpu.matmul %208, %11, %cst_70 {dimension_numbers = #tpu.dot_dimension_numbers<[1], [0], [0], [1], [0, 0, 1, 1], [], []>} : vector<8x32xf32>, vector<32x128xf32>, vector<8x128xf32> -> vector<8x128xf32>
    %227 = arith.addf %225, %226 : vector<8x128xf32>
    %228 = vector.extract_strided_slice %222 {offsets = [0, 0], sizes = [8, 96], strides = [1, 1]} : vector<8x128xf32> to vector<8x96xf32>
    %229 = arith.negf %228 : vector<8x96xf32>
    %230 = math.exp %229 : vector<8x96xf32>
    %cst_71 = arith.constant 1.000000e+00 : f32
    %231 = vector.broadcast %cst_71 : f32 to vector<8x96xf32>
    %232 = arith.addf %231, %230 : vector<8x96xf32>
    %233 = arith.divf %231, %232 : vector<8x96xf32>
    %234 = vector.extract_strided_slice %233 {offsets = [0, 0], sizes = [8, 32], strides = [1, 1]} : vector<8x96xf32> to vector<8x32xf32>
    %235 = vector.extract_strided_slice %233 {offsets = [0, 32], sizes = [8, 32], strides = [1, 1]} : vector<8x96xf32> to vector<8x32xf32>
    %236 = vector.extract_strided_slice %233 {offsets = [0, 64], sizes = [8, 32], strides = [1, 1]} : vector<8x96xf32> to vector<8x32xf32>
    %237 = vector.extract_strided_slice %222 {offsets = [0, 96], sizes = [8, 32], strides = [1, 1]} : vector<8x128xf32> to vector<8x32xf32>
    %238 = math.tanh %237 : vector<8x32xf32>
    %239 = arith.mulf %235, %190 : vector<8x32xf32>
    %240 = arith.mulf %234, %238 : vector<8x32xf32>
    %241 = arith.addf %239, %240 : vector<8x32xf32>
    %242 = math.tanh %241 : vector<8x32xf32>
    %243 = arith.mulf %236, %242 : vector<8x32xf32>
    %244 = vector.extract_strided_slice %227 {offsets = [0, 0], sizes = [8, 96], strides = [1, 1]} : vector<8x128xf32> to vector<8x96xf32>
    %245 = arith.negf %244 : vector<8x96xf32>
    %246 = math.exp %245 : vector<8x96xf32>
    %cst_72 = arith.constant 1.000000e+00 : f32
    %247 = vector.broadcast %cst_72 : f32 to vector<8x96xf32>
    %248 = arith.addf %247, %246 : vector<8x96xf32>
    %249 = arith.divf %247, %248 : vector<8x96xf32>
    %250 = vector.extract_strided_slice %249 {offsets = [0, 0], sizes = [8, 32], strides = [1, 1]} : vector<8x96xf32> to vector<8x32xf32>
    %251 = vector.extract_strided_slice %249 {offsets = [0, 32], sizes = [8, 32], strides = [1, 1]} : vector<8x96xf32> to vector<8x32xf32>
    %252 = vector.extract_strided_slice %249 {offsets = [0, 64], sizes = [8, 32], strides = [1, 1]} : vector<8x96xf32> to vector<8x32xf32>
    %253 = vector.extract_strided_slice %227 {offsets = [0, 96], sizes = [8, 32], strides = [1, 1]} : vector<8x128xf32> to vector<8x32xf32>
    %254 = math.tanh %253 : vector<8x32xf32>
    %255 = arith.mulf %251, %206 : vector<8x32xf32>
    %256 = arith.mulf %250, %254 : vector<8x32xf32>
    %257 = arith.addf %255, %256 : vector<8x32xf32>
    %258 = math.tanh %257 : vector<8x32xf32>
    %259 = arith.mulf %252, %258 : vector<8x32xf32>
    %260 = arith.index_cast %c4_i32 : i32 to index
    %c0_73 = arith.constant 0 : index
    %c0_74 = arith.constant 0 : index
    %261 = vector.load %arg12[%260, %c0_73, %c0_74] : memref<8x8x64xf32, #tpu.memory_space<vmem>>, vector<1x8x32xf32>
    %262 = vector.shape_cast %261 : vector<1x8x32xf32> to vector<8x32xf32>
    %263 = vector.shape_cast %243 : vector<8x32xf32> to vector<1x8x32xf32>
    tpu.vector_store %arg12[%260, %c0_73, %c0_74], %263 {strides = array<i32>} : memref<8x8x64xf32, #tpu.memory_space<vmem>>, vector<1x8x32xf32>,
    %264 = arith.index_cast %217 : i32 to index
    %c0_75 = arith.constant 0 : index
    %c32_76 = arith.constant 32 : index
    %265 = vector.load %arg12[%264, %c0_75, %c32_76] : memref<8x8x64xf32, #tpu.memory_space<vmem>>, vector<1x8x32xf32>
    %266 = vector.shape_cast %265 : vector<1x8x32xf32> to vector<8x32xf32>
    %267 = vector.shape_cast %259 : vector<8x32xf32> to vector<1x8x32xf32>
    tpu.vector_store %arg12[%264, %c0_75, %c32_76], %267 {strides = array<i32>} : memref<8x8x64xf32, #tpu.memory_space<vmem>>, vector<1x8x32xf32>,
    %c5_i32 = arith.constant 5 : i32
    %c7_i32_77 = arith.constant 7 : i32
    %268 = arith.subi %c7_i32_77, %c5_i32 : i32
    %269 = arith.index_cast %c5_i32 : i32 to index
    %c0_78 = arith.constant 0 : index
    %c0_79 = arith.constant 0 : index
    %270 = vector.load %arg11[%269, %c0_78, %c0_79] : memref<8x8x256xf32, #tpu.memory_space<vmem>>, vector<1x8x128xf32>
    %271 = vector.shape_cast %270 : vector<1x8x128xf32> to vector<8x128xf32>
    %cst_80 = arith.constant dense<0.000000e+00> : vector<8x128xf32>
    %272 = tpu.matmul %243, %10, %cst_80 {dimension_numbers = #tpu.dot_dimension_numbers<[1], [0], [0], [1], [0, 0, 1, 1], [], []>} : vector<8x32xf32>, vector<32x128xf32>, vector<8x128xf32> -> vector<8x128xf32>
    %273 = arith.addf %271, %272 : vector<8x128xf32>
    %274 = arith.index_cast %268 : i32 to index
    %c0_81 = arith.constant 0 : index
    %c128_82 = arith.constant 128 : index
    %275 = vector.load %arg11[%274, %c0_81, %c128_82] : memref<8x8x256xf32, #tpu.memory_space<vmem>>, vector<1x8x128xf32>
    %276 = vector.shape_cast %275 : vector<1x8x128xf32> to vector<8x128xf32>
    %cst_83 = arith.constant dense<0.000000e+00> : vector<8x128xf32>
    %277 = tpu.matmul %259, %11, %cst_83 {dimension_numbers = #tpu.dot_dimension_numbers<[1], [0], [0], [1], [0, 0, 1, 1], [], []>} : vector<8x32xf32>, vector<32x128xf32>, vector<8x128xf32> -> vector<8x128xf32>
    %278 = arith.addf %276, %277 : vector<8x128xf32>
    %279 = vector.extract_strided_slice %273 {offsets = [0, 0], sizes = [8, 96], strides = [1, 1]} : vector<8x128xf32> to vector<8x96xf32>
    %280 = arith.negf %279 : vector<8x96xf32>
    %281 = math.exp %280 : vector<8x96xf32>
    %cst_84 = arith.constant 1.000000e+00 : f32
    %282 = vector.broadcast %cst_84 : f32 to vector<8x96xf32>
    %283 = arith.addf %282, %281 : vector<8x96xf32>
    %284 = arith.divf %282, %283 : vector<8x96xf32>
    %285 = vector.extract_strided_slice %284 {offsets = [0, 0], sizes = [8, 32], strides = [1, 1]} : vector<8x96xf32> to vector<8x32xf32>
    %286 = vector.extract_strided_slice %284 {offsets = [0, 32], sizes = [8, 32], strides = [1, 1]} : vector<8x96xf32> to vector<8x32xf32>
    %287 = vector.extract_strided_slice %284 {offsets = [0, 64], sizes = [8, 32], strides = [1, 1]} : vector<8x96xf32> to vector<8x32xf32>
    %288 = vector.extract_strided_slice %273 {offsets = [0, 96], sizes = [8, 32], strides = [1, 1]} : vector<8x128xf32> to vector<8x32xf32>
    %289 = math.tanh %288 : vector<8x32xf32>
    %290 = arith.mulf %286, %241 : vector<8x32xf32>
    %291 = arith.mulf %285, %289 : vector<8x32xf32>
    %292 = arith.addf %290, %291 : vector<8x32xf32>
    %293 = math.tanh %292 : vector<8x32xf32>
    %294 = arith.mulf %287, %293 : vector<8x32xf32>
    %295 = vector.extract_strided_slice %278 {offsets = [0, 0], sizes = [8, 96], strides = [1, 1]} : vector<8x128xf32> to vector<8x96xf32>
    %296 = arith.negf %295 : vector<8x96xf32>
    %297 = math.exp %296 : vector<8x96xf32>
    %cst_85 = arith.constant 1.000000e+00 : f32
    %298 = vector.broadcast %cst_85 : f32 to vector<8x96xf32>
    %299 = arith.addf %298, %297 : vector<8x96xf32>
    %300 = arith.divf %298, %299 : vector<8x96xf32>
    %301 = vector.extract_strided_slice %300 {offsets = [0, 0], sizes = [8, 32], strides = [1, 1]} : vector<8x96xf32> to vector<8x32xf32>
    %302 = vector.extract_strided_slice %300 {offsets = [0, 32], sizes = [8, 32], strides = [1, 1]} : vector<8x96xf32> to vector<8x32xf32>
    %303 = vector.extract_strided_slice %300 {offsets = [0, 64], sizes = [8, 32], strides = [1, 1]} : vector<8x96xf32> to vector<8x32xf32>
    %304 = vector.extract_strided_slice %278 {offsets = [0, 96], sizes = [8, 32], strides = [1, 1]} : vector<8x128xf32> to vector<8x32xf32>
    %305 = math.tanh %304 : vector<8x32xf32>
    %306 = arith.mulf %302, %257 : vector<8x32xf32>
    %307 = arith.mulf %301, %305 : vector<8x32xf32>
    %308 = arith.addf %306, %307 : vector<8x32xf32>
    %309 = math.tanh %308 : vector<8x32xf32>
    %310 = arith.mulf %303, %309 : vector<8x32xf32>
    %311 = arith.index_cast %c5_i32 : i32 to index
    %c0_86 = arith.constant 0 : index
    %c0_87 = arith.constant 0 : index
    %312 = vector.load %arg12[%311, %c0_86, %c0_87] : memref<8x8x64xf32, #tpu.memory_space<vmem>>, vector<1x8x32xf32>
    %313 = vector.shape_cast %312 : vector<1x8x32xf32> to vector<8x32xf32>
    %314 = vector.shape_cast %294 : vector<8x32xf32> to vector<1x8x32xf32>
    tpu.vector_store %arg12[%311, %c0_86, %c0_87], %314 {strides = array<i32>} : memref<8x8x64xf32, #tpu.memory_space<vmem>>, vector<1x8x32xf32>,
    %315 = arith.index_cast %268 : i32 to index
    %c0_88 = arith.constant 0 : index
    %c32_89 = arith.constant 32 : index
    %316 = vector.load %arg12[%315, %c0_88, %c32_89] : memref<8x8x64xf32, #tpu.memory_space<vmem>>, vector<1x8x32xf32>
    %317 = vector.shape_cast %316 : vector<1x8x32xf32> to vector<8x32xf32>
    %318 = vector.shape_cast %310 : vector<8x32xf32> to vector<1x8x32xf32>
    tpu.vector_store %arg12[%315, %c0_88, %c32_89], %318 {strides = array<i32>} : memref<8x8x64xf32, #tpu.memory_space<vmem>>, vector<1x8x32xf32>,
    %c6_i32 = arith.constant 6 : i32
    %c7_i32_90 = arith.constant 7 : i32
    %319 = arith.subi %c7_i32_90, %c6_i32 : i32
    %320 = arith.index_cast %c6_i32 : i32 to index
    %c0_91 = arith.constant 0 : index
    %c0_92 = arith.constant 0 : index
    %321 = vector.load %arg11[%320, %c0_91, %c0_92] : memref<8x8x256xf32, #tpu.memory_space<vmem>>, vector<1x8x128xf32>
    %322 = vector.shape_cast %321 : vector<1x8x128xf32> to vector<8x128xf32>
    %cst_93 = arith.constant dense<0.000000e+00> : vector<8x128xf32>
    %323 = tpu.matmul %294, %10, %cst_93 {dimension_numbers = #tpu.dot_dimension_numbers<[1], [0], [0], [1], [0, 0, 1, 1], [], []>} : vector<8x32xf32>, vector<32x128xf32>, vector<8x128xf32> -> vector<8x128xf32>
    %324 = arith.addf %322, %323 : vector<8x128xf32>
    %325 = arith.index_cast %319 : i32 to index
    %c0_94 = arith.constant 0 : index
    %c128_95 = arith.constant 128 : index
    %326 = vector.load %arg11[%325, %c0_94, %c128_95] : memref<8x8x256xf32, #tpu.memory_space<vmem>>, vector<1x8x128xf32>
    %327 = vector.shape_cast %326 : vector<1x8x128xf32> to vector<8x128xf32>
    %cst_96 = arith.constant dense<0.000000e+00> : vector<8x128xf32>
    %328 = tpu.matmul %310, %11, %cst_96 {dimension_numbers = #tpu.dot_dimension_numbers<[1], [0], [0], [1], [0, 0, 1, 1], [], []>} : vector<8x32xf32>, vector<32x128xf32>, vector<8x128xf32> -> vector<8x128xf32>
    %329 = arith.addf %327, %328 : vector<8x128xf32>
    %330 = vector.extract_strided_slice %324 {offsets = [0, 0], sizes = [8, 96], strides = [1, 1]} : vector<8x128xf32> to vector<8x96xf32>
    %331 = arith.negf %330 : vector<8x96xf32>
    %332 = math.exp %331 : vector<8x96xf32>
    %cst_97 = arith.constant 1.000000e+00 : f32
    %333 = vector.broadcast %cst_97 : f32 to vector<8x96xf32>
    %334 = arith.addf %333, %332 : vector<8x96xf32>
    %335 = arith.divf %333, %334 : vector<8x96xf32>
    %336 = vector.extract_strided_slice %335 {offsets = [0, 0], sizes = [8, 32], strides = [1, 1]} : vector<8x96xf32> to vector<8x32xf32>
    %337 = vector.extract_strided_slice %335 {offsets = [0, 32], sizes = [8, 32], strides = [1, 1]} : vector<8x96xf32> to vector<8x32xf32>
    %338 = vector.extract_strided_slice %335 {offsets = [0, 64], sizes = [8, 32], strides = [1, 1]} : vector<8x96xf32> to vector<8x32xf32>
    %339 = vector.extract_strided_slice %324 {offsets = [0, 96], sizes = [8, 32], strides = [1, 1]} : vector<8x128xf32> to vector<8x32xf32>
    %340 = math.tanh %339 : vector<8x32xf32>
    %341 = arith.mulf %337, %292 : vector<8x32xf32>
    %342 = arith.mulf %336, %340 : vector<8x32xf32>
    %343 = arith.addf %341, %342 : vector<8x32xf32>
    %344 = math.tanh %343 : vector<8x32xf32>
    %345 = arith.mulf %338, %344 : vector<8x32xf32>
    %346 = vector.extract_strided_slice %329 {offsets = [0, 0], sizes = [8, 96], strides = [1, 1]} : vector<8x128xf32> to vector<8x96xf32>
    %347 = arith.negf %346 : vector<8x96xf32>
    %348 = math.exp %347 : vector<8x96xf32>
    %cst_98 = arith.constant 1.000000e+00 : f32
    %349 = vector.broadcast %cst_98 : f32 to vector<8x96xf32>
    %350 = arith.addf %349, %348 : vector<8x96xf32>
    %351 = arith.divf %349, %350 : vector<8x96xf32>
    %352 = vector.extract_strided_slice %351 {offsets = [0, 0], sizes = [8, 32], strides = [1, 1]} : vector<8x96xf32> to vector<8x32xf32>
    %353 = vector.extract_strided_slice %351 {offsets = [0, 32], sizes = [8, 32], strides = [1, 1]} : vector<8x96xf32> to vector<8x32xf32>
    %354 = vector.extract_strided_slice %351 {offsets = [0, 64], sizes = [8, 32], strides = [1, 1]} : vector<8x96xf32> to vector<8x32xf32>
    %355 = vector.extract_strided_slice %329 {offsets = [0, 96], sizes = [8, 32], strides = [1, 1]} : vector<8x128xf32> to vector<8x32xf32>
    %356 = math.tanh %355 : vector<8x32xf32>
    %357 = arith.mulf %353, %308 : vector<8x32xf32>
    %358 = arith.mulf %352, %356 : vector<8x32xf32>
    %359 = arith.addf %357, %358 : vector<8x32xf32>
    %360 = math.tanh %359 : vector<8x32xf32>
    %361 = arith.mulf %354, %360 : vector<8x32xf32>
    %362 = arith.index_cast %c6_i32 : i32 to index
    %c0_99 = arith.constant 0 : index
    %c0_100 = arith.constant 0 : index
    %363 = vector.load %arg12[%362, %c0_99, %c0_100] : memref<8x8x64xf32, #tpu.memory_space<vmem>>, vector<1x8x32xf32>
    %364 = vector.shape_cast %363 : vector<1x8x32xf32> to vector<8x32xf32>
    %365 = vector.shape_cast %345 : vector<8x32xf32> to vector<1x8x32xf32>
    tpu.vector_store %arg12[%362, %c0_99, %c0_100], %365 {strides = array<i32>} : memref<8x8x64xf32, #tpu.memory_space<vmem>>, vector<1x8x32xf32>,
    %366 = arith.index_cast %319 : i32 to index
    %c0_101 = arith.constant 0 : index
    %c32_102 = arith.constant 32 : index
    %367 = vector.load %arg12[%366, %c0_101, %c32_102] : memref<8x8x64xf32, #tpu.memory_space<vmem>>, vector<1x8x32xf32>
    %368 = vector.shape_cast %367 : vector<1x8x32xf32> to vector<8x32xf32>
    %369 = vector.shape_cast %361 : vector<8x32xf32> to vector<1x8x32xf32>
    tpu.vector_store %arg12[%366, %c0_101, %c32_102], %369 {strides = array<i32>} : memref<8x8x64xf32, #tpu.memory_space<vmem>>, vector<1x8x32xf32>,
    %c7_i32_103 = arith.constant 7 : i32
    %c7_i32_104 = arith.constant 7 : i32
    %370 = arith.subi %c7_i32_104, %c7_i32_103 : i32
    %371 = arith.index_cast %c7_i32_103 : i32 to index
    %c0_105 = arith.constant 0 : index
    %c0_106 = arith.constant 0 : index
    %372 = vector.load %arg11[%371, %c0_105, %c0_106] : memref<8x8x256xf32, #tpu.memory_space<vmem>>, vector<1x8x128xf32>
    %373 = vector.shape_cast %372 : vector<1x8x128xf32> to vector<8x128xf32>
    %cst_107 = arith.constant dense<0.000000e+00> : vector<8x128xf32>
    %374 = tpu.matmul %345, %10, %cst_107 {dimension_numbers = #tpu.dot_dimension_numbers<[1], [0], [0], [1], [0, 0, 1, 1], [], []>} : vector<8x32xf32>, vector<32x128xf32>, vector<8x128xf32> -> vector<8x128xf32>
    %375 = arith.addf %373, %374 : vector<8x128xf32>
    %376 = arith.index_cast %370 : i32 to index
    %c0_108 = arith.constant 0 : index
    %c128_109 = arith.constant 128 : index
    %377 = vector.load %arg11[%376, %c0_108, %c128_109] : memref<8x8x256xf32, #tpu.memory_space<vmem>>, vector<1x8x128xf32>
    %378 = vector.shape_cast %377 : vector<1x8x128xf32> to vector<8x128xf32>
    %cst_110 = arith.constant dense<0.000000e+00> : vector<8x128xf32>
    %379 = tpu.matmul %361, %11, %cst_110 {dimension_numbers = #tpu.dot_dimension_numbers<[1], [0], [0], [1], [0, 0, 1, 1], [], []>} : vector<8x32xf32>, vector<32x128xf32>, vector<8x128xf32> -> vector<8x128xf32>
    %380 = arith.addf %378, %379 : vector<8x128xf32>
    %381 = vector.extract_strided_slice %375 {offsets = [0, 0], sizes = [8, 96], strides = [1, 1]} : vector<8x128xf32> to vector<8x96xf32>
    %382 = arith.negf %381 : vector<8x96xf32>
    %383 = math.exp %382 : vector<8x96xf32>
    %cst_111 = arith.constant 1.000000e+00 : f32
    %384 = vector.broadcast %cst_111 : f32 to vector<8x96xf32>
    %385 = arith.addf %384, %383 : vector<8x96xf32>
    %386 = arith.divf %384, %385 : vector<8x96xf32>
    %387 = vector.extract_strided_slice %386 {offsets = [0, 0], sizes = [8, 32], strides = [1, 1]} : vector<8x96xf32> to vector<8x32xf32>
    %388 = vector.extract_strided_slice %386 {offsets = [0, 32], sizes = [8, 32], strides = [1, 1]} : vector<8x96xf32> to vector<8x32xf32>
    %389 = vector.extract_strided_slice %386 {offsets = [0, 64], sizes = [8, 32], strides = [1, 1]} : vector<8x96xf32> to vector<8x32xf32>
    %390 = vector.extract_strided_slice %375 {offsets = [0, 96], sizes = [8, 32], strides = [1, 1]} : vector<8x128xf32> to vector<8x32xf32>
    %391 = math.tanh %390 : vector<8x32xf32>
    %392 = arith.mulf %388, %343 : vector<8x32xf32>
    %393 = arith.mulf %387, %391 : vector<8x32xf32>
    %394 = arith.addf %392, %393 : vector<8x32xf32>
    %395 = math.tanh %394 : vector<8x32xf32>
    %396 = arith.mulf %389, %395 : vector<8x32xf32>
    %397 = vector.extract_strided_slice %380 {offsets = [0, 0], sizes = [8, 96], strides = [1, 1]} : vector<8x128xf32> to vector<8x96xf32>
    %398 = arith.negf %397 : vector<8x96xf32>
    %399 = math.exp %398 : vector<8x96xf32>
    %cst_112 = arith.constant 1.000000e+00 : f32
    %400 = vector.broadcast %cst_112 : f32 to vector<8x96xf32>
    %401 = arith.addf %400, %399 : vector<8x96xf32>
    %402 = arith.divf %400, %401 : vector<8x96xf32>
    %403 = vector.extract_strided_slice %402 {offsets = [0, 0], sizes = [8, 32], strides = [1, 1]} : vector<8x96xf32> to vector<8x32xf32>
    %404 = vector.extract_strided_slice %402 {offsets = [0, 32], sizes = [8, 32], strides = [1, 1]} : vector<8x96xf32> to vector<8x32xf32>
    %405 = vector.extract_strided_slice %402 {offsets = [0, 64], sizes = [8, 32], strides = [1, 1]} : vector<8x96xf32> to vector<8x32xf32>
    %406 = vector.extract_strided_slice %380 {offsets = [0, 96], sizes = [8, 32], strides = [1, 1]} : vector<8x128xf32> to vector<8x32xf32>
    %407 = math.tanh %406 : vector<8x32xf32>
    %408 = arith.mulf %404, %359 : vector<8x32xf32>
    %409 = arith.mulf %403, %407 : vector<8x32xf32>
    %410 = arith.addf %408, %409 : vector<8x32xf32>
    %411 = math.tanh %410 : vector<8x32xf32>
    %412 = arith.mulf %405, %411 : vector<8x32xf32>
    %413 = arith.index_cast %c7_i32_103 : i32 to index
    %c0_113 = arith.constant 0 : index
    %c0_114 = arith.constant 0 : index
    %414 = vector.load %arg12[%413, %c0_113, %c0_114] : memref<8x8x64xf32, #tpu.memory_space<vmem>>, vector<1x8x32xf32>
    %415 = vector.shape_cast %414 : vector<1x8x32xf32> to vector<8x32xf32>
    %416 = vector.shape_cast %396 : vector<8x32xf32> to vector<1x8x32xf32>
    tpu.vector_store %arg12[%413, %c0_113, %c0_114], %416 {strides = array<i32>} : memref<8x8x64xf32, #tpu.memory_space<vmem>>, vector<1x8x32xf32>,
    %417 = arith.index_cast %370 : i32 to index
    %c0_115 = arith.constant 0 : index
    %c32_116 = arith.constant 32 : index
    %418 = vector.load %arg12[%417, %c0_115, %c32_116] : memref<8x8x64xf32, #tpu.memory_space<vmem>>, vector<1x8x32xf32>
    %419 = vector.shape_cast %418 : vector<1x8x32xf32> to vector<8x32xf32>
    %420 = vector.shape_cast %412 : vector<8x32xf32> to vector<1x8x32xf32>
    tpu.vector_store %arg12[%417, %c0_115, %c32_116], %420 {strides = array<i32>} : memref<8x8x64xf32, #tpu.memory_space<vmem>>, vector<1x8x32xf32>,
    %c8_i32 = arith.constant 8 : i32
    %c0_117 = arith.constant 0 : index
    %c0_118 = arith.constant 0 : index
    %c0_119 = arith.constant 0 : index
    %421 = vector.load %arg12[%c0_117, %c0_118, %c0_119] : memref<8x8x64xf32, #tpu.memory_space<vmem>>, vector<8x8x64xf32>
    %422 = vector.shape_cast %421 : vector<8x8x64xf32> to vector<64x64xf32>
    %c0_120 = arith.constant 0 : index
    %c0_121 = arith.constant 0 : index
    %423 = vector.load %arg6[%c0_120, %c0_121] : memref<64x16xf32, #tpu.memory_space<vmem>>, vector<64x16xf32>
    %cst_122 = arith.constant dense<0.000000e+00> : vector<64x16xf32>
    %424 = tpu.matmul %422, %423, %cst_122 {dimension_numbers = #tpu.dot_dimension_numbers<[1], [0], [0], [1], [0, 0, 1, 1], [], []>} : vector<64x64xf32>, vector<64x16xf32>, vector<64x16xf32> -> vector<64x16xf32>
    %c0_123 = arith.constant 0 : index
    %c0_124 = arith.constant 0 : index
    %425 = vector.load %arg7[%c0_123, %c0_124] : memref<1x16xf32, #tpu.memory_space<vmem>>, vector<1x16xf32>
    %426 = vector.broadcast %425 : vector<1x16xf32> to vector<64x16xf32>
    %427 = arith.addf %424, %426 : vector<64x16xf32>
    %428 = vector.shape_cast %427 : vector<64x16xf32> to vector<1x64x16xf32>
    %cst_125 = arith.constant dense<0.000000e+00> : vector<1xf32>
    %429 = vector.multi_reduction <add>, %428, %cst_125 [1, 2] : vector<1x64x16xf32> to vector<1xf32>
    %430 = vector.shape_cast %429 : vector<1xf32> to vector<1x1x1xf32>
    %431 = vector.extract %430[0, 0, 0] : f32 from vector<1x1x1xf32>
    %cst_126 = arith.constant 1.024000e+03 : f32
    %432 = arith.divf %431, %cst_126 : f32
    %433 = vector.broadcast %432 : f32 to vector<64x16xf32>
    %434 = arith.subf %427, %433 : vector<64x16xf32>
    %435 = arith.mulf %434, %434 : vector<64x16xf32>
    %436 = vector.shape_cast %435 : vector<64x16xf32> to vector<1x64x16xf32>
    %cst_127 = arith.constant dense<0.000000e+00> : vector<1xf32>
    %437 = vector.multi_reduction <add>, %436, %cst_127 [1, 2] : vector<1x64x16xf32> to vector<1xf32>
    %438 = vector.shape_cast %437 : vector<1xf32> to vector<1x1x1xf32>
    %439 = vector.extract %438[0, 0, 0] : f32 from vector<1x1x1xf32>
    %cst_128 = arith.constant 1.024000e+03 : f32
    %440 = arith.divf %439, %cst_128 : f32
    %441 = vector.broadcast %432 : f32 to vector<64x16xf32>
    %442 = arith.subf %427, %441 : vector<64x16xf32>
    %cst_129 = arith.constant 9.99999974E-6 : f32
    %443 = arith.addf %440, %cst_129 : f32
    %444 = math.rsqrt %443 : f32
    %445 = vector.broadcast %444 : f32 to vector<64x16xf32>
    %446 = arith.mulf %442, %445 : vector<64x16xf32>
    %c0_130 = arith.constant 0 : index
    %c0_131 = arith.constant 0 : index
    %447 = vector.load %arg8[%c0_130, %c0_131] : memref<1x16xf32, #tpu.memory_space<vmem>>, vector<1x16xf32>
    %448 = vector.broadcast %447 : vector<1x16xf32> to vector<64x16xf32>
    %449 = arith.mulf %446, %448 : vector<64x16xf32>
    %c0_132 = arith.constant 0 : index
    %c0_133 = arith.constant 0 : index
    %450 = vector.load %arg9[%c0_132, %c0_133] : memref<1x16xf32, #tpu.memory_space<vmem>>, vector<1x16xf32>
    %451 = vector.broadcast %450 : vector<1x16xf32> to vector<64x16xf32>
    %452 = arith.addf %449, %451 : vector<64x16xf32>
    %453 = arith.addf %452, %2 : vector<64x16xf32>
    %454 = vector.shape_cast %453 : vector<64x16xf32> to vector<8x8x16xf32>
    %c0_134 = arith.constant 0 : index
    %c0_135 = arith.constant 0 : index
    %c0_136 = arith.constant 0 : index
    %c0_137 = arith.constant 0 : index
    %455 = vector.load %arg10[%c0_134, %c0_135, %c0_136, %c0_137] : memref<1x8x8x16xf32, #tpu.memory_space<vmem>>, vector<1x8x8x16xf32>
    %456 = vector.shape_cast %455 : vector<1x8x8x16xf32> to vector<8x8x16xf32>
    %457 = vector.shape_cast %454 : vector<8x8x16xf32> to vector<1x8x8x16xf32>
    tpu.vector_store %arg10[%c0_134, %c0_135, %c0_136, %c0_137], %457 {strides = array<i32>} : memref<1x8x8x16xf32, #tpu.memory_space<vmem>>, vector<1x8x8x16xf32>,
    return
  }
  func.func @transform_0(%arg0: i32) -> (i32, i32, i32, i32) {
    %c0_i32 = arith.constant 0 : i32
    %c0_i32_0 = arith.constant 0 : i32
    %c0_i32_1 = arith.constant 0 : i32
    %c0_i32_2 = arith.constant 0 : i32
    return %arg0, %c0_i32, %c0_i32_0, %c0_i32_1 : i32, i32, i32, i32
  }
  func.func @transform_1(%arg0: i32) -> (i32, i32) {
    %c0_i32 = arith.constant 0 : i32
    %c0_i32_0 = arith.constant 0 : i32
    %c0_i32_1 = arith.constant 0 : i32
    return %c0_i32, %c0_i32_0 : i32, i32
  }
  func.func @transform_2(%arg0: i32) -> (i32, i32) {
    %c0_i32 = arith.constant 0 : i32
    %c0_i32_0 = arith.constant 0 : i32
    %c0_i32_1 = arith.constant 0 : i32
    return %c0_i32, %c0_i32_0 : i32, i32
  }
  func.func @transform_3(%arg0: i32) -> (i32, i32) {
    %c0_i32 = arith.constant 0 : i32
    %c0_i32_0 = arith.constant 0 : i32
    %c0_i32_1 = arith.constant 0 : i32
    return %c0_i32, %c0_i32_0 : i32, i32
  }
  func.func @transform_4(%arg0: i32) -> (i32, i32) {
    %c0_i32 = arith.constant 0 : i32
    %c0_i32_0 = arith.constant 0 : i32
    %c0_i32_1 = arith.constant 0 : i32
    return %c0_i32, %c0_i32_0 : i32, i32
  }
  func.func @transform_5(%arg0: i32) -> (i32, i32) {
    %c0_i32 = arith.constant 0 : i32
    %c0_i32_0 = arith.constant 0 : i32
    %c0_i32_1 = arith.constant 0 : i32
    return %c0_i32, %c0_i32_0 : i32, i32
  }
  func.func @transform_6(%arg0: i32) -> (i32, i32) {
    %c0_i32 = arith.constant 0 : i32
    %c0_i32_0 = arith.constant 0 : i32
    %c0_i32_1 = arith.constant 0 : i32
    return %c0_i32, %c0_i32_0 : i32, i32
  }
  func.func @transform_7(%arg0: i32) -> (i32, i32) {
    %c0_i32 = arith.constant 0 : i32
    %c0_i32_0 = arith.constant 0 : i32
    %c0_i32_1 = arith.constant 0 : i32
    return %c0_i32, %c0_i32_0 : i32, i32
  }
  func.func @transform_8(%arg0: i32) -> (i32, i32) {
    %c0_i32 = arith.constant 0 : i32
    %c0_i32_0 = arith.constant 0 : i32
    %c0_i32_1 = arith.constant 0 : i32
    return %c0_i32, %c0_i32_0 : i32, i32
  }
  func.func @transform_9(%arg0: i32) -> (i32, i32, i32, i32) {
    %c0_i32 = arith.constant 0 : i32
    %c0_i32_0 = arith.constant 0 : i32
    %c0_i32_1 = arith.constant 0 : i32
    %c0_i32_2 = arith.constant 0 : i32
    return %arg0, %c0_i32, %c0_i32_0, %c0_i32_1 : i32, i32, i32, i32
  }
}

</mosaic_0001>

<bundles_post_ra>
// kernel: band_split_rnn_block.2
= control target key start
LH: loop header
LB: loop body
LE: loop exit
PB: predicated region body
PF: predicated region fallthrough
CT: control target
= control target key end

     0   :  { %14 = vsyncpa [#allocation5], 0  ;;  %s4228_s0 = inlined_call_operand.hbm [shape: f32[2,8,8,16], index: 0, kind: input, shape index: {}]   ;;  %s4229_s1 = inlined_call_operand.vmem [shape: f32[16,256], index: 1, kind: input, shape index: {}]   ;;  %s4230_s2 = inlined_call_operand.vmem [shape: f32[1,256], index: 2, kind: input, shape index: {}]   ;;  %s4231_s3 = inlined_call_operand.vmem [shape: f32[32,128], index: 3, kind: input, shape index: {}]   ;;  %s4232_s4 = inlined_call_operand.vmem [shape: f32[32,128], index: 4, kind: input, shape index: {}]   ;;  %s4233_s5 = inlined_call_operand.vmem [shape: f32[64,16], index: 5, kind: input, shape index: {}]   ;;  %s4234_s6 = inlined_call_operand.hbm [shape: f32[1,16], index: 6, kind: input, shape index: {}]   ;;  %s4235_s7 = inlined_call_operand.hbm [shape: f32[1,16], index: 7, kind: input, shape index: {}]   ;;  %s4236_s8 = inlined_call_operand.hbm [shape: f32[1,16], index: 8, kind: input, shape index: {}]   ;;  %s4237_s9 = inlined_call_operand.vmem [shape: f32[2,8,8,16], index: 9, kind: output, shape index: {}]  }
   0x1   :  { %16 = vsyncpa [#allocation5 + $0x1], 0 }
   0x2   :  { %17 = vsyncpa [#allocation7], 0 }
   0x3   :  { %18 = vsyncpa [#allocation10], 0  ;;  %s3562_s30 = smov 0   ;;  %s3564_s10 = smov 0  }
   0x4   :  { %s3566_s11 = smov 0   ;;  %s3568_s12 = smov 0  }
   0x5 LB: > { %s3581_s13 = sadd.s32 4294967295, %s3498_s12   ;;  %p44_p0 = scmp.ne.s32.totalorder %s3490_s10, %s3486_s30  ;;  %s3498_s12 = sphi %s3568_s12, %s4255_s12   ;;  %s3494_s11 = sphi %s3566_s11, %s4254_s11   ;;  %s3490_s10 = sphi %s3564_s10, %s4253_s10   ;;  %s3486_s30 = sphi %s3562_s30, %s4252_s30  }
   0x6   : > { %p4238_p1 = scmp.eq.s32.totalorder %s3581_s13, 0  ;;  %p2634_p2 = scmp.ge.s32.totalorder %s3498_s12, 1 }
   0x7   : > { %p249_p3 = scmp.lt.s32.totalorder %s3498_s12, 3  ;;  %s3500_s16 = smov [#allocation6]  }
   0x8   : > { %p3589_p4 = por %p4238_p1, %p44_p0  ;;  %s277_s17 = sshll.u32 %s3500_s16, 4  ;;  %s278_s17 = int_to_ptr.vmem [resolvable:$true] %s277_s17 }
   0x9   : > { %p3593_p5 = pnand %p2634_p2, %p249_p3  ;;  %s3501_s18 = smov [#allocation8]  }
   0xa   : > { %s4241_s14 = scalar_select %p3589_p4, 1, 0 }
   0xb   : > { %s4242_s15 = scalar_select %p3593_p5, 1, 0 }
   0xc   : > { %p3140_p6 = pneg %p3593_p5  ;;  %s288_s19 = sshll.u32 %s3501_s18, 4  ;;  %s3605_s19 = int_to_ptr.vmem [resolvable:$true] %s288_s19 }
   0xd   : > { %s3502_s21 = smov [#allocation9]   ;;  %s3342_s25 = scalar_lea.hbm %s4234_s6, 16 }
   0xe   : > { %p3601_p7 = pnand %p3140_p6, %p4238_p1  ;;  %s299_s22 = sshll.u32 %s3502_s21, 4  ;;  %s3607_s22 = int_to_ptr.vmem [resolvable:$true] %s299_s22 }
   0xf   : > { %p3343_p8 = scmp.ne.s32.totalorder %s4234_s6, %s3342_s25  ;;  %p3349_p12 = scmp.lt.u32.totalorder %s3342_s25, %s4234_s6 }
  0x10   : > { %p3617_p9 = pneg %p3601_p7 }
  0x12   : > { %p3345_p10 = pnand %p3617_p9, %p3343_p8 }
  0x14   : > { %p3346_p11 = pneg %p3345_p10 }
  0x16   : > { %p3351_p13 = pnand %p3349_p12, %p3346_p11 }
  0x18   : > { %3354 = shalt.err (!%p3351_p13)
}
  0x19   : > { %s3355_s16 = scalar_lea.vmem %s278_s17, 16  ;;  %s3362_s18 = scalar_lea.vmem %s278_s17, 32 }
  0x1a   : > { %p3356_p0 = scmp.ne.s32.totalorder %s278_s17, %s3355_s16  ;;  %p3363_p6 = scmp.lt.s32.totalorder %s278_s17, %s278_s17 }
  0x1b   : > { %p3364_p1 = scmp.lt.s32.totalorder %s3362_s18, %s3355_s16 }
  0x1c   : > { %p3358_p2 = pnand %p3356_p0, %p3617_p9 }
  0x1d   : > { %p3365_p4 = por %p3364_p1, %p3363_p6 }
  0x1e   : > { %p3359_p3 = pneg %p3358_p2 }
  0x20   : > { %p3366_p5 = pnand %p3365_p4, %p3359_p3 }
  0x22   : > { %3369 = shalt.err (!%p3366_p5)
}
  0x23   : > { %3143 = dma.hbm_to_vmem [thread:$0]  (!%p3601_p7), %s4234_s6, 16, %s278_s17, [#allocation7]  }
  0x24   : > { %s3370_s26 = scalar_lea.hbm %s4235_s7, 16 }
  0x25   : > { %p3371_p8 = scmp.ne.s32.totalorder %s4235_s7, %s3370_s26  ;;  %p3377_p4 = scmp.lt.u32.totalorder %s3370_s26, %s4235_s7 }
  0x27   : > { %p3373_p10 = pnand %p3371_p8, %p3617_p9 }
  0x29   : > { %p3374_p1 = pneg %p3373_p10 }
  0x2b   : > { %p3379_p5 = pnand %p3377_p4, %p3374_p1 }
  0x2d   : > { %3382 = shalt.err (!%p3379_p5)
}
  0x2e   : > { %s3383_s17 = scalar_lea.vmem %s3605_s19, 16  ;;  %s3390_s18 = scalar_lea.vmem %s3605_s19, 32 }
  0x2f   : > { %p3384_p11 = scmp.ne.s32.totalorder %s3605_s19, %s3383_s17  ;;  %p3391_p0 = scmp.lt.s32.totalorder %s3605_s19, %s3605_s19 }
  0x30   : > { %p3392_p2 = scmp.lt.s32.totalorder %s3390_s18, %s3383_s17 }
  0x31   : > { %p3386_p12 = pnand %p3384_p11, %p3617_p9 }
  0x32   : > { %p3393_p3 = por %p3392_p2, %p3391_p0 }
  0x33   : > { %p3387_p13 = pneg %p3386_p12 }
  0x35   : > { %p3394_p6 = pnand %p3393_p3, %p3387_p13 }
  0x37   : > { %3397 = shalt.err (!%p3394_p6)
}
  0x38   : > { %3146 = dma.hbm_to_vmem [thread:$0]  (!%p3601_p7), %s4235_s7, 16, %s3605_s19, [#allocation7]  }
  0x39   : > { %s3398_s26 = scalar_lea.hbm %s4236_s8, 16 }
  0x3a   : > { %p3399_p8 = scmp.ne.s32.totalorder %s4236_s8, %s3398_s26  ;;  %p3405_p4 = scmp.lt.u32.totalorder %s3398_s26, %s4236_s8 }
  0x3c   : > { %p3401_p10 = pnand %p3399_p8, %p3617_p9 }
  0x3e   : > { %p3402_p1 = pneg %p3401_p10 }
  0x40   : > { %p3407_p5 = pnand %p3405_p4, %p3402_p1 }
  0x42   : > { %3410 = shalt.err (!%p3407_p5)
}
  0x43   : > { %s3411_s19 = scalar_lea.vmem %s3607_s22, 16  ;;  %s3418_s17 = scalar_lea.vmem %s3607_s22, 32 }
  0x44   : > { %p3412_p11 = scmp.ne.s32.totalorder %s3607_s22, %s3411_s19  ;;  %p3419_p0 = scmp.lt.s32.totalorder %s3607_s22, %s3607_s22 }
  0x45   : > { %p3420_p2 = scmp.lt.s32.totalorder %s3418_s17, %s3411_s19 }
  0x46   : > { %p3414_p12 = pnand %p3412_p11, %p3617_p9 }
  0x47   : > { %p3421_p3 = por %p3420_p2, %p3419_p0 }
  0x48   : > { %p3415_p13 = pneg %p3414_p12 }
  0x4a   : > { %p3422_p6 = pnand %p3421_p3, %p3415_p13 }
  0x4c   : > { %3425 = shalt.err (!%p3422_p6)
}
  0x4d   : > { %3149 = dma.hbm_to_vmem [thread:$0]  (!%p3601_p7), %s4236_s8, 16, %s3607_s22, [#allocation10]  }
  0x4e   : > { %s3682_s28 = sadd.s32 1, %s3498_s12   ;;  %s31_s20 = sadd.s32 1, %s3494_s11 }
  0x4f   : > { %s28_s23 = ssub.s32 %s3498_s12, %s3682_s28  ;;  %p38_p8 = scmp.ne.s32.totalorder %s3494_s11, %s3490_s10 }
  0x50   : > { %p29_p9 = scmp.eq.s32.totalorder %s28_s23, 0  ;;  %p39_p10 = scmp.eq.s32.totalorder %s3498_s12, 0 }
  0x51   : > { %p3157_p1 = scmp.lt.s32.totalorder %s3498_s12, 2  ;;  %s310_s25 = sand.u32 1, %s3494_s11  }
  0x52   : > { %s3692_s24 = scalar_select %p29_p9, %s3494_s11, %s31_s20  }
  0x53   : > { %p40_p4 = por %p39_p10, %p38_p8  ;;  %s2639_s26 = sshll.u32 %s310_s25, 6 }
  0x54   : > { %s2700_s27 = sshll.u32 %s3498_s12, 10  ;;  %s314_s22 = scalar_lea.vmem [#allocation4], %s2639_s26 }
  0x55   : > { %s3699_s16 = scalar_lea.hbm %s4228_s0, %s2700_s27  ;;  %s321_s19 = sshll.u32 %s314_s22, 4  ;;  %s3701_s19 = int_to_ptr.vmem [resolvable:$true] %s321_s19 }
  0x56   : > { %p3703_p7 = pnand %p3157_p1, %p40_p4  ;;  %s3707_s12 = scalar_lea.sflag [#allocation5], %s310_s25 }
  0x57   : > { %s3426_s18 = scalar_lea.hbm %s3699_s16, 1024  ;;  %s3431_s20 = scalar_lea.hbm %s4228_s0, 2048 }
  0x58   : > { %p3427_p5 = scmp.ne.s32.totalorder %s3699_s16, %s3426_s18  ;;  %p3428_p11 = pneg %p3703_p7 }
  0x59   : > { %p3432_p0 = scmp.lt.u32.totalorder %s3699_s16, %s4228_s0  ;;  %p3433_p2 = scmp.lt.u32.totalorder %s3431_s20, %s3426_s18 }
  0x5a   : > { %p3429_p12 = pnand %p3428_p11, %p3427_p5  ;;  %p3435_p6 = scmp.lt.u32.totalorder %s3426_s18, %s3699_s16 }
  0x5b   : > { %p3434_p3 = por %p3433_p2, %p3432_p0 }
  0x5c   : > { %p3430_p13 = pneg %p3429_p12 }
  0x5d   : > { %p3436_p9 = por %p3435_p6, %p3434_p3 }
  0x5f   : > { %p3437_p8 = pnand %p3436_p9, %p3430_p13 }
  0x61   : > { %3440 = shalt.err (!%p3437_p8)
}
  0x62   : > { %s3441_s25 = scalar_lea.vmem %s3701_s19, 1024  ;;  %s3503_s29 = smov [#allocation4]  }
  0x63   : > { %p3442_p10 = scmp.ne.s32.totalorder %s3701_s19, %s3441_s25  ;;  %s3446_s30 = sshll.u32 %s3503_s29, 4  ;;  %s3447_s30 = int_to_ptr.vmem [resolvable:$false] %s3446_s30 }
  0x64   : > { %s3448_s22 = scalar_lea.vmem %s3447_s30, 2048  ;;  %p3449_p5 = scmp.lt.s32.totalorder %s3701_s19, %s3447_s30 }
  0x65   : > { %p3444_p1 = pnand %p3442_p10, %p3428_p11  ;;  %p3450_p12 = scmp.lt.s32.totalorder %s3448_s22, %s3441_s25 }
  0x67   : > { %p3445_p4 = pneg %p3444_p1  ;;  %p3451_p0 = por %p3450_p12, %p3449_p5 }
  0x69   : > { %p3452_p2 = pnand %p3451_p0, %p3445_p4 }
  0x6b   : > { %3455 = shalt.err (!%p3452_p2)
}
  0x6c   : > { %s3504_s18 = smov 128   ;;  %s3505_s21 = smov 8  }
  0x6d   : > { %3153 = dma.hbm_to_vmem [thread:$0]  (!%p3703_p7), %s3699_s16, 1024, %s3701_s19, %s3707_s12, %s3504_s18, %s3504_s18, %s3505_s21  }
  0x6e   : > { %p4246_p11 = scmp.ne.s32.totalorder %s4242_s15, 0 }
  0x6f   : > { %s335_s23 = sand.u32 (!%p4246_p11), 1, %s3490_s10   ;;  %p4247_p13 = scmp.ne.s32.totalorder (!%p4246_p11), %s4241_s14, 0 }
  0x70   : > { %333 = sbr.rel (%p4246_p11) target bundleno = 6522 (0x197a), region = 56  ;;  %s2643_s20 = sshll.u32 (!%p4246_p11), %s335_s23, 6 }
  0x71   : > { %s336_s26 = scalar_lea.sflag (!%p4246_p11), [#allocation5], %s335_s23  ;;  %s3738_s27 = scalar_lea.vmem (!%p4246_p11), [#allocation4], %s2643_s20 }
  0x77   : > { %3473 = dma.done.wait (%p4247_p13), %s336_s26, 1024  }
  0x78   : > { %3475 = vsyncadd (%p4247_p13), %s336_s26, 4294966272  ;;  %p4248_p3 = scmp.eq.s32.totalorder %s3581_s13, 0 }
  0x7a   : > { %3477 = dma.done.wait (%p4248_p3), [#allocation7], 32   ;;  %p4249_p7 = pmov %p4248_p3 }
  0x7b   : > { %p4250_p6 = pmov %p4248_p3 }
  0x7c   : > { %3479 = vsyncadd (%p4249_p7), [#allocation7], 4294967264 }
  0x7d   : > { %3481 = dma.done.wait (%p4250_p6), [#allocation10], 16   ;;  %p4251_p9 = pmov %p4248_p3 }
  0x7e   : > { %v3506_v0 = vmov 0.0   ;;  %v400_v1 = vld [vmem:[%s4229_s1 + $0x8] sm:$0xff]  ;;  %v402_v2 = vld [vmem:[%s4229_s1 + $0x18] sm:$0xff]  ;;  %v399_v3 = vld [vmem:[%s4229_s1] sm:$0xff]  ;;  %vm415_vm0 = vcmask 130048   ;;  %v3507_v12 = vmov 0.0|0.0   ;;  %v405_v24 = vlaneseq }
  0x7f   : > { %3483 = vsyncadd (%p4251_p9), [#allocation10], 4294967280  ;;  %534 = vmatprep.mubr.f32.mxu1 %v3506_v0  ;;  %504 = vmatprep.mubr.f32.mxu0 %v3506_v0  ;;  %v3002_v4 = vpack.c.bf16 %v402_v2, %v400_v1  ;;  %v401_v5 = vld [vmem:[%s4229_s1 + $0x10] sm:$0xff]  ;;  %v569_v6 = vld [vmem:[%s4231_s3] sm:$0xff]  ;;  %vm3508_vm1 = vmmov 0   ;;  %s3509_s21 = smov 32  }
  0x80   : > { %v3004_v7 = vpack.c.bf16 %v401_v5, %v399_v3  ;;  %v570_v8 = vld [vmem:[%s4231_s3 + $0x8] sm:$0xff]  ;;  %v391_v11 = vld [vmem:[%s3738_s27] sm:$0xff]  ;;  %v571_v13 = vld [vmem:[%s4231_s3 + $0x10] sm:$0xff]  ;;  %v406_v25 = vshrl.u32 %v405_v24, 7  ;;  %s3510_s23 = smov 64   ;;  %vm578_vm2 = vcmask 261120  }
  0x81   : > { %3118 = vmatprep.subr.bf16.mxu1 %v3002_v4  ;;  %3003 = vmatprep.subr.bf16.mxu0 %v3002_v4  ;;  %v396_v9 = vld [vmem:[%s3738_s27 + $0x28] sm:$0xff]  ;;  %v3773_v10 = vpack.c.bf16 %v570_v8, %v569_v6  ;;  %v572_v14 = vld [vmem:[%s4231_s3 + $0x18] sm:$0xff]  ;;  %v397_v15 = vld [vmem:[%s3738_s27 + $0x30] sm:$0xff]  ;;  %s3511_s20 = smov 96   ;;  %vm784_vm3 = vcmask 523520   ;;  %vm2277_vm4 = vcmask 523264  }
  0x82   : > { %3119 = vmatpush1.bf16.msra.mxu1 %v3004_v7  ;;  %3005 = vmatpush1.bf16.msra.mxu0 %v3004_v7  ;;  %v3789_v16 = vpack.c.bf16 %v572_v14, %v571_v13  ;;  %v398_v17 = vld [vmem:[%s3738_s27 + $0x38] sm:$0xff]  ;;  %v573_v18 = vld [vmem:[%s4232_s4] sm:$0xff]  ;;  %v574_v19 = vld [vmem:[%s4232_s4 + $0x8] sm:$0xff]  ;;  %v407_v30 = vsub.s32 0, %v406_v25  ;;  %v411_v39 = vsub.s32 1, %v406_v25  ;;  %p386_p8 = scmp.lt.s32.totalorder %s3581_s13, 1 }
  0x83   : > { %3006 = vmatprep.subr.bf16.mxu1 %v3507_v12  ;;  %3030 = vmatprep.subr.bf16.mxu0 %v3507_v12  ;;  %v3811_v20 = vpack.c.bf16 %v574_v19, %v573_v18  ;;  %v575_v21 = vld [vmem:[%s4232_s4 + $0x10] sm:$0xff]  ;;  %v576_v22 = vld [vmem:[%s4232_s4 + $0x18] sm:$0xff]  ;;  %v403_v31 = vld [vmem:[%s4230_s2] sm:$0x3] }
  0x84   : > { %v3821_v23 = vpack.c.bf16 %v576_v22, %v575_v21  ;;  %v3848_v34 = vrot.slane %v403_v31, %v407_v30  ;;  %v3853_v42 = vrot.slane %v403_v31, %v411_v39  ;;  %v392_v4 = vld [vmem:[%s3738_s27 + $0x8] sm:$0xff]  ;;  %s4257_s13 = smov (!%p386_p8, %s3581_s13), 1 }
  0x85   : > { %2654 = vmatmul.mubr.msk.f32.vlgmr.msra.gmra.mrb[0].mxu1 %vm415_vm0, %v396_v9  ;;  %2649 = vmatmul.mubr.msk.f32.vlgmr.msra.gmra.mrb[0].mxu0 %vm415_vm0, %v391_v11  ;;  %s2701_s25 = sshll.u32 %s4257_s13, 6 }
  0x86   : > { %3008 = vmatpush3.bf16.msra.mxu1 %v3773_v10  ;;  %540 = vmatprep.mubr.f32.mxu1 %v3506_v0  ;;  %s390_s13 = scalar_lea.vmem %s4237_s9, %s2701_s25 }
  0x87   : > { %3009 = vmatprep.subr.bf16.mxu1 %v3507_v12  ;;  %510 = vmatprep.mubr.f32.mxu0 %v3506_v0 }
  0x88   : > { %3032 = vmatpush3.bf16.msra.mxu0 %v3773_v10 }
  0x89   : > { %2655 = vmatmul.mubr.msk.f32.gmra.mrb[2].mxu1 %vm415_vm0, %v397_v15  ;;  %3033 = vmatprep.subr.bf16.mxu0 %v3507_v12 }
  0x8a   : > { %546 = vmatprep.mubr.f32.mxu1 %v3506_v0  ;;  %3011 = vmatpush3.bf16.msra.mxu1 %v3789_v16 }
  0x8b   : > { %3012 = vmatprep.subr.bf16.mxu1 %v3507_v12  ;;  %2650 = vmatmul.mubr.msk.f32.gmra.mrb[2].mxu0 %vm415_vm0, %v392_v4 }
  0x8c   : > { %3035 = vmatpush3.bf16.msra.mxu0 %v3789_v16  ;;  %516 = vmatprep.mubr.f32.mxu0 %v3506_v0 }
  0x8d   : > { %2656 = vmatmul.mubr.msk.f32.gmra.mrb[4].mxu1 %vm415_vm0, %v398_v17  ;;  %3042 = vmatprep.subr.bf16.mxu0 %v3507_v12 }
  0x8e   : > { %2806 = vmatprep.mubr.msk.f32.mxu1 %vm3508_vm1, %v3506_v0 }
  0x91   : > { %2807 = vmatmul.mubr.f32.vlgmr.msra.gmra.mrb[6].mxu1 %v3506_v0 }
  0x92   : > { %3014 = vmatpush3.bf16.msra.mxu1 %v3811_v20  ;;  %2817 = vmatprep.mubr.msk.f32.mxu1 %vm3508_vm1, %v3506_v0 }
  0x93   : > { %3015 = vmatprep.subr.bf16.mxu1 %v3507_v12 }
  0x96   : > { %3017 = vmatpush3.bf16.msra.mxu1 %v3821_v23 }
  0x97   : > { %3018 = vmatprep.subr.bf16.mxu1 %v3507_v12 }
  0x99   : > { %2818 = vmatmul.mubr.f32.vlgmr.msra.gmra.mrb[8].mxu1 %v3506_v0 }
  0x9a   : > { %3020 = vmatpush3.bf16.msra.mxu1 %v3773_v10  ;;  %2828 = vmatprep.mubr.msk.f32.mxu1 %vm3508_vm1, %v3506_v0 }
  0x9b   : > { %3021 = vmatprep.subr.bf16.mxu1 %v3507_v12 }
  0x9e   : > { %3023 = vmatpush3.bf16.msra.mxu1 %v3789_v16 }
  0x9f   : > { %3024 = vmatprep.subr.bf16.mxu1 %v3507_v12 }
 0x158   : > { %v3835_v26 = vpop.f32.mrb[0].mxu1  ;;  %v506_v27 = vpop.f32.mrb[0].mxu0 }
 0x159   : > { %v3837_v28 = vpop.f32.mrb[1].mxu1  ;;  %v3839_v29 = vpop.f32.mrb[1].mxu0  ;;  %v507_v37 = vadd.f32 %v506_v27, %v3848_v34 }
 0x15c   : > { %v3844_v32 = vpop.f32.mrb[2].mxu1 }
 0x15d   : > { %v3846_v33 = vpop.f32.mrb[3].mxu1 }
 0x15e   : > { %v512_v13 = vpop.f32.mrb[2].mxu0  ;;  %v545_v24 = vadd.f32 %v3846_v33, %v3853_v42 }
 0x15f   : > { %v3891_v17 = vpop.f32.mrb[3].mxu0  ;;  %v513_v18 = vadd.f32 %v512_v13, %v3848_v34 }
 0x160   : > { %v3850_v35 = vpop.f32.mrb[4].mxu1 }
 0x161   : > { %v550_v36 = vpop.f32.mrb[5].mxu1 }
 0x162   : > { %v551_v43 = vadd.f32 %v550_v36, %v3853_v42 }
 0x164   : > { %v648_v38 = vpop.f32.mrb[6].mxu1 }
 0x165   : > { %v652_v40 = vadd.f32 %v648_v38, %v507_v37  ;;  %v2808_v41 = vpop.f32.mrb[7].mxu1 }
 0x167   : > { %3204 = vtanh.f32 %v652_v40  ;;  %v2657_v49 = vmul.f32 -1.442695, %v652_v40 }
 0x16c   : > { %v721_v44 = vpop.f32.mrb[8].mxu1 }
 0x16d   : > { %v725_v45 = vadd.f32 %v721_v44, %v551_v43  ;;  %v2819_v46 = vpop.f32.mrb[9].mxu1 }
 0x16f   : > { %3206 = vtanh.f32 %v725_v45  ;;  %v2658_v50 = vmul.f32 -1.442695, %v725_v45 }
 0x170   : > { %3208 = vpow2.f32 %v2657_v49 }
 0x171   : > { %v3205_v47 = vpop.eup %3204  ;;  %3210 = vpow2.f32 %v2658_v50 }
 0x172   : > { %735 = vrot.lane.b32.xlu0 %v3205_v47, %s3509_s21 }
 0x179   : > { %v3207_v48 = vpop.eup %3206 }
 0x17a   : > { %759 = vrot.lane.b32.xlu0 %v3207_v48, %s3509_s21  ;;  %v3209_v51 = vpop.eup %3208 }
 0x17b   : > { %v729_v52 = vadd.f32 1.0, %v3209_v51  ;;  %v3211_v53 = vpop.eup %3210 }
 0x17c   : > { %v753_v54 = vadd.f32 1.0, %v3211_v53 }
 0x17d   : > { %3212 = vrcp.f32 %v729_v52 }
 0x17e   : > { %3214 = vrcp.f32 %v753_v54 }
 0x187   : > { %v3213_v55 = vpop.eup %3212 }
 0x188   : > { %v3215_v58 = vpop.eup %3214  ;;  %v733_v61 = vmul.f32 0.0, %v3213_v55 }
 0x189   : > { %v757_v1 = vmul.f32 0.0, %v3215_v58 }
 0x1e4   : > { %v736_v56 = vpop.permute.xlu0 %735 }
 0x1e5   : > { %v738_v57 = vmul.f32 %v3213_v55, %v736_v56 }
 0x1e7   : > { %740 = vrot.lane.b32.xlu1 %v738_v57, %s3509_s21  ;;  %v394_v57 = vld [vmem:[%s3738_s27 + $0x18] sm:$0xff] }
 0x1ec   : > { %v760_v59 = vpop.permute.xlu0 %759 }
 0x1ed   : > { %v762_v60 = vmul.f32 %v3215_v58, %v760_v59 }
 0x1ef   : > { %764 = vrot.lane.b32.xlu1 %v762_v60, %s3509_s21 }
 0x259   : > { %v741_v62 = vpop.permute.xlu1 %740 }
 0x25a   : > { %v3860_v63 = vadd.f32 %v741_v62, %v733_v61 }
 0x25c   : > { %3216 = vtanh.f32 %v3860_v63 }
 0x261   : > { %v765_v2 = vpop.permute.xlu1 %764 }
 0x262   : > { %v3863_v3 = vadd.f32 %v765_v2, %v757_v1 }
 0x264   : > { %3218 = vtanh.f32 %v3863_v3 }
 0x266   : > { %v3217_v5 = vpop.eup %3216 }
 0x267   : > { %746 = vrot.lane.b32.xlu0 %v3217_v5, %s3509_s21 }
 0x26e   : > { %v3219_v6 = vpop.eup %3218 }
 0x26f   : > { %770 = vrot.lane.b32.xlu1 %v3219_v6, %s3509_s21 }
 0x2d9   : > { %v747_v7 = vpop.permute.xlu0 %746 }
 0x2da   : > { %v749_v8 = vmul.f32 %v3213_v55, %v747_v7  ;;  %v393_v55 = vld [vmem:[%s3738_s27 + $0x10] sm:$0xff] }
 0x2db   : > { %2651 = vmatmul.mubr.msk.f32.gmra.mrb[4].mxu0 %vm415_vm0, %v393_v55 }
 0x2dc   : > { %775 = vrot.lane.b32.xlu0 %v749_v8, %s3510_s23  ;;  %522 = vmatprep.mubr.f32.mxu0 %v3506_v0 }
 0x2df   : > { %2652 = vmatmul.mubr.msk.f32.gmra.mrb[6].mxu0 %vm415_vm0, %v394_v57 }
 0x2e0   : > { %528 = vmatprep.mubr.f32.mxu0 %v3506_v0 }
 0x2e1   : > { %v771_v9 = vpop.permute.xlu1 %770 }
 0x2e2   : > { %v3872_v11 = vmul.f32 %v3215_v58, %v771_v9  ;;  %v395_v58 = vld [vmem:[%s3738_s27 + $0x20] sm:$0xff] }
 0x2e3   : > { %2653 = vmatmul.mubr.msk.f32.gmra.mrb[8].mxu0 %vm415_vm0, %v395_v58 }
 0x2e4   : > { %863 = vrot.lane.b32.xlu1 %v3872_v11, %s3510_s23  ;;  %2850 = vmatprep.mubr.msk.f32.mxu0 %vm3508_vm1, %v3506_v0 }
 0x34e   : > { %v776_v14 = vpop.permute.xlu0 %775 }
 0x34f   : > { %778 = vst.msk [vmem:[#allocation3] sm:$0xff] %vm578_vm2, %v776_v14  ;;  %2829 = vmatmul.mubr.msk.f32.vlgmr.msra.gmra.mrb[10].mxu1 %vm578_vm2, %v776_v14 }
 0x350   : > { %3026 = vmatpush3.bf16.msra.mxu1 %v3811_v20  ;;  %2839 = vmatprep.mubr.msk.f32.mxu1 %vm3508_vm1, %v3506_v0 }
 0x351   : > { %3027 = vmatprep.subr.bf16.mxu1 %v3507_v12 }
 0x354   : > { %3029 = vmatpush3.bf16.msra.mxu1 %v3821_v23 }
 0x355   : > { %3036 = vmatprep.subr.bf16.mxu1 %v3507_v12 }
 0x356   : > { %v864_v15 = vpop.permute.xlu1 %863 }
 0x357   : > { %2840 = vmatmul.mubr.msk.f32.vlgmr.msra.gmra.mrb[12].mxu1 %vm578_vm2, %v864_v15 }
 0x358   : > { %3038 = vmatpush3.bf16.msra.mxu1 %v3811_v20  ;;  %2861 = vmatprep.mubr.msk.f32.mxu1 %vm3508_vm1, %v3506_v0 }
 0x359   : > { %3039 = vmatprep.subr.bf16.mxu1 %v3507_v12 }
 0x35c   : > { %3041 = vmatpush3.bf16.msra.mxu1 %v3821_v23 }
 0x35d   : > { %3048 = vmatprep.subr.bf16.mxu1 %v3507_v12 }
 0x3ae   : > { %v518_v1 = vpop.f32.mrb[4].mxu0 }
 0x3af   : > { %v3925_v2 = vpop.f32.mrb[5].mxu0  ;;  %v519_v9 = vadd.f32 %v518_v1, %v3848_v34 }
 0x422   : > { %v856_v19 = vpop.f32.mrb[10].mxu1 }
 0x423   : > { %v860_v21 = vadd.f32 %v856_v19, %v513_v18  ;;  %v2830_v22 = vpop.f32.mrb[11].mxu1  ;;  %v539_v18 = vadd.f32 %v3837_v28, %v3853_v42 }
 0x425   : > { %3220 = vtanh.f32 %v860_v21  ;;  %v2661_v37 = vmul.f32 -1.442695, %v860_v21 }
 0x42a   : > { %v933_v25 = vpop.f32.mrb[12].mxu1 }
 0x42b   : > { %v937_v27 = vadd.f32 %v933_v25, %v545_v24  ;;  %v2841_v30 = vpop.f32.mrb[13].mxu1 }
 0x42d   : > { %3222 = vtanh.f32 %v937_v27  ;;  %v2662_v38 = vmul.f32 -1.442695, %v937_v27 }
 0x42e   : > { %3224 = vpow2.f32 %v2661_v37 }
 0x42f   : > { %v3221_v31 = vpop.eup %3220  ;;  %3226 = vpow2.f32 %v2662_v38 }
 0x430   : > { %947 = vrot.lane.b32.xlu1 %v3221_v31, %s3509_s21 }
 0x437   : > { %v3223_v36 = vpop.eup %3222 }
 0x438   : > { %971 = vrot.lane.b32.xlu0 %v3223_v36, %s3509_s21  ;;  %v3225_v39 = vpop.eup %3224 }
 0x439   : > { %v941_v40 = vadd.f32 1.0, %v3225_v39  ;;  %v3227_v41 = vpop.eup %3226 }
 0x43a   : > { %v965_v43 = vadd.f32 1.0, %v3227_v41 }
 0x43b   : > { %3228 = vrcp.f32 %v941_v40 }
 0x43c   : > { %3230 = vrcp.f32 %v965_v43 }
 0x445   : > { %v3229_v33 = vpop.eup %3228 }
 0x446   : > { %v3231_v46 = vpop.eup %3230  ;;  %v945_v49 = vmul.f32 %v3229_v33, %v3860_v63 }
 0x447   : > { %v969_v52 = vmul.f32 %v3231_v46, %v3863_v3  ;;  %v3927_v3 = vpop.f32.mrb[6].mxu0 }
 0x448   : > { %v3929_v4 = vpop.f32.mrb[7].mxu0  ;;  %v525_v58 = vadd.f32 %v3927_v3, %v3848_v34 }
 0x449   : > { %v3931_v5 = vpop.f32.mrb[8].mxu0 }
 0x44a   : > { %v3933_v6 = vpop.f32.mrb[9].mxu0 }
 0x4a2   : > { %v948_v44 = vpop.permute.xlu1 %947 }
 0x4a3   : > { %v950_v45 = vmul.f32 %v3229_v33, %v948_v44 }
 0x4a5   : > { %952 = vrot.lane.b32.xlu1 %v950_v45, %s3509_s21 }
 0x4aa   : > { %v972_v47 = vpop.permute.xlu0 %971 }
 0x4ab   : > { %v974_v48 = vmul.f32 %v3231_v46, %v972_v47 }
 0x4ad   : > { %976 = vrot.lane.b32.xlu0 %v974_v48, %s3509_s21 }
 0x517   : > { %v953_v50 = vpop.permute.xlu1 %952 }
 0x518   : > { %v3901_v51 = vadd.f32 %v953_v50, %v945_v49 }
 0x51a   : > { %3232 = vtanh.f32 %v3901_v51 }
 0x51f   : > { %v977_v53 = vpop.permute.xlu0 %976 }
 0x520   : > { %v3905_v54 = vadd.f32 %v977_v53, %v969_v52 }
 0x522   : > { %3234 = vtanh.f32 %v3905_v54 }
 0x524   : > { %v3233_v56 = vpop.eup %3232 }
 0x525   : > { %958 = vrot.lane.b32.xlu1 %v3233_v56, %s3509_s21 }
 0x52c   : > { %v3235_v59 = vpop.eup %3234 }
 0x52d   : > { %982 = vrot.lane.b32.xlu0 %v3235_v59, %s3509_s21 }
 0x597   : > { %v959_v60 = vpop.permute.xlu1 %958 }
 0x598   : > { %v961_v61 = vmul.f32 %v3229_v33, %v959_v60 }
 0x59a   : > { %987 = vrot.lane.b32.xlu1 %v961_v61, %s3510_s23 }
 0x59f   : > { %v983_v62 = vpop.permute.xlu0 %982 }
 0x5a0   : > { %v3921_v63 = vmul.f32 %v3231_v46, %v983_v62  ;;  %v533_v62 = vadd.f32 %v3933_v6, %v3853_v42 }
 0x5a2   : > { %1075 = vrot.lane.b32.xlu0 %v3921_v63, %s3510_s23 }
 0x60c   : > { %v988_v7 = vpop.permute.xlu1 %987 }
 0x60d   : > { %991 = vst.msk [vmem:[#allocation3 + $0x8] sm:$0xff] %vm578_vm2, %v988_v7  ;;  %2851 = vmatmul.mubr.msk.f32.vlgmr.msra.gmra.mrb[10].mxu0 %vm578_vm2, %v988_v7 }
 0x60e   : > { %3044 = vmatpush3.bf16.msra.mxu0 %v3773_v10  ;;  %2872 = vmatprep.mubr.msk.f32.mxu0 %vm3508_vm1, %v3506_v0 }
 0x60f   : > { %3045 = vmatprep.subr.bf16.mxu0 %v3507_v12 }
 0x612   : > { %3047 = vmatpush3.bf16.msra.mxu0 %v3789_v16 }
 0x613   : > { %3054 = vmatprep.subr.bf16.mxu0 %v3507_v12 }
 0x614   : > { %v1076_v8 = vpop.permute.xlu0 %1075 }
 0x615   : > { %2862 = vmatmul.mubr.msk.f32.vlgmr.msra.gmra.mrb[14].mxu1 %vm578_vm2, %v1076_v8 }
 0x616   : > { %3050 = vmatpush3.bf16.msra.mxu1 %v3811_v20  ;;  %2883 = vmatprep.mubr.msk.f32.mxu1 %vm3508_vm1, %v3506_v0 }
 0x617   : > { %3051 = vmatprep.subr.bf16.mxu1 %v3507_v12 }
 0x61a   : > { %3053 = vmatpush3.bf16.msra.mxu1 %v3821_v23 }
 0x61b   : > { %3060 = vmatprep.subr.bf16.mxu1 %v3507_v12 }
 0x6e0   : > { %v1068_v13 = vpop.f32.mrb[10].mxu0 }
 0x6e1   : > { %v1072_v14 = vadd.f32 %v1068_v13, %v519_v9  ;;  %v2852_v15 = vpop.f32.mrb[11].mxu0 }
 0x6e3   : > { %3236 = vtanh.f32 %v1072_v14  ;;  %v2665_v27 = vmul.f32 -1.442695, %v1072_v14 }
 0x6e8   : > { %v1145_v19 = vpop.f32.mrb[14].mxu1 }
 0x6e9   : > { %v1149_v21 = vadd.f32 %v1145_v19, %v539_v18  ;;  %v2863_v22 = vpop.f32.mrb[15].mxu1 }
 0x6eb   : > { %3238 = vtanh.f32 %v1149_v21  ;;  %v2666_v30 = vmul.f32 -1.442695, %v1149_v21 }
 0x6ec   : > { %3240 = vpow2.f32 %v2665_v27 }
 0x6ed   : > { %v3237_v24 = vpop.eup %3236  ;;  %3242 = vpow2.f32 %v2666_v30 }
 0x6ee   : > { %1159 = vrot.lane.b32.xlu1 %v3237_v24, %s3509_s21 }
 0x6f5   : > { %v3239_v25 = vpop.eup %3238 }
 0x6f6   : > { %1183 = vrot.lane.b32.xlu0 %v3239_v25, %s3509_s21  ;;  %v3241_v31 = vpop.eup %3240 }
 0x6f7   : > { %v1153_v36 = vadd.f32 1.0, %v3241_v31  ;;  %v3243_v37 = vpop.eup %3242 }
 0x6f8   : > { %v1177_v38 = vadd.f32 1.0, %v3243_v37 }
 0x6f9   : > { %3244 = vrcp.f32 %v1153_v36 }
 0x6fa   : > { %3246 = vrcp.f32 %v1177_v38 }
 0x703   : > { %v3245_v28 = vpop.eup %3244 }
 0x704   : > { %v3247_v41 = vpop.eup %3246  ;;  %v1157_v44 = vmul.f32 %v3245_v28, %v3901_v51 }
 0x705   : > { %v1181_v47 = vmul.f32 %v3247_v41, %v3905_v54 }
 0x760   : > { %v1160_v39 = vpop.permute.xlu1 %1159 }
 0x761   : > { %v1162_v40 = vmul.f32 %v3245_v28, %v1160_v39 }
 0x763   : > { %1164 = vrot.lane.b32.xlu1 %v1162_v40, %s3509_s21 }
 0x768   : > { %v1184_v43 = vpop.permute.xlu0 %1183 }
 0x769   : > { %v1186_v33 = vmul.f32 %v3247_v41, %v1184_v43 }
 0x76b   : > { %1188 = vrot.lane.b32.xlu0 %v1186_v33, %s3509_s21 }
 0x7d5   : > { %v1165_v45 = vpop.permute.xlu1 %1164 }
 0x7d6   : > { %v3958_v46 = vadd.f32 %v1165_v45, %v1157_v44 }
 0x7d8   : > { %3248 = vtanh.f32 %v3958_v46 }
 0x7dd   : > { %v1189_v48 = vpop.permute.xlu0 %1188 }
 0x7de   : > { %v3962_v49 = vadd.f32 %v1189_v48, %v1181_v47  ;;  %v531_v48 = vadd.f32 %v3931_v5, %v3848_v34 }
 0x7e0   : > { %3250 = vtanh.f32 %v3962_v49 }
 0x7e2   : > { %v3249_v50 = vpop.eup %3248 }
 0x7e3   : > { %1170 = vrot.lane.b32.xlu1 %v3249_v50, %s3509_s21 }
 0x7ea   : > { %v3251_v52 = vpop.eup %3250 }
 0x7eb   : > { %1194 = vrot.lane.b32.xlu0 %v3251_v52, %s3509_s21 }
 0x855   : > { %v1171_v53 = vpop.permute.xlu1 %1170 }
 0x856   : > { %v1173_v51 = vmul.f32 %v3245_v28, %v1171_v53  ;;  %v527_v53 = vadd.f32 %v3929_v4, %v3853_v42 }
 0x858   : > { %1199 = vrot.lane.b32.xlu1 %v1173_v51, %s3510_s23 }
 0x85d   : > { %v1195_v55 = vpop.permute.xlu0 %1194 }
 0x85e   : > { %v3968_v56 = vmul.f32 %v3247_v41, %v1195_v55 }
 0x860   : > { %1287 = vrot.lane.b32.xlu0 %v3968_v56, %s3510_s23 }
 0x8ca   : > { %v1200_v54 = vpop.permute.xlu1 %1199 }
 0x8cb   : > { %1203 = vst.msk [vmem:[#allocation3 + $0x10] sm:$0xff] %vm578_vm2, %v1200_v54  ;;  %2873 = vmatmul.mubr.msk.f32.vlgmr.msra.gmra.mrb[12].mxu0 %vm578_vm2, %v1200_v54 }
 0x8cc   : > { %3056 = vmatpush3.bf16.msra.mxu0 %v3773_v10  ;;  %2894 = vmatprep.mubr.msk.f32.mxu0 %vm3508_vm1, %v3506_v0 }
 0x8cd   : > { %3057 = vmatprep.subr.bf16.mxu0 %v3507_v12 }
 0x8d0   : > { %3059 = vmatpush3.bf16.msra.mxu0 %v3789_v16 }
 0x8d1   : > { %3066 = vmatprep.subr.bf16.mxu0 %v3507_v12 }
 0x8d2   : > { %v1288_v57 = vpop.permute.xlu0 %1287 }
 0x8d3   : > { %2884 = vmatmul.mubr.msk.f32.vlgmr.msra.gmra.mrb[16].mxu1 %vm578_vm2, %v1288_v57 }
 0x8d4   : > { %3062 = vmatpush3.bf16.msra.mxu1 %v3811_v20  ;;  %2905 = vmatprep.mubr.msk.f32.mxu1 %vm3508_vm1, %v3506_v0 }
 0x8d5   : > { %3063 = vmatprep.subr.bf16.mxu1 %v3507_v12 }
 0x8d8   : > { %3065 = vmatpush3.bf16.msra.mxu1 %v3821_v23 }
 0x8d9   : > { %3072 = vmatprep.subr.bf16.mxu1 %v3507_v12 }
 0x99e   : > { %v1280_v59 = vpop.f32.mrb[12].mxu0 }
 0x99f   : > { %v1284_v60 = vadd.f32 %v1280_v59, %v525_v58  ;;  %v2874_v61 = vpop.f32.mrb[13].mxu0 }
 0x9a1   : > { %3252 = vtanh.f32 %v1284_v60  ;;  %v2669_v14 = vmul.f32 -1.442695, %v1284_v60 }
 0x9a6   : > { %v1357_v1 = vpop.f32.mrb[16].mxu1 }
 0x9a7   : > { %v1361_v7 = vadd.f32 %v1357_v1, %v533_v62  ;;  %v2885_v8 = vpop.f32.mrb[17].mxu1 }
 0x9a9   : > { %3254 = vtanh.f32 %v1361_v7  ;;  %v2670_v3 = vmul.f32 -1.442695, %v1361_v7 }
 0x9aa   : > { %3256 = vpow2.f32 %v2669_v14 }
 0x9ab   : > { %v3253_v9 = vpop.eup %3252  ;;  %3258 = vpow2.f32 %v2670_v3 }
 0x9ac   : > { %1371 = vrot.lane.b32.xlu1 %v3253_v9, %s3509_s21 }
 0x9b3   : > { %v3255_v13 = vpop.eup %3254 }
 0x9b4   : > { %1395 = vrot.lane.b32.xlu0 %v3255_v13, %s3509_s21  ;;  %v3257_v15 = vpop.eup %3256 }
 0x9b5   : > { %v1365_v18 = vadd.f32 1.0, %v3257_v15  ;;  %v3259_v19 = vpop.eup %3258 }
 0x9b6   : > { %v1389_v21 = vadd.f32 1.0, %v3259_v19 }
 0x9b7   : > { %3260 = vrcp.f32 %v1365_v18 }
 0x9b8   : > { %3262 = vrcp.f32 %v1389_v21 }
 0x9c1   : > { %v3261_v6 = vpop.eup %3260 }
 0x9c2   : > { %v3263_v25 = vpop.eup %3262  ;;  %v1369_v31 = vmul.f32 %v3261_v6, %v3958_v46 }
 0x9c3   : > { %v1393_v38 = vmul.f32 %v3263_v25, %v3962_v49 }
 0xa1e   : > { %v1372_v22 = vpop.permute.xlu1 %1371 }
 0xa1f   : > { %v1374_v24 = vmul.f32 %v3261_v6, %v1372_v22 }
 0xa21   : > { %1376 = vrot.lane.b32.xlu1 %v1374_v24, %s3509_s21 }
 0xa26   : > { %v1396_v27 = vpop.permute.xlu0 %1395 }
 0xa27   : > { %v1398_v30 = vmul.f32 %v3263_v25, %v1396_v27 }
 0xa29   : > { %1400 = vrot.lane.b32.xlu0 %v1398_v30, %s3509_s21 }
 0xa93   : > { %v1377_v36 = vpop.permute.xlu1 %1376 }
 0xa94   : > { %v3996_v37 = vadd.f32 %v1377_v36, %v1369_v31 }
 0xa96   : > { %3264 = vtanh.f32 %v3996_v37 }
 0xa9b   : > { %v1401_v28 = vpop.permute.xlu0 %1400 }
 0xa9c   : > { %v4000_v39 = vadd.f32 %v1401_v28, %v1393_v38  ;;  %v537_v38 = vadd.f32 %v3835_v26, %v3848_v34 }
 0xa9e   : > { %3266 = vtanh.f32 %v4000_v39 }
 0xaa0   : > { %v3265_v40 = vpop.eup %3264 }
 0xaa1   : > { %1382 = vrot.lane.b32.xlu1 %v3265_v40, %s3509_s21 }
 0xaa8   : > { %v3267_v41 = vpop.eup %3266 }
 0xaa9   : > { %1406 = vrot.lane.b32.xlu0 %v3267_v41, %s3509_s21  ;;  %v521_v41 = vadd.f32 %v3925_v2, %v3853_v42 }
 0xb13   : > { %v1383_v43 = vpop.permute.xlu1 %1382 }
 0xb14   : > { %v1385_v33 = vmul.f32 %v3261_v6, %v1383_v43 }
 0xb16   : > { %1411 = vrot.lane.b32.xlu1 %v1385_v33, %s3510_s23 }
 0xb1b   : > { %v1407_v44 = vpop.permute.xlu0 %1406 }
 0xb1c   : > { %v4006_v45 = vmul.f32 %v3263_v25, %v1407_v44 }
 0xb1e   : > { %1497 = vrot.lane.b32.xlu0 %v4006_v45, %s3510_s23 }
 0xb88   : > { %v1412_v46 = vpop.permute.xlu1 %1411 }
 0xb89   : > { %1415 = vst.msk [vmem:[#allocation3 + $0x18] sm:$0xff] %vm578_vm2, %v1412_v46  ;;  %2895 = vmatmul.mubr.msk.f32.vlgmr.msra.gmra.mrb[14].mxu0 %vm578_vm2, %v1412_v46 }
 0xb8a   : > { %3068 = vmatpush3.bf16.msra.mxu0 %v3773_v10  ;;  %2916 = vmatprep.mubr.msk.f32.mxu0 %vm3508_vm1, %v3506_v0 }
 0xb8b   : > { %3069 = vmatprep.subr.bf16.mxu0 %v3507_v12 }
 0xb8e   : > { %3071 = vmatpush3.bf16.msra.mxu0 %v3789_v16 }
 0xb8f   : > { %3078 = vmatprep.subr.bf16.mxu0 %v3507_v12 }
 0xb90   : > { %v1498_v47 = vpop.permute.xlu0 %1497 }
 0xb91   : > { %2906 = vmatmul.mubr.msk.f32.vlgmr.msra.gmra.mrb[18].mxu1 %vm578_vm2, %v1498_v47 }
 0xb92   : > { %3074 = vmatpush3.bf16.msra.mxu1 %v3811_v20  ;;  %2927 = vmatprep.mubr.msk.f32.mxu1 %vm3508_vm1, %v3506_v0 }
 0xb93   : > { %3075 = vmatprep.subr.bf16.mxu1 %v3507_v12 }
 0xb96   : > { %3077 = vmatpush3.bf16.msra.mxu1 %v3821_v23 }
 0xb97   : > { %3084 = vmatprep.subr.bf16.mxu1 %v3507_v12 }
 0xc5c   : > { %v1491_v49 = vpop.f32.mrb[14].mxu0 }
 0xc5d   : > { %v1495_v50 = vadd.f32 %v1491_v49, %v531_v48  ;;  %v2896_v52 = vpop.f32.mrb[15].mxu0 }
 0xc5f   : > { %3268 = vtanh.f32 %v1495_v50  ;;  %v2673_v59 = vmul.f32 -1.442695, %v1495_v50 }
 0xc64   : > { %v1567_v51 = vpop.f32.mrb[18].mxu1 }
 0xc65   : > { %v1571_v55 = vadd.f32 %v1567_v51, %v527_v53  ;;  %v2907_v54 = vpop.f32.mrb[19].mxu1 }
 0xc67   : > { %3270 = vtanh.f32 %v1571_v55  ;;  %v2674_v5 = vmul.f32 -1.442695, %v1571_v55 }
 0xc68   : > { %3272 = vpow2.f32 %v2673_v59 }
 0xc69   : > { %v3269_v57 = vpop.eup %3268  ;;  %3274 = vpow2.f32 %v2674_v5 }
 0xc6a   : > { %1581 = vrot.lane.b32.xlu1 %v3269_v57, %s3509_s21 }
 0xc71   : > { %v3271_v58 = vpop.eup %3270 }
 0xc72   : > { %1605 = vrot.lane.b32.xlu0 %v3271_v58, %s3509_s21  ;;  %v3273_v60 = vpop.eup %3272 }
 0xc73   : > { %v1575_v61 = vadd.f32 1.0, %v3273_v60  ;;  %v3275_v62 = vpop.eup %3274 }
 0xc74   : > { %v1599_v1 = vadd.f32 1.0, %v3275_v62 }
 0xc75   : > { %3276 = vrcp.f32 %v1575_v61 }
 0xc76   : > { %3278 = vrcp.f32 %v1599_v1 }
 0xc7f   : > { %v3277_v4 = vpop.eup %3276 }
 0xc80   : > { %v3279_v9 = vpop.eup %3278  ;;  %v1579_v3 = vmul.f32 %v3277_v4, %v3996_v37 }
 0xc81   : > { %v1603_v19 = vmul.f32 %v3279_v9, %v4000_v39 }
 0xcdc   : > { %v1582_v7 = vpop.permute.xlu1 %1581 }
 0xcdd   : > { %v1584_v8 = vmul.f32 %v3277_v4, %v1582_v7 }
 0xcdf   : > { %1586 = vrot.lane.b32.xlu1 %v1584_v8, %s3509_s21 }
 0xce4   : > { %v1606_v13 = vpop.permute.xlu0 %1605 }
 0xce5   : > { %v1608_v14 = vmul.f32 %v3279_v9, %v1606_v13 }
 0xce7   : > { %1610 = vrot.lane.b32.xlu0 %v1608_v14, %s3509_s21 }
 0xd51   : > { %v1587_v15 = vpop.permute.xlu1 %1586 }
 0xd52   : > { %v1589_v18 = vadd.f32 %v1587_v15, %v1579_v3 }
 0xd54   : > { %3280 = vtanh.f32 %v1589_v18 }
 0xd59   : > { %v1611_v21 = vpop.permute.xlu0 %1610 }
 0xd5a   : > { %v1613_v6 = vadd.f32 %v1611_v21, %v1603_v19 }
 0xd5c   : > { %3282 = vtanh.f32 %v1613_v6 }
 0xd5e   : > { %v3281_v22 = vpop.eup %3280 }
 0xd5f   : > { %1592 = vrot.lane.b32.xlu1 %v3281_v22, %s3509_s21 }
 0xd66   : > { %v3283_v24 = vpop.eup %3282 }
 0xd67   : > { %1616 = vrot.lane.b32.xlu0 %v3283_v24, %s3509_s21 }
 0xdd1   : > { %v1593_v25 = vpop.permute.xlu1 %1592 }
 0xdd2   : > { %v1595_v27 = vmul.f32 %v3277_v4, %v1593_v25 }
 0xdd4   : > { %1621 = vrot.lane.b32.xlu1 %v1595_v27, %s3510_s23 }
 0xdd9   : > { %v1617_v30 = vpop.permute.xlu0 %1616 }
 0xdda   : > { %v4038_v31 = vmul.f32 %v3279_v9, %v1617_v30 }
 0xddc   : > { %1705 = vrot.lane.b32.xlu0 %v4038_v31, %s3510_s23 }
 0xe46   : > { %v4042_v36 = vpop.permute.xlu1 %1621 }
 0xe47   : > { %2917 = vmatmul.mubr.msk.f32.vlgmr.msra.gmra.mrb[16].mxu0 %vm578_vm2, %v4042_v36 }
 0xe48   : > { %3080 = vmatpush3.bf16.msra.mxu0 %v3773_v10  ;;  %2938 = vmatprep.mubr.msk.f32.mxu0 %vm3508_vm1, %v3506_v0 }
 0xe49   : > { %3081 = vmatprep.subr.bf16.mxu0 %v3507_v12 }
 0xe4c   : > { %3083 = vmatpush3.bf16.msra.mxu0 %v3789_v16 }
 0xe4d   : > { %3090 = vmatprep.subr.bf16.mxu0 %v3507_v12 }
 0xe4e   : > { %v1706_v37 = vpop.permute.xlu0 %1705 }
 0xe4f   : > { %2928 = vmatmul.mubr.msk.f32.vlgmr.msra.gmra.mrb[20].mxu1 %vm578_vm2, %v1706_v37 }
 0xe50   : > { %3086 = vmatpush3.bf16.msra.mxu1 %v3811_v20  ;;  %2949 = vmatprep.mubr.msk.f32.mxu1 %vm3508_vm1, %v3506_v0 }
 0xe51   : > { %3087 = vmatprep.subr.bf16.mxu1 %v3507_v12 }
 0xe54   : > { %3089 = vmatpush3.bf16.msra.mxu1 %v3821_v23 }
 0xe55   : > { %3096 = vmatprep.subr.bf16.mxu1 %v3507_v12 }
 0xf1a   : > { %v1699_v28 = vpop.f32.mrb[16].mxu0 }
 0xf1b   : > { %v1703_v39 = vadd.f32 %v1699_v28, %v537_v38  ;;  %v2918_v40 = vpop.f32.mrb[17].mxu0 }
 0xf1d   : > { %3284 = vtanh.f32 %v1703_v39  ;;  %v2677_v48 = vmul.f32 -1.442695, %v1703_v39 }
 0xf22   : > { %v1775_v43 = vpop.f32.mrb[20].mxu1 }
 0xf23   : > { %v1779_v33 = vadd.f32 %v1775_v43, %v521_v41  ;;  %v2929_v44 = vpop.f32.mrb[21].mxu1 }
 0xf25   : > { %3286 = vtanh.f32 %v1779_v33  ;;  %v2678_v26 = vmul.f32 -1.442695, %v1779_v33 }
 0xf26   : > { %3288 = vpow2.f32 %v2677_v48 }
 0xf27   : > { %v3285_v46 = vpop.eup %3284  ;;  %3290 = vpow2.f32 %v2678_v26 }
 0xf28   : > { %1789 = vrot.lane.b32.xlu1 %v3285_v46, %s3509_s21 }
 0xf2f   : > { %v3287_v47 = vpop.eup %3286 }
 0xf30   : > { %1813 = vrot.lane.b32.xlu0 %v3287_v47, %s3509_s21  ;;  %v3289_v49 = vpop.eup %3288 }
 0xf31   : > { %v1783_v50 = vadd.f32 1.0, %v3289_v49  ;;  %v3291_v52 = vpop.eup %3290 }
 0xf32   : > { %v1807_v53 = vadd.f32 1.0, %v3291_v52 }
 0xf33   : > { %3292 = vrcp.f32 %v1783_v50 }
 0xf34   : > { %3294 = vrcp.f32 %v1807_v53 }
 0xf3d   : > { %v3293_v2 = vpop.eup %3292 }
 0xf3e   : > { %v3295_v54 = vpop.eup %3294  ;;  %v1787_v59 = vmul.f32 %v3293_v2, %v1589_v18 }
 0xf3f   : > { %v1811_v61 = vmul.f32 %v3295_v54, %v1613_v6 }
 0xf9a   : > { %v1790_v51 = vpop.permute.xlu1 %1789 }
 0xf9b   : > { %v1792_v55 = vmul.f32 %v3293_v2, %v1790_v51 }
 0xf9d   : > { %1794 = vrot.lane.b32.xlu1 %v1792_v55, %s3509_s21  ;;  %v549_v55 = vadd.f32 %v3850_v35, %v3848_v34 }
 0xfa2   : > { %v1814_v57 = vpop.permute.xlu0 %1813 }
 0xfa3   : > { %v1816_v58 = vmul.f32 %v3295_v54, %v1814_v57 }
 0xfa5   : > { %1818 = vrot.lane.b32.xlu0 %v1816_v58, %s3509_s21 }
0x100f   : > { %v1795_v5 = vpop.permute.xlu1 %1794 }
0x1010   : > { %v1797_v60 = vadd.f32 %v1795_v5, %v1787_v59  ;;  %v509_v59 = vadd.f32 %v3839_v29, %v3853_v42 }
0x1012   : > { %3296 = vtanh.f32 %v1797_v60 }
0x1017   : > { %v1819_v62 = vpop.permute.xlu0 %1818 }
0x1018   : > { %v1821_v1 = vadd.f32 %v1819_v62, %v1811_v61 }
0x101a   : > { %3298 = vtanh.f32 %v1821_v1 }
0x101c   : > { %v3297_v4 = vpop.eup %3296 }
0x101d   : > { %1800 = vrot.lane.b32.xlu1 %v3297_v4, %s3509_s21 }
0x1024   : > { %v3299_v7 = vpop.eup %3298 }
0x1025   : > { %1824 = vrot.lane.b32.xlu0 %v3299_v7, %s3509_s21 }
0x108f   : > { %v1801_v8 = vpop.permute.xlu1 %1800 }
0x1090   : > { %v1803_v9 = vmul.f32 %v3293_v2, %v1801_v8 }
0x1092   : > { %1829 = vrot.lane.b32.xlu1 %v1803_v9, %s3510_s23 }
0x1097   : > { %v1825_v13 = vpop.permute.xlu0 %1824 }
0x1098   : > { %v4070_v14 = vmul.f32 %v3295_v54, %v1825_v13 }
0x109a   : > { %1913 = vrot.lane.b32.xlu0 %v4070_v14, %s3510_s23 }
0x1104   : > { %v4074_v3 = vpop.permute.xlu1 %1829 }
0x1105   : > { %2939 = vmatmul.mubr.msk.f32.vlgmr.msra.gmra.mrb[18].mxu0 %vm578_vm2, %v4074_v3 }
0x1106   : > { %3092 = vmatpush3.bf16.msra.mxu0 %v3773_v10  ;;  %2960 = vmatprep.mubr.msk.f32.mxu0 %vm3508_vm1, %v3506_v0  ;;  %v543_v10 = vadd.f32 %v3844_v32, %v3848_v34 }
0x1107   : > { %3093 = vmatprep.subr.bf16.mxu0 %v3507_v12 }
0x110a   : > { %3095 = vmatpush3.bf16.msra.mxu0 %v3789_v16  ;;  %v515_v16 = vadd.f32 %v3891_v17, %v3853_v42 }
0x110c   : > { %v1914_v15 = vpop.permute.xlu0 %1913 }
0x110d   : > { %2950 = vmatmul.mubr.msk.f32.vlgmr.msra.gmra.mrb[22].mxu1 %vm578_vm2, %v1914_v15 }
0x110e   : > { %3098 = vmatpush3.bf16.msra.mxu1 %v3811_v20  ;;  %2971 = vmatprep.mubr.msk.f32.mxu1 %vm3508_vm1, %v3506_v0 }
0x110f   : > { %3099 = vmatprep.subr.bf16.mxu1 %v3507_v12 }
0x1112   : > { %3101 = vmatpush3.bf16.msra.mxu1 %v3821_v23 }
0x11d8   : > { %v1907_v18 = vpop.f32.mrb[18].mxu0 }
0x11d9   : > { %v1911_v19 = vadd.f32 %v1907_v18, %v543_v10  ;;  %v2940_v21 = vpop.f32.mrb[19].mxu0 }
0x11db   : > { %3300 = vtanh.f32 %v1911_v19  ;;  %v2681_v12 = vmul.f32 -1.442695, %v1911_v19 }
0x11e0   : > { %v1983_v6 = vpop.f32.mrb[22].mxu1 }
0x11e1   : > { %v1987_v22 = vadd.f32 %v1983_v6, %v515_v16  ;;  %v2951_v20 = vpop.f32.mrb[23].mxu1 }
0x11e3   : > { %3302 = vtanh.f32 %v1987_v22  ;;  %v2682_v23 = vmul.f32 -1.442695, %v1987_v22 }
0x11e4   : > { %3304 = vpow2.f32 %v2681_v12  ;;  %v2262_v12 = vld [vmem:[%s4233_s5] sm:$0xff] }
0x11e5   : > { %v3301_v24 = vpop.eup %3300  ;;  %3306 = vpow2.f32 %v2682_v23  ;;  %v2263_v23 = vld [vmem:[%s4233_s5 + $0x8] sm:$0xff] }
0x11e6   : > { %1997 = vrot.lane.b32.xlu1 %v3301_v24, %s3509_s21 }
0x11ed   : > { %v3303_v0 = vpop.eup %3302 }
0x11ee   : > { %2021 = vrot.lane.b32.xlu0 %v3303_v0, %s3509_s21  ;;  %v3305_v32 = vpop.eup %3304 }
0x11ef   : > { %v1991_v25 = vadd.f32 1.0, %v3305_v32  ;;  %v3307_v27 = vpop.eup %3306  ;;  %v2264_v32 = vld [vmem:[%s4233_s5 + $0x10] sm:$0xff] }
0x11f0   : > { %v2015_v30 = vadd.f32 1.0, %v3307_v27 }
0x11f1   : > { %3308 = vrcp.f32 %v1991_v25  ;;  %v3102_v25 = vpack.c.bf16 %v2263_v23, %v2262_v12 }
0x11f2   : > { %3310 = vrcp.f32 %v2015_v30  ;;  %v2267_v30 = vld [vmem:[%s4233_s5 + $0x28] sm:$0xff] }
0x11f3   : > { %3103 = vmatprep.subr.bf16.mxu0 %v3102_v25 }
0x11fb   : > { %v3309_v17 = vpop.eup %3308 }
0x11fc   : > { %v3311_v28 = vpop.eup %3310  ;;  %v1995_v41 = vmul.f32 %v3309_v17, %v1797_v60 }
0x11fd   : > { %v2019_v44 = vmul.f32 %v3311_v28, %v1821_v1 }
0x1258   : > { %v1998_v37 = vpop.permute.xlu1 %1997 }
0x1259   : > { %v2000_v38 = vmul.f32 %v3309_v17, %v1998_v37 }
0x125b   : > { %2002 = vrot.lane.b32.xlu1 %v2000_v38, %s3509_s21  ;;  %v2269_v38 = vld [vmem:[%s4233_s5 + $0x38] sm:$0xff] }
0x1260   : > { %v2022_v39 = vpop.permute.xlu0 %2021 }
0x1261   : > { %v2024_v40 = vmul.f32 %v3311_v28, %v2022_v39 }
0x1263   : > { %2026 = vrot.lane.b32.xlu0 %v2024_v40, %s3509_s21 }
0x12cd   : > { %v2003_v43 = vpop.permute.xlu1 %2002 }
0x12ce   : > { %v2005_v33 = vadd.f32 %v2003_v43, %v1995_v41 }
0x12d0   : > { %3312 = vtanh.f32 %v2005_v33 }
0x12d5   : > { %v2027_v46 = vpop.permute.xlu0 %2026 }
0x12d6   : > { %v2029_v47 = vadd.f32 %v2027_v46, %v2019_v44 }
0x12d8   : > { %3314 = vtanh.f32 %v2029_v47 }
0x12da   : > { %v3313_v48 = vpop.eup %3312 }
0x12db   : > { %2008 = vrot.lane.b32.xlu1 %v3313_v48, %s3509_s21 }
0x12e2   : > { %v3315_v26 = vpop.eup %3314 }
0x12e3   : > { %2032 = vrot.lane.b32.xlu0 %v3315_v26, %s3509_s21 }
0x134d   : > { %v2009_v49 = vpop.permute.xlu1 %2008 }
0x134e   : > { %v2011_v50 = vmul.f32 %v3309_v17, %v2009_v49 }
0x1350   : > { %2037 = vrot.lane.b32.xlu1 %v2011_v50, %s3510_s23 }
0x1355   : > { %v2033_v52 = vpop.permute.xlu0 %2032 }
0x1356   : > { %v2035_v53 = vmul.f32 %v3311_v28, %v2033_v52 }
0x1358   : > { %2121 = vrot.lane.b32.xlu0 %v2035_v53, %s3510_s23 }
0x13c2   : > { %v4101_v2 = vpop.permute.xlu1 %2037 }
0x13c3   : > { %2961 = vmatmul.mubr.msk.f32.vlgmr.msra.gmra.mrb[20].mxu0 %vm578_vm2, %v4101_v2 }
0x13c4   : > { %3105 = vmatpush3.bf16.msra.mxu0 %v3102_v25 }
0x13ca   : > { %v2122_v51 = vpop.permute.xlu0 %2121 }
0x13cb   : > { %2972 = vmatmul.mubr.msk.f32.vlgmr.msra.gmra.mrb[24].mxu1 %vm578_vm2, %v2122_v51 }
0x1496   : > { %v2115_v54 = vpop.f32.mrb[20].mxu0 }
0x1497   : > { %v2119_v57 = vadd.f32 %v2115_v54, %v549_v55  ;;  %v2962_v58 = vpop.f32.mrb[21].mxu0  ;;  %v2687_v55 = vld [vmem:[#allocation6] ss:$0 sm:$0xff] }
0x1499   : > { %3316 = vtanh.f32 %v2119_v57  ;;  %v2685_v4 = vmul.f32 -1.442695, %v2119_v57 }
0x149e   : > { %v2191_v5 = vpop.f32.mrb[24].mxu1 }
0x149f   : > { %v2195_v60 = vadd.f32 %v2191_v5, %v509_v59  ;;  %v2973_v61 = vpop.f32.mrb[25].mxu1 }
0x14a1   : > { %3318 = vtanh.f32 %v2195_v60  ;;  %v2686_v34 = vmul.f32 -1.442695, %v2195_v60 }
0x14a2   : > { %3320 = vpow2.f32 %v2685_v4 }
0x14a3   : > { %v3317_v62 = vpop.eup %3316  ;;  %3322 = vpow2.f32 %v2686_v34 }
0x14a4   : > { %2205 = vrot.lane.b32.xlu1 %v3317_v62, %s3509_s21 }
0x14ab   : > { %v3319_v1 = vpop.eup %3318 }
0x14ac   : > { %2229 = vrot.lane.b32.xlu0 %v3319_v1, %s3509_s21  ;;  %v3321_v35 = vpop.eup %3320 }
0x14ad   : > { %v2199_v7 = vadd.f32 1.0, %v3321_v35  ;;  %v3323_v8 = vpop.eup %3322 }
0x14ae   : > { %v2223_v9 = vadd.f32 1.0, %v3323_v8 }
0x14af   : > { %3324 = vrcp.f32 %v2199_v7 }
0x14b0   : > { %3326 = vrcp.f32 %v2223_v9 }
0x14b9   : > { %v3325_v29 = vpop.eup %3324 }
0x14ba   : > { %v3327_v15 = vpop.eup %3326  ;;  %v2203_v19 = vmul.f32 %v3325_v29, %v2005_v33 }
0x14bb   : > { %v2227_v6 = vmul.f32 %v3327_v15, %v2029_v47 }
0x1516   : > { %v2206_v42 = vpop.permute.xlu1 %2205 }
0x1517   : > { %v2208_v13 = vmul.f32 %v3325_v29, %v2206_v42 }
0x1519   : > { %2210 = vrot.lane.b32.xlu1 %v2208_v13, %s3509_s21 }
0x151e   : > { %v2230_v10 = vpop.permute.xlu0 %2229 }
0x151f   : > { %v2232_v18 = vmul.f32 %v3327_v15, %v2230_v10 }
0x1521   : > { %2234 = vrot.lane.b32.xlu0 %v2232_v18, %s3509_s21 }
0x158b   : > { %v2211_v21 = vpop.permute.xlu1 %2210 }
0x158c   : > { %v2213_v16 = vadd.f32 %v2211_v21, %v2203_v19 }
0x158e   : > { %3328 = vtanh.f32 %v2213_v16 }
0x1593   : > { %v2235_v22 = vpop.permute.xlu0 %2234 }
0x1594   : > { %v2237_v20 = vadd.f32 %v2235_v22, %v2227_v6 }
0x1596   : > { %3330 = vtanh.f32 %v2237_v20 }
0x1598   : > { %v3329_v24 = vpop.eup %3328 }
0x1599   : > { %2216 = vrot.lane.b32.xlu1 %v3329_v24, %s3509_s21 }
0x159d   : > { %2042 = vrot.lane.b32.xlu1 %v2035_v53, %s3511_s20 }
0x15a0   : > { %v3331_v0 = vpop.eup %3330 }
0x15a1   : > { %2240 = vrot.lane.b32.xlu0 %v3331_v0, %s3509_s21  ;;  %1626 = vrot.lane.b32.xlu1 %v4038_v31, %s3511_s20  ;;  %v2265_v31 = vld [vmem:[%s4233_s5 + $0x18] sm:$0xff] }
0x15a2   : > { %v3106_v27 = vpack.c.bf16 %v2265_v31, %v2264_v32 }
0x15a4   : > { %3107 = vmatprep.subr.bf16.mxu0 %v3106_v27 }
0x15a5   : > { %1205 = vrot.lane.b32.xlu1 %v3968_v56, %s3511_s20  ;;  %3109 = vmatpush3.bf16.msra.mxu0 %v3106_v27  ;;  %v2266_v56 = vld [vmem:[%s4233_s5 + $0x20] sm:$0xff] }
0x15a6   : > { %v3110_v17 = vpack.c.bf16 %v2267_v30, %v2266_v56 }
0x15a8   : > { %3111 = vmatprep.subr.bf16.mxu0 %v3110_v17 }
0x15a9   : > { %780 = vrot.lane.b32.xlu1 %v3872_v11, %s3511_s20  ;;  %3113 = vmatpush3.bf16.msra.mxu0 %v3110_v17  ;;  %v2268_v11 = vld [vmem:[%s4233_s5 + $0x30] sm:$0xff] }
0x15aa   : > { %v3114_v28 = vpack.c.bf16 %v2269_v38, %v2268_v11 }
0x15ac   : > { %3115 = vmatprep.subr.bf16.mxu0 %v3114_v28 }
0x15ad   : > { %3117 = vmatpush3.bf16.msra.mxu0 %v3114_v28 }
0x160b   : > { %v2217_v37 = vpop.permute.xlu1 %2216 }
0x160c   : > { %v2219_v46 = vmul.f32 %v3325_v29, %v2217_v37 }
0x160f   : > { %v2043_v39 = vpop.permute.xlu1 %2042 }
0x1610   : > { %2045 = vst.msk [vmem:[#allocation3 + $0x8] sm:$0xff] %vm784_vm3, %v2043_v39 }
0x1613   : > { %v2241_v40 = vpop.permute.xlu0 %2240  ;;  %v1627_v41 = vpop.permute.xlu1 %1626 }
0x1614   : > { %v2243_v43 = vmul.f32 %v3327_v15, %v2241_v40  ;;  %1629 = vst.msk [vmem:[#allocation3 + $0x18] sm:$0xff] %vm784_vm3, %v1627_v41 }
0x1616   : > { %2250 = vrot.lane.b32.xlu0 %v2243_v43, %s3511_s20 }
0x1617   : > { %v1206_v33 = vpop.permute.xlu1 %1205 }
0x1618   : > { %1209 = vst.msk [vmem:[#allocation3 + $0x28] sm:$0xff] %vm784_vm3, %v1206_v33 }
0x1619   : > { %1832 = vst.msk [vmem:[#allocation3 + $0x28] sm:$0xff] %vm578_vm2, %v4074_v3 }
0x161a   : > { %1834 = vrot.lane.b32.xlu0 %v4070_v14, %s3511_s20 }
0x161b   : > { %v781_v44 = vpop.permute.xlu1 %780  ;;  %v2257_v49 = vld [vmem:[#allocation3 + $0x18] sm:$0xff] }
0x161c   : > { %785 = vst.msk [vmem:[#allocation3 + $0x38] sm:$0xff] %vm784_vm3, %v781_v44 }
0x161e   : > { %1417 = vrot.lane.b32.xlu0 %v4006_v45, %s3511_s20  ;;  %v2255_v45 = vld [vmem:[#allocation3 + $0x8] sm:$0xff] }
0x1622   : > { %993 = vrot.lane.b32.xlu0 %v3921_v63, %s3511_s20 }
0x1626   : > { %2245 = vrot.lane.b32.xlu0 %v2219_v46, %s3510_s23 }
0x1688   : > { %v2251_v47 = vpop.permute.xlu0 %2250 }
0x1689   : > { %2253 = vst.msk [vmem:[#allocation3] sm:$0xff] %vm784_vm3, %v2251_v47 }
0x168c   : > { %v1835_v48 = vpop.permute.xlu0 %1834 }
0x168d   : > { %1837 = vst.msk [vmem:[#allocation3 + $0x10] sm:$0xff] %vm784_vm3, %v1835_v48 }
0x1690   : > { %v1418_v14 = vpop.permute.xlu0 %1417  ;;  %v2254_v3 = vld [vmem:[#allocation3] sm:$0xff] }
0x1691   : > { %1421 = vst.msk [vmem:[#allocation3 + $0x20] sm:$0xff] %vm784_vm3, %v1418_v14  ;;  %2990 = vmatprep.mubr.msk.f32.mxu0 %vm2277_vm4, %v2254_v3 }
0x1692   : > { %1624 = vst.msk [vmem:[#allocation3 + $0x20] sm:$0xff] %vm578_vm2, %v4042_v36  ;;  %2991 = vmatmul.mubr.msk.f32.vlgmr.msra.gmra.mrb[22].mxu0 %vm2277_vm4, %v2255_v45  ;;  %v2259_v36 = vld [vmem:[#allocation3 + $0x28] sm:$0xff] }
0x1694   : > { %v994_v63 = vpop.permute.xlu0 %993  ;;  %v2256_v26 = vld [vmem:[#allocation3 + $0x10] sm:$0xff] }
0x1695   : > { %997 = vst.msk [vmem:[#allocation3 + $0x30] sm:$0xff] %vm784_vm3, %v994_v63  ;;  %2993 = vmatprep.mubr.msk.f32.mxu0 %vm2277_vm4, %v2256_v26 }
0x1696   : > { %2040 = vst.msk [vmem:[#allocation3 + $0x30] sm:$0xff] %vm578_vm2, %v4101_v2  ;;  %2994 = vmatmul.mubr.msk.f32.gmra.mrb[24].mxu0 %vm2277_vm4, %v2257_v49 }
0x1698   : > { %v2246_v50 = vpop.permute.xlu0 %2245 }
0x1699   : > { %2248 = vst.msk [vmem:[#allocation3 + $0x38] sm:$0xff] %vm578_vm2, %v2246_v50  ;;  %v2258_v52 = vld [vmem:[#allocation3 + $0x20] sm:$0xff] }
0x169a   : > { %2996 = vmatprep.mubr.msk.f32.mxu0 %vm2277_vm4, %v2258_v52 }
0x169b   : > { %2997 = vmatmul.mubr.msk.f32.gmra.mrb[26].mxu0 %vm2277_vm4, %v2259_v36 }
0x169d   : > { %v2260_v53 = vld [vmem:[#allocation3 + $0x30] sm:$0xff] }
0x169e   : > { %2999 = vmatprep.mubr.msk.f32.mxu0 %vm2277_vm4, %v2260_v53 }
0x16a0   : > { %v2261_v51 = vld [vmem:[#allocation3 + $0x38] sm:$0xff] }
0x16a1   : > { %3000 = vmatmul.mubr.msk.f32.gmra.mrb[28].mxu0 %vm2277_vm4, %v2261_v51 }
0x1765   : > { %v2992_v54 = vpop.f32.mrb[22].mxu0 }
0x1766   : > { %v2374_v2 = vadd.f32 %v2992_v54, %v2687_v55  ;;  %v2368_v57 = vpop.f32.mrb[23].mxu0 }
0x1767   : > { %v2369_v58 = vadd.f32 %v2687_v55, %v2368_v57 }
0x1768   : > { %v2408_v59 = vsel %vm415_vm0, %v2374_v2, 0.0 }
0x1769   : > { %v2407_v5 = vsel %vm415_vm0, %v2369_v58, 0.0  ;;  %v2995_v60 = vpop.f32.mrb[24].mxu0 }
0x176a   : > { %v2378_v61 = vpop.f32.mrb[25].mxu0  ;;  %v2384_v62 = vadd.f32 %v2995_v60, %v2687_v55  ;;  %v2409_v4 = vadd.f32 %v2408_v59, %v2407_v5 }
0x176b   : > { %v2379_v1 = vadd.f32 %v2687_v55, %v2378_v61 }
0x176c   : > { %v2412_v8 = vsel %vm415_vm0, %v2384_v62, 0.0 }
0x176d   : > { %v2410_v34 = vsel %vm415_vm0, %v2379_v1, 0.0 }
0x176e   : > { %v2411_v35 = vadd.f32 %v2410_v34, %v2409_v4  ;;  %v2998_v7 = vpop.f32.mrb[26].mxu0 }
0x176f   : > { %v2388_v9 = vpop.f32.mrb[27].mxu0  ;;  %v2394_v13 = vadd.f32 %v2998_v7, %v2687_v55 }
0x1770   : > { %v2389_v29 = vadd.f32 %v2687_v55, %v2388_v9  ;;  %v2413_v42 = vadd.f32 %v2412_v8, %v2411_v35 }
0x1771   : > { %v2416_v21 = vsel %vm415_vm0, %v2394_v13, 0.0 }
0x1772   : > { %v2414_v15 = vsel %vm415_vm0, %v2389_v29, 0.0 }
0x1773   : > { %v2415_v10 = vadd.f32 %v2414_v15, %v2413_v42 }
0x1774   : > { %v3001_v18 = vpop.f32.mrb[28].mxu0 }
0x1775   : > { %v2398_v19 = vpop.f32.mrb[29].mxu0  ;;  %v2404_v16 = vadd.f32 %v3001_v18, %v2687_v55  ;;  %v2417_v22 = vadd.f32 %v2416_v21, %v2415_v10 }
0x1776   : > { %v2399_v6 = vadd.f32 %v2687_v55, %v2398_v19 }
0x1777   : > { %v2420_v0 = vsel %vm415_vm0, %v2404_v16, 0.0 }
0x1778   : > { %v2418_v20 = vsel %vm415_vm0, %v2399_v6, 0.0 }
0x1779   : > { %v2419_v24 = vadd.f32 %v2418_v20, %v2417_v22 }
0x177b   : > { %v2421_v12 = vadd.f32 %v2420_v0, %v2419_v24 }
0x177d   : > { %2422 = vadd.xlane.f32.xlu1 %v2421_v12 }
0x180a   : > { %v2423_v23 = vpop.xlane.xlu1 %2422 }
0x180b   : > { %v2424_v32 = vrot.slane %v2423_v23, 4 }
0x180d   : > { %v2425_v25 = vadd.f32 %v2424_v32, %v2423_v23 }
0x180f   : > { %v2426_v31 = vrot.slane %v2425_v25, 2 }
0x1811   : > { %v2427_v27 = vadd.f32 %v2426_v31, %v2425_v25 }
0x1813   : > { %v2428_v56 = vrot.slane %v2427_v27, 1 }
0x1815   : > { %v2429_v30 = vadd.f32 %v2428_v56, %v2427_v27 }
0x1817   : > { %3120 = vpush %v2429_v30 }
0x1848   : > { %s3121_s23 = spop %3120 }
0x1849   : > { %s2433_s20 = smul.f32 0.0009765625, %s3121_s23 }
0x184b   : > { %v2434_v17 = vstv %s2433_s20 }
0x184c   : > { %v2435_v37 = vsub.f32 %v2369_v58, %v2434_v17  ;;  %v2436_v11 = vsub.f32 %v2374_v2, %v2434_v17  ;;  %v2437_v38 = vsub.f32 %v2379_v1, %v2434_v17  ;;  %v2438_v28 = vsub.f32 %v2384_v62, %v2434_v17 }
0x184d   : > { %v2439_v39 = vsub.f32 %v2389_v29, %v2434_v17  ;;  %v2440_v33 = vsub.f32 %v2394_v13, %v2434_v17  ;;  %v2441_v14 = vsub.f32 %v2399_v6, %v2434_v17  ;;  %v2442_v26 = vsub.f32 %v2404_v16, %v2434_v17  ;;  %v2696_v29 = vld [vmem:[#allocation8] ss:$0 sm:$0xff]  ;;  %v2697_v6 = vld [vmem:[#allocation9] ss:$0 sm:$0xff] }
0x184e   : > { %v2443_v40 = vmul.f32 %v2435_v37, %v2435_v37  ;;  %v2444_v41 = vmul.f32 %v2436_v11, %v2436_v11  ;;  %v2445_v43 = vmul.f32 %v2437_v38, %v2437_v38  ;;  %v2446_v44 = vmul.f32 %v2438_v28, %v2438_v28 }
0x184f   : > { %v2447_v3 = vmul.f32 %v2439_v39, %v2439_v39  ;;  %v2448_v49 = vmul.f32 %v2440_v33, %v2440_v33  ;;  %v2449_v36 = vmul.f32 %v2441_v14, %v2441_v14  ;;  %v2450_v55 = vmul.f32 %v2442_v26, %v2442_v26 }
0x1850   : > { %v2451_v46 = vsel %vm415_vm0, %v2443_v40, 0.0  ;;  %v2452_v47 = vsel %vm415_vm0, %v2444_v41, 0.0  ;;  %v2454_v45 = vsel %vm415_vm0, %v2445_v43, 0.0  ;;  %v2456_v50 = vsel %vm415_vm0, %v2446_v44, 0.0  ;;  %v3335_v40 = vld [vmem:[%s3738_s27 + $0x8] sm:$0xff]  ;;  %v3336_v43 = vld [vmem:[%s3738_s27 + $0x10] sm:$0xff] }
0x1851   : > { %v2453_v48 = vadd.f32 %v2452_v47, %v2451_v46  ;;  %v2458_v53 = vsel %vm415_vm0, %v2447_v3, 0.0  ;;  %v2460_v54 = vsel %vm415_vm0, %v2448_v49, 0.0  ;;  %v2462_v57 = vsel %vm415_vm0, %v2449_v36, 0.0  ;;  %v3337_v44 = vld [vmem:[%s3738_s27 + $0x18] sm:$0xff]  ;;  %v3338_v47 = vld [vmem:[%s3738_s27 + $0x20] sm:$0xff] }
0x1852   : > { %v2464_v59 = vsel %vm415_vm0, %v2450_v55, 0.0 }
0x1853   : > { %v2455_v63 = vadd.f32 %v2454_v45, %v2453_v48  ;;  %v3340_v45 = vld [vmem:[%s3738_s27 + $0x30] sm:$0xff] }
0x1855   : > { %v2457_v52 = vadd.f32 %v2456_v50, %v2455_v63 }
0x1857   : > { %v2459_v51 = vadd.f32 %v2458_v53, %v2457_v52 }
0x1859   : > { %v2461_v2 = vadd.f32 %v2460_v54, %v2459_v51 }
0x185b   : > { %v2463_v58 = vadd.f32 %v2462_v57, %v2461_v2 }
0x185d   : > { %v2465_v5 = vadd.f32 %v2464_v59, %v2463_v58 }
0x185f   : > { %2466 = vadd.xlane.f32.xlu0 %v2465_v5 }
0x18ec   : > { %v2467_v60 = vpop.xlane.xlu0 %2466 }
0x18ed   : > { %v2468_v61 = vrot.slane %v2467_v60, 4 }
0x18ef   : > { %v2469_v62 = vadd.f32 %v2468_v61, %v2467_v60 }
0x18f1   : > { %v2470_v1 = vrot.slane %v2469_v62, 2 }
0x18f3   : > { %v2471_v4 = vadd.f32 %v2470_v1, %v2469_v62 }
0x18f5   : > { %v2472_v34 = vrot.slane %v2471_v4, 1 }
0x18f7   : > { %v2473_v35 = vadd.f32 %v2472_v34, %v2471_v4 }
0x18f9   : > { %3122 = vpush %v2473_v35 }
0x192a   : > { %s3123_s16 = spop %3122 }
0x192b   : > { %s2477_s19 = smul.f32 0.0009765625, %s3123_s16 }
0x192d   : > { %s2478_s17 = sadd.f32 1e-05, %s2477_s19 }
0x192f   : > { %v2479_v7 = vstv %s2478_s17 }
0x1930   : > { %3332 = vrsqrt.f32 %v2479_v7 }
0x193a   : > { %v3333_v8 = vpop.eup %3332 }
0x193b   : > { %3124 = vpush %v3333_v8 }
0x196c   : > { %s3125_s12 = spop %3124 }
0x196d   : > { %v2482_v9 = vstv %s3125_s12 }
0x196e   : > { %v2483_v42 = vmul.f32 %v2482_v9, %v2435_v37  ;;  %v2484_v13 = vmul.f32 %v2482_v9, %v2436_v11  ;;  %v2485_v15 = vmul.f32 %v2482_v9, %v2437_v38  ;;  %v2486_v10 = vmul.f32 %v2482_v9, %v2438_v28  ;;  %v3334_v28 = vld [vmem:[%s3738_s27] sm:$0xff] }
0x196f   : > { %v2487_v18 = vmul.f32 %v2482_v9, %v2439_v39  ;;  %v2488_v19 = vmul.f32 %v2482_v9, %v2440_v33  ;;  %v2489_v21 = vmul.f32 %v2482_v9, %v2441_v14  ;;  %v2490_v16 = vmul.f32 %v2482_v9, %v2442_v26  ;;  %v3339_v14 = vld [vmem:[%s3738_s27 + $0x28] sm:$0xff]  ;;  %v3341_v26 = vld [vmem:[%s3738_s27 + $0x38] sm:$0xff] }
0x1970   : > { %v2498_v22 = vmul.f32 %v2696_v29, %v2483_v42  ;;  %v2499_v20 = vmul.f32 %v2696_v29, %v2484_v13  ;;  %v2500_v24 = vmul.f32 %v2696_v29, %v2485_v15  ;;  %v2501_v0 = vmul.f32 %v2696_v29, %v2486_v10 }
0x1971   : > { %v2502_v12 = vmul.f32 %v2696_v29, %v2487_v18  ;;  %v2503_v23 = vmul.f32 %v2696_v29, %v2488_v19  ;;  %v2504_v32 = vmul.f32 %v2696_v29, %v2489_v21  ;;  %v2505_v25 = vmul.f32 %v2696_v29, %v2490_v16 }
0x1972   : > { %v2513_v31 = vadd.f32 %v2697_v6, %v2498_v22  ;;  %v2514_v27 = vadd.f32 %v2697_v6, %v2499_v20  ;;  %v2515_v56 = vadd.f32 %v2697_v6, %v2500_v24  ;;  %v2516_v30 = vadd.f32 %v2697_v6, %v2501_v0 }
0x1973   : > { %v2517_v17 = vadd.f32 %v2697_v6, %v2502_v12  ;;  %v2518_v37 = vadd.f32 %v2697_v6, %v2503_v23  ;;  %v2519_v11 = vadd.f32 %v2697_v6, %v2504_v32  ;;  %v2520_v38 = vadd.f32 %v2697_v6, %v2505_v25 }
0x1974   : > { %v2521_v39 = vadd.f32 %v3334_v28, %v2513_v31  ;;  %v2522_v41 = vadd.f32 %v3335_v40, %v2514_v27  ;;  %v2523_v33 = vadd.f32 %v3336_v43, %v2515_v56  ;;  %v2524_v46 = vadd.f32 %v3337_v44, %v2516_v30 }
0x1975   : > { %v2525_v48 = vadd.f32 %v3338_v47, %v2517_v17  ;;  %v2526_v3 = vadd.f32 %v3339_v14, %v2518_v37  ;;  %v2527_v63 = vadd.f32 %v3340_v45, %v2519_v11  ;;  %v2528_v49 = vadd.f32 %v3341_v26, %v2520_v38 }
0x1976   : > { %2529 = vst.msk [vmem:[%s390_s13] sm:$0xff] %vm415_vm0, %v2521_v39  ;;  %2530 = vst.msk [vmem:[%s390_s13 + $0x8] sm:$0xff] %vm415_vm0, %v2522_v41 }
0x1977   : > { %2531 = vst.msk [vmem:[%s390_s13 + $0x10] sm:$0xff] %vm415_vm0, %v2523_v33  ;;  %2532 = vst.msk [vmem:[%s390_s13 + $0x18] sm:$0xff] %vm415_vm0, %v2524_v46 }
0x1978   : > { %2533 = vst.msk [vmem:[%s390_s13 + $0x20] sm:$0xff] %vm415_vm0, %v2525_v48  ;;  %2534 = vst.msk [vmem:[%s390_s13 + $0x28] sm:$0xff] %vm415_vm0, %v2526_v3 }
0x1979   : > { %2535 = vst.msk [vmem:[%s390_s13 + $0x30] sm:$0xff] %vm415_vm0, %v2527_v63  ;;  %2536 = vst.msk [vmem:[%s390_s13 + $0x38] sm:$0xff] %vm415_vm0, %v2528_v49 }
0x197a PF: > { %p21_p10 = scmp.ge.s32.totalorder %s3682_s28, 4   ;;  %s4252_s30 = smov %s3490_s10 }
0x197b   : > { %s4253_s10 = smov %s3494_s11  ;;  %s4254_s11 = smov %s3692_s24 }
0x197c   : > { %s4255_s12 = smov %s3682_s28  ;;  %23 = sbr.rel (!%p21_p10) target bundleno = 5 (0x5), region = 122 }
0x1983   :  { %2558 = vsyncpa [#allocation5], 1 }
0x1984   :  { %2560 = vsyncpa [#allocation5 + $0x1], 1 }
0x1985   :  { %2561 = vsyncpa [#allocation7], 1 }
0x1986   :  { %2562 = vsyncpa [#allocation10], 1 }

// kernel: band_split_rnn_block.3
= control target key start
LH: loop header
LB: loop body
LE: loop exit
PB: predicated region body
PF: predicated region fallthrough
CT: control target
= control target key end

     0   :  { %s3236_s30 = smov 0   ;;  %s3729_s0 = inlined_call_operand.vmem [shape: f32[2,8,8,16], index: 0, kind: input, shape index: {}]   ;;  %s3730_s1 = inlined_call_operand.vmem [shape: f32[16,256], index: 1, kind: input, shape index: {}]   ;;  %s3731_s2 = inlined_call_operand.vmem [shape: f32[1,256], index: 2, kind: input, shape index: {}]   ;;  %s3732_s3 = inlined_call_operand.vmem [shape: f32[32,128], index: 3, kind: input, shape index: {}]   ;;  %s3733_s4 = inlined_call_operand.vmem [shape: f32[32,128], index: 4, kind: input, shape index: {}]   ;;  %s3734_s5 = inlined_call_operand.vmem [shape: f32[64,16], index: 5, kind: input, shape index: {}]   ;;  %s3735_s6 = inlined_call_operand.vmem [shape: f32[1,16], index: 6, kind: input, shape index: {}]   ;;  %s3736_s7 = inlined_call_operand.vmem [shape: f32[1,16], index: 7, kind: input, shape index: {}]   ;;  %s3737_s8 = inlined_call_operand.vmem [shape: f32[1,16], index: 8, kind: input, shape index: {}]   ;;  %s3738_s9 = inlined_call_operand.vmem [shape: f32[2,8,8,16], index: 9, kind: output, shape index: {}]  }
   0x1 LB: > { %s2534_s10 = sadd.s32 4294967295, %s3178_s30   ;;  %p2538_p0 = scmp.ge.s32.totalorder %s3178_s30, 1  ;;  %s3178_s30 = sphi %s3236_s30, %s19_s30  }
   0x2   : > { %p287_p1 = scmp.lt.s32.totalorder %s3178_s30, 3 }
   0x4   : > { %p288_p2 = pnand %p2538_p0, %p287_p1 }
   0x5   : > { %v342_v0 = vld [vmem:[%s3730_s1 + $0x8] sm:$0xff] (!%p288_p2)  ;;  %v344_v1 = vld [vmem:[%s3730_s1 + $0x18] sm:$0xff] (!%p288_p2)  ;;  %v341_v2 = vld [vmem:[%s3730_s1] sm:$0xff] (!%p288_p2)  ;;  %p323_p3 = scmp.lt.s32.totalorder (!%p288_p2), %s2534_s10, 1  ;;  %v3180_v5 = vmov (!%p288_p2), 0.0   ;;  %vm357_vm0 = vcmask (!%p288_p2), 130048   ;;  %v347_v24 = vlaneseq (!%p288_p2) }
   0x6   : > { %291 = sbr.rel (%p288_p2) target bundleno = 6406 (0x1906), region = 56  ;;  %v2896_v3 = vpack.c.bf16 (!%p288_p2), %v344_v1, %v342_v0  ;;  %v343_v4 = vld [vmem:[%s3730_s1 + $0x10] sm:$0xff] (!%p288_p2)  ;;  %476 = vmatprep.mubr.f32.mxu1 (!%p288_p2), %v3180_v5  ;;  %v511_v6 = vld [vmem:[%s3732_s3] sm:$0xff] (!%p288_p2)  ;;  %v512_v7 = vld [vmem:[%s3732_s3 + $0x8] sm:$0xff] (!%p288_p2)  ;;  %446 = vmatprep.mubr.f32.mxu0 (!%p288_p2), %v3180_v5  ;;  %v3181_v10 = vmov (!%p288_p2), 0.0|0.0   ;;  %vm3182_vm1 = vmmov (!%p288_p2), 0  }
   0x7   : > { %v2898_v8 = vpack.c.bf16 (!%p288_p2), %v343_v4, %v341_v2  ;;  %v3267_v9 = vpack.c.bf16 (!%p288_p2), %v512_v7, %v511_v6  ;;  %v513_v11 = vld [vmem:[%s3732_s3 + $0x10] sm:$0xff] (!%p288_p2)  ;;  %v514_v12 = vld [vmem:[%s3732_s3 + $0x18] sm:$0xff] (!%p288_p2)  ;;  %v515_v18 = vld [vmem:[%s3733_s4] sm:$0xff] (!%p288_p2)  ;;  %v348_v25 = vshrl.u32 (!%p288_p2), %v347_v24, 7  ;;  %s3183_s22 = smov (!%p288_p2), 32   ;;  %s3184_s24 = smov (!%p288_p2), 64  }
   0x8   : > { %3012 = vmatprep.subr.bf16.mxu1 (!%p288_p2), %v2896_v3  ;;  %2897 = vmatprep.subr.bf16.mxu0 (!%p288_p2), %v2896_v3  ;;  %v3290_v16 = vpack.c.bf16 (!%p288_p2), %v514_v12, %v513_v11  ;;  %v516_v19 = vld [vmem:[%s3733_s4 + $0x8] sm:$0xff] (!%p288_p2)  ;;  %v517_v21 = vld [vmem:[%s3733_s4 + $0x10] sm:$0xff] (!%p288_p2)  ;;  %v518_v22 = vld [vmem:[%s3733_s4 + $0x18] sm:$0xff] (!%p288_p2)  ;;  %vm520_vm2 = vcmask (!%p288_p2), 261120   ;;  %s3185_s25 = smov (!%p288_p2), 96   ;;  %vm726_vm3 = vcmask (!%p288_p2), 523520  }
   0x9   : > { %3013 = vmatpush1.bf16.msra.mxu1 (!%p288_p2), %v2898_v8  ;;  %2899 = vmatpush1.bf16.msra.mxu0 (!%p288_p2), %v2898_v8  ;;  %v3313_v20 = vpack.c.bf16 (!%p288_p2), %v516_v19, %v515_v18  ;;  %v3323_v23 = vpack.c.bf16 (!%p288_p2), %v518_v22, %v517_v21  ;;  %v349_v29 = vsub.s32 (!%p288_p2), 0, %v348_v25  ;;  %v345_v31 = vld [vmem:[%s3731_s2] sm:$0x3] (!%p288_p2)  ;;  %v353_v39 = vsub.s32 (!%p288_p2), 1, %v348_v25 }
   0xa   : > { %2900 = vmatprep.subr.bf16.mxu1 (!%p288_p2), %v3181_v10  ;;  %2924 = vmatprep.subr.bf16.mxu0 (!%p288_p2), %v3181_v10  ;;  %vm2219_vm4 = vcmask (!%p288_p2), 523264  }
   0xb   : > { %v3350_v34 = vrot.slane (!%p288_p2), %v345_v31, %v349_v29  ;;  %v3355_v42 = vrot.slane (!%p288_p2), %v345_v31, %v353_v39 }
   0xd   : > { %s3740_s10 = smov (!%p323_p3, %s2534_s10), 1 }
   0xe   : > { %s2594_s23 = sshll.u32 %s3740_s10, 6 }
   0xf   : > { %s3274_s26 = scalar_lea.vmem %s3729_s0, %s2594_s23  ;;  %s332_s21 = scalar_lea.vmem %s3738_s9, %s2594_s23 }
  0x10   : > { %v338_v13 = vld [vmem:[%s3274_s26 + $0x28] sm:$0xff]  ;;  %v333_v14 = vld [vmem:[%s3274_s26] sm:$0xff]  ;;  %v339_v15 = vld [vmem:[%s3274_s26 + $0x30] sm:$0xff] }
  0x11   : > { %2548 = vmatmul.mubr.msk.f32.vlgmr.msra.gmra.mrb[0].mxu1 %vm357_vm0, %v338_v13  ;;  %2543 = vmatmul.mubr.msk.f32.vlgmr.msra.gmra.mrb[0].mxu0 %vm357_vm0, %v333_v14  ;;  %v340_v17 = vld [vmem:[%s3274_s26 + $0x38] sm:$0xff]  ;;  %v334_v3 = vld [vmem:[%s3274_s26 + $0x8] sm:$0xff] }
  0x12   : > { %2902 = vmatpush3.bf16.msra.mxu1 %v3267_v9  ;;  %482 = vmatprep.mubr.f32.mxu1 %v3180_v5 }
  0x13   : > { %2903 = vmatprep.subr.bf16.mxu1 %v3181_v10  ;;  %452 = vmatprep.mubr.f32.mxu0 %v3180_v5 }
  0x14   : > { %2926 = vmatpush3.bf16.msra.mxu0 %v3267_v9 }
  0x15   : > { %2549 = vmatmul.mubr.msk.f32.gmra.mrb[2].mxu1 %vm357_vm0, %v339_v15  ;;  %2927 = vmatprep.subr.bf16.mxu0 %v3181_v10 }
  0x16   : > { %488 = vmatprep.mubr.f32.mxu1 %v3180_v5  ;;  %2905 = vmatpush3.bf16.msra.mxu1 %v3290_v16 }
  0x17   : > { %2906 = vmatprep.subr.bf16.mxu1 %v3181_v10  ;;  %2544 = vmatmul.mubr.msk.f32.gmra.mrb[2].mxu0 %vm357_vm0, %v334_v3 }
  0x18   : > { %2929 = vmatpush3.bf16.msra.mxu0 %v3290_v16  ;;  %458 = vmatprep.mubr.f32.mxu0 %v3180_v5 }
  0x19   : > { %2550 = vmatmul.mubr.msk.f32.gmra.mrb[4].mxu1 %vm357_vm0, %v340_v17  ;;  %2936 = vmatprep.subr.bf16.mxu0 %v3181_v10 }
  0x1a   : > { %2700 = vmatprep.mubr.msk.f32.mxu1 %vm3182_vm1, %v3180_v5 }
  0x1d   : > { %2701 = vmatmul.mubr.f32.vlgmr.msra.gmra.mrb[6].mxu1 %v3180_v5 }
  0x1e   : > { %2908 = vmatpush3.bf16.msra.mxu1 %v3313_v20  ;;  %2711 = vmatprep.mubr.msk.f32.mxu1 %vm3182_vm1, %v3180_v5 }
  0x1f   : > { %2909 = vmatprep.subr.bf16.mxu1 %v3181_v10 }
  0x22   : > { %2911 = vmatpush3.bf16.msra.mxu1 %v3323_v23 }
  0x23   : > { %2912 = vmatprep.subr.bf16.mxu1 %v3181_v10 }
  0x25   : > { %2712 = vmatmul.mubr.f32.vlgmr.msra.gmra.mrb[8].mxu1 %v3180_v5 }
  0x26   : > { %2914 = vmatpush3.bf16.msra.mxu1 %v3267_v9  ;;  %2722 = vmatprep.mubr.msk.f32.mxu1 %vm3182_vm1, %v3180_v5 }
  0x27   : > { %2915 = vmatprep.subr.bf16.mxu1 %v3181_v10 }
  0x2a   : > { %2917 = vmatpush3.bf16.msra.mxu1 %v3290_v16 }
  0x2b   : > { %2918 = vmatprep.subr.bf16.mxu1 %v3181_v10 }
  0xe4   : > { %v3337_v26 = vpop.f32.mrb[0].mxu1  ;;  %v448_v28 = vpop.f32.mrb[0].mxu0 }
  0xe5   : > { %v3339_v27 = vpop.f32.mrb[1].mxu1  ;;  %v3341_v30 = vpop.f32.mrb[1].mxu0  ;;  %v449_v37 = vadd.f32 %v448_v28, %v3350_v34 }
  0xe8   : > { %v3346_v32 = vpop.f32.mrb[2].mxu1 }
  0xe9   : > { %v3348_v33 = vpop.f32.mrb[3].mxu1 }
  0xea   : > { %v454_v13 = vpop.f32.mrb[2].mxu0  ;;  %v487_v24 = vadd.f32 %v3348_v33, %v3355_v42 }
  0xeb   : > { %v3393_v17 = vpop.f32.mrb[3].mxu0  ;;  %v455_v18 = vadd.f32 %v454_v13, %v3350_v34 }
  0xec   : > { %v3352_v35 = vpop.f32.mrb[4].mxu1 }
  0xed   : > { %v492_v36 = vpop.f32.mrb[5].mxu1 }
  0xee   : > { %v493_v43 = vadd.f32 %v492_v36, %v3355_v42 }
  0xf0   : > { %v590_v38 = vpop.f32.mrb[6].mxu1 }
  0xf1   : > { %v594_v40 = vadd.f32 %v590_v38, %v449_v37  ;;  %v2702_v41 = vpop.f32.mrb[7].mxu1 }
  0xf3   : > { %3034 = vtanh.f32 %v594_v40  ;;  %v2551_v49 = vmul.f32 -1.442695, %v594_v40 }
  0xf8   : > { %v663_v44 = vpop.f32.mrb[8].mxu1 }
  0xf9   : > { %v667_v45 = vadd.f32 %v663_v44, %v493_v43  ;;  %v2713_v46 = vpop.f32.mrb[9].mxu1 }
  0xfb   : > { %3036 = vtanh.f32 %v667_v45  ;;  %v2552_v50 = vmul.f32 -1.442695, %v667_v45 }
  0xfc   : > { %3038 = vpow2.f32 %v2551_v49 }
  0xfd   : > { %v3035_v47 = vpop.eup %3034  ;;  %3040 = vpow2.f32 %v2552_v50 }
  0xfe   : > { %677 = vrot.lane.b32.xlu0 %v3035_v47, %s3183_s22 }
 0x105   : > { %v3037_v48 = vpop.eup %3036 }
 0x106   : > { %701 = vrot.lane.b32.xlu0 %v3037_v48, %s3183_s22  ;;  %v3039_v51 = vpop.eup %3038 }
 0x107   : > { %v671_v52 = vadd.f32 1.0, %v3039_v51  ;;  %v3041_v53 = vpop.eup %3040 }
 0x108   : > { %v695_v54 = vadd.f32 1.0, %v3041_v53 }
 0x109   : > { %3042 = vrcp.f32 %v671_v52 }
 0x10a   : > { %3044 = vrcp.f32 %v695_v54 }
 0x113   : > { %v3043_v55 = vpop.eup %3042 }
 0x114   : > { %v3045_v58 = vpop.eup %3044  ;;  %v675_v61 = vmul.f32 0.0, %v3043_v55 }
 0x115   : > { %v699_v0 = vmul.f32 0.0, %v3045_v58 }
 0x170   : > { %v678_v56 = vpop.permute.xlu0 %677 }
 0x171   : > { %v680_v57 = vmul.f32 %v3043_v55, %v678_v56 }
 0x173   : > { %682 = vrot.lane.b32.xlu1 %v680_v57, %s3183_s22  ;;  %v336_v57 = vld [vmem:[%s3274_s26 + $0x18] sm:$0xff] }
 0x178   : > { %v702_v59 = vpop.permute.xlu0 %701 }
 0x179   : > { %v704_v60 = vmul.f32 %v3045_v58, %v702_v59 }
 0x17b   : > { %706 = vrot.lane.b32.xlu1 %v704_v60, %s3183_s22 }
 0x1e5   : > { %v683_v62 = vpop.permute.xlu1 %682 }
 0x1e6   : > { %v3362_v63 = vadd.f32 %v683_v62, %v675_v61 }
 0x1e8   : > { %3046 = vtanh.f32 %v3362_v63 }
 0x1ed   : > { %v707_v1 = vpop.permute.xlu1 %706 }
 0x1ee   : > { %v3365_v2 = vadd.f32 %v707_v1, %v699_v0 }
 0x1f0   : > { %3048 = vtanh.f32 %v3365_v2 }
 0x1f2   : > { %v3047_v4 = vpop.eup %3046 }
 0x1f3   : > { %688 = vrot.lane.b32.xlu0 %v3047_v4, %s3183_s22 }
 0x1fa   : > { %v3049_v6 = vpop.eup %3048 }
 0x1fb   : > { %712 = vrot.lane.b32.xlu1 %v3049_v6, %s3183_s22 }
 0x265   : > { %v689_v7 = vpop.permute.xlu0 %688 }
 0x266   : > { %v691_v8 = vmul.f32 %v3043_v55, %v689_v7  ;;  %v335_v55 = vld [vmem:[%s3274_s26 + $0x10] sm:$0xff] }
 0x267   : > { %2545 = vmatmul.mubr.msk.f32.gmra.mrb[4].mxu0 %vm357_vm0, %v335_v55 }
 0x268   : > { %717 = vrot.lane.b32.xlu0 %v691_v8, %s3184_s24  ;;  %464 = vmatprep.mubr.f32.mxu0 %v3180_v5 }
 0x26b   : > { %2546 = vmatmul.mubr.msk.f32.gmra.mrb[6].mxu0 %vm357_vm0, %v336_v57 }
 0x26c   : > { %470 = vmatprep.mubr.f32.mxu0 %v3180_v5 }
 0x26d   : > { %v713_v11 = vpop.permute.xlu1 %712 }
 0x26e   : > { %v3374_v12 = vmul.f32 %v3045_v58, %v713_v11  ;;  %v337_v58 = vld [vmem:[%s3274_s26 + $0x20] sm:$0xff] }
 0x26f   : > { %2547 = vmatmul.mubr.msk.f32.gmra.mrb[8].mxu0 %vm357_vm0, %v337_v58 }
 0x270   : > { %805 = vrot.lane.b32.xlu1 %v3374_v12, %s3184_s24  ;;  %2744 = vmatprep.mubr.msk.f32.mxu0 %vm3182_vm1, %v3180_v5 }
 0x2da   : > { %v718_v14 = vpop.permute.xlu0 %717 }
 0x2db   : > { %720 = vst.msk [vmem:[#allocation3] sm:$0xff] %vm520_vm2, %v718_v14  ;;  %2723 = vmatmul.mubr.msk.f32.vlgmr.msra.gmra.mrb[10].mxu1 %vm520_vm2, %v718_v14 }
 0x2dc   : > { %2920 = vmatpush3.bf16.msra.mxu1 %v3313_v20  ;;  %2733 = vmatprep.mubr.msk.f32.mxu1 %vm3182_vm1, %v3180_v5 }
 0x2dd   : > { %2921 = vmatprep.subr.bf16.mxu1 %v3181_v10 }
 0x2e0   : > { %2923 = vmatpush3.bf16.msra.mxu1 %v3323_v23 }
 0x2e1   : > { %2930 = vmatprep.subr.bf16.mxu1 %v3181_v10 }
 0x2e2   : > { %v806_v15 = vpop.permute.xlu1 %805 }
 0x2e3   : > { %2734 = vmatmul.mubr.msk.f32.vlgmr.msra.gmra.mrb[12].mxu1 %vm520_vm2, %v806_v15 }
 0x2e4   : > { %2932 = vmatpush3.bf16.msra.mxu1 %v3313_v20  ;;  %2755 = vmatprep.mubr.msk.f32.mxu1 %vm3182_vm1, %v3180_v5 }
 0x2e5   : > { %2933 = vmatprep.subr.bf16.mxu1 %v3181_v10 }
 0x2e8   : > { %2935 = vmatpush3.bf16.msra.mxu1 %v3323_v23 }
 0x2e9   : > { %2942 = vmatprep.subr.bf16.mxu1 %v3181_v10 }
 0x33a   : > { %v460_v0 = vpop.f32.mrb[4].mxu0 }
 0x33b   : > { %v3427_v1 = vpop.f32.mrb[5].mxu0  ;;  %v461_v11 = vadd.f32 %v460_v0, %v3350_v34 }
 0x3ae   : > { %v798_v19 = vpop.f32.mrb[10].mxu1 }
 0x3af   : > { %v802_v21 = vadd.f32 %v798_v19, %v455_v18  ;;  %v2724_v22 = vpop.f32.mrb[11].mxu1  ;;  %v481_v18 = vadd.f32 %v3339_v27, %v3355_v42 }
 0x3b1   : > { %3050 = vtanh.f32 %v802_v21  ;;  %v2555_v37 = vmul.f32 -1.442695, %v802_v21 }
 0x3b6   : > { %v875_v25 = vpop.f32.mrb[12].mxu1 }
 0x3b7   : > { %v879_v28 = vadd.f32 %v875_v25, %v487_v24  ;;  %v2735_v29 = vpop.f32.mrb[13].mxu1 }
 0x3b9   : > { %3052 = vtanh.f32 %v879_v28  ;;  %v2556_v38 = vmul.f32 -1.442695, %v879_v28 }
 0x3ba   : > { %3054 = vpow2.f32 %v2555_v37 }
 0x3bb   : > { %v3051_v31 = vpop.eup %3050  ;;  %3056 = vpow2.f32 %v2556_v38 }
 0x3bc   : > { %889 = vrot.lane.b32.xlu1 %v3051_v31, %s3183_s22 }
 0x3c3   : > { %v3053_v36 = vpop.eup %3052 }
 0x3c4   : > { %913 = vrot.lane.b32.xlu0 %v3053_v36, %s3183_s22  ;;  %v3055_v39 = vpop.eup %3054 }
 0x3c5   : > { %v883_v40 = vadd.f32 1.0, %v3055_v39  ;;  %v3057_v41 = vpop.eup %3056 }
 0x3c6   : > { %v907_v43 = vadd.f32 1.0, %v3057_v41 }
 0x3c7   : > { %3058 = vrcp.f32 %v883_v40 }
 0x3c8   : > { %3060 = vrcp.f32 %v907_v43 }
 0x3d1   : > { %v3059_v33 = vpop.eup %3058 }
 0x3d2   : > { %v3061_v46 = vpop.eup %3060  ;;  %v887_v49 = vmul.f32 %v3059_v33, %v3362_v63 }
 0x3d3   : > { %v911_v52 = vmul.f32 %v3061_v46, %v3365_v2  ;;  %v3429_v2 = vpop.f32.mrb[6].mxu0 }
 0x3d4   : > { %v3431_v3 = vpop.f32.mrb[7].mxu0  ;;  %v467_v58 = vadd.f32 %v3429_v2, %v3350_v34 }
 0x3d5   : > { %v3433_v4 = vpop.f32.mrb[8].mxu0 }
 0x3d6   : > { %v3435_v6 = vpop.f32.mrb[9].mxu0 }
 0x42e   : > { %v890_v44 = vpop.permute.xlu1 %889 }
 0x42f   : > { %v892_v45 = vmul.f32 %v3059_v33, %v890_v44 }
 0x431   : > { %894 = vrot.lane.b32.xlu1 %v892_v45, %s3183_s22 }
 0x436   : > { %v914_v47 = vpop.permute.xlu0 %913 }
 0x437   : > { %v916_v48 = vmul.f32 %v3061_v46, %v914_v47 }
 0x439   : > { %918 = vrot.lane.b32.xlu0 %v916_v48, %s3183_s22 }
 0x4a3   : > { %v895_v50 = vpop.permute.xlu1 %894 }
 0x4a4   : > { %v3403_v51 = vadd.f32 %v895_v50, %v887_v49 }
 0x4a6   : > { %3062 = vtanh.f32 %v3403_v51 }
 0x4ab   : > { %v919_v53 = vpop.permute.xlu0 %918 }
 0x4ac   : > { %v3407_v54 = vadd.f32 %v919_v53, %v911_v52 }
 0x4ae   : > { %3064 = vtanh.f32 %v3407_v54 }
 0x4b0   : > { %v3063_v56 = vpop.eup %3062 }
 0x4b1   : > { %900 = vrot.lane.b32.xlu1 %v3063_v56, %s3183_s22 }
 0x4b8   : > { %v3065_v59 = vpop.eup %3064 }
 0x4b9   : > { %924 = vrot.lane.b32.xlu0 %v3065_v59, %s3183_s22 }
 0x523   : > { %v901_v60 = vpop.permute.xlu1 %900 }
 0x524   : > { %v903_v61 = vmul.f32 %v3059_v33, %v901_v60 }
 0x526   : > { %929 = vrot.lane.b32.xlu1 %v903_v61, %s3184_s24 }
 0x52b   : > { %v925_v62 = vpop.permute.xlu0 %924 }
 0x52c   : > { %v3423_v63 = vmul.f32 %v3061_v46, %v925_v62  ;;  %v475_v62 = vadd.f32 %v3435_v6, %v3355_v42 }
 0x52e   : > { %1017 = vrot.lane.b32.xlu0 %v3423_v63, %s3184_s24 }
 0x598   : > { %v930_v7 = vpop.permute.xlu1 %929 }
 0x599   : > { %933 = vst.msk [vmem:[#allocation3 + $0x8] sm:$0xff] %vm520_vm2, %v930_v7  ;;  %2745 = vmatmul.mubr.msk.f32.vlgmr.msra.gmra.mrb[10].mxu0 %vm520_vm2, %v930_v7 }
 0x59a   : > { %2938 = vmatpush3.bf16.msra.mxu0 %v3267_v9  ;;  %2766 = vmatprep.mubr.msk.f32.mxu0 %vm3182_vm1, %v3180_v5 }
 0x59b   : > { %2939 = vmatprep.subr.bf16.mxu0 %v3181_v10 }
 0x59e   : > { %2941 = vmatpush3.bf16.msra.mxu0 %v3290_v16 }
 0x59f   : > { %2948 = vmatprep.subr.bf16.mxu0 %v3181_v10 }
 0x5a0   : > { %v1018_v8 = vpop.permute.xlu0 %1017 }
 0x5a1   : > { %2756 = vmatmul.mubr.msk.f32.vlgmr.msra.gmra.mrb[14].mxu1 %vm520_vm2, %v1018_v8 }
 0x5a2   : > { %2944 = vmatpush3.bf16.msra.mxu1 %v3313_v20  ;;  %2777 = vmatprep.mubr.msk.f32.mxu1 %vm3182_vm1, %v3180_v5 }
 0x5a3   : > { %2945 = vmatprep.subr.bf16.mxu1 %v3181_v10 }
 0x5a6   : > { %2947 = vmatpush3.bf16.msra.mxu1 %v3323_v23 }
 0x5a7   : > { %2954 = vmatprep.subr.bf16.mxu1 %v3181_v10 }
 0x66c   : > { %v1010_v13 = vpop.f32.mrb[10].mxu0 }
 0x66d   : > { %v1014_v14 = vadd.f32 %v1010_v13, %v461_v11  ;;  %v2746_v15 = vpop.f32.mrb[11].mxu0 }
 0x66f   : > { %3066 = vtanh.f32 %v1014_v14  ;;  %v2559_v28 = vmul.f32 -1.442695, %v1014_v14 }
 0x674   : > { %v1087_v19 = vpop.f32.mrb[14].mxu1 }
 0x675   : > { %v1091_v21 = vadd.f32 %v1087_v19, %v481_v18  ;;  %v2757_v22 = vpop.f32.mrb[15].mxu1 }
 0x677   : > { %3068 = vtanh.f32 %v1091_v21  ;;  %v2560_v29 = vmul.f32 -1.442695, %v1091_v21 }
 0x678   : > { %3070 = vpow2.f32 %v2559_v28 }
 0x679   : > { %v3067_v24 = vpop.eup %3066  ;;  %3072 = vpow2.f32 %v2560_v29 }
 0x67a   : > { %1101 = vrot.lane.b32.xlu1 %v3067_v24, %s3183_s22 }
 0x681   : > { %v3069_v25 = vpop.eup %3068 }
 0x682   : > { %1125 = vrot.lane.b32.xlu0 %v3069_v25, %s3183_s22  ;;  %v3071_v31 = vpop.eup %3070 }
 0x683   : > { %v1095_v36 = vadd.f32 1.0, %v3071_v31  ;;  %v3073_v37 = vpop.eup %3072 }
 0x684   : > { %v1119_v38 = vadd.f32 1.0, %v3073_v37 }
 0x685   : > { %3074 = vrcp.f32 %v1095_v36 }
 0x686   : > { %3076 = vrcp.f32 %v1119_v38 }
 0x68f   : > { %v3075_v27 = vpop.eup %3074 }
 0x690   : > { %v3077_v41 = vpop.eup %3076  ;;  %v1099_v44 = vmul.f32 %v3075_v27, %v3403_v51 }
 0x691   : > { %v1123_v47 = vmul.f32 %v3077_v41, %v3407_v54 }
 0x6ec   : > { %v1102_v39 = vpop.permute.xlu1 %1101 }
 0x6ed   : > { %v1104_v40 = vmul.f32 %v3075_v27, %v1102_v39 }
 0x6ef   : > { %1106 = vrot.lane.b32.xlu1 %v1104_v40, %s3183_s22 }
 0x6f4   : > { %v1126_v43 = vpop.permute.xlu0 %1125 }
 0x6f5   : > { %v1128_v33 = vmul.f32 %v3077_v41, %v1126_v43 }
 0x6f7   : > { %1130 = vrot.lane.b32.xlu0 %v1128_v33, %s3183_s22 }
 0x761   : > { %v1107_v45 = vpop.permute.xlu1 %1106 }
 0x762   : > { %v3460_v46 = vadd.f32 %v1107_v45, %v1099_v44 }
 0x764   : > { %3078 = vtanh.f32 %v3460_v46 }
 0x769   : > { %v1131_v48 = vpop.permute.xlu0 %1130 }
 0x76a   : > { %v3464_v49 = vadd.f32 %v1131_v48, %v1123_v47  ;;  %v473_v48 = vadd.f32 %v3433_v4, %v3350_v34 }
 0x76c   : > { %3080 = vtanh.f32 %v3464_v49 }
 0x76e   : > { %v3079_v50 = vpop.eup %3078 }
 0x76f   : > { %1112 = vrot.lane.b32.xlu1 %v3079_v50, %s3183_s22 }
 0x776   : > { %v3081_v52 = vpop.eup %3080 }
 0x777   : > { %1136 = vrot.lane.b32.xlu0 %v3081_v52, %s3183_s22 }
 0x7e1   : > { %v1113_v53 = vpop.permute.xlu1 %1112 }
 0x7e2   : > { %v1115_v51 = vmul.f32 %v3075_v27, %v1113_v53  ;;  %v469_v53 = vadd.f32 %v3431_v3, %v3355_v42 }
 0x7e4   : > { %1141 = vrot.lane.b32.xlu1 %v1115_v51, %s3184_s24 }
 0x7e9   : > { %v1137_v55 = vpop.permute.xlu0 %1136 }
 0x7ea   : > { %v3470_v56 = vmul.f32 %v3077_v41, %v1137_v55 }
 0x7ec   : > { %1229 = vrot.lane.b32.xlu0 %v3470_v56, %s3184_s24 }
 0x856   : > { %v1142_v54 = vpop.permute.xlu1 %1141 }
 0x857   : > { %1145 = vst.msk [vmem:[#allocation3 + $0x10] sm:$0xff] %vm520_vm2, %v1142_v54  ;;  %2767 = vmatmul.mubr.msk.f32.vlgmr.msra.gmra.mrb[12].mxu0 %vm520_vm2, %v1142_v54 }
 0x858   : > { %2950 = vmatpush3.bf16.msra.mxu0 %v3267_v9  ;;  %2788 = vmatprep.mubr.msk.f32.mxu0 %vm3182_vm1, %v3180_v5 }
 0x859   : > { %2951 = vmatprep.subr.bf16.mxu0 %v3181_v10 }
 0x85c   : > { %2953 = vmatpush3.bf16.msra.mxu0 %v3290_v16 }
 0x85d   : > { %2960 = vmatprep.subr.bf16.mxu0 %v3181_v10 }
 0x85e   : > { %v1230_v57 = vpop.permute.xlu0 %1229 }
 0x85f   : > { %2778 = vmatmul.mubr.msk.f32.vlgmr.msra.gmra.mrb[16].mxu1 %vm520_vm2, %v1230_v57 }
 0x860   : > { %2956 = vmatpush3.bf16.msra.mxu1 %v3313_v20  ;;  %2799 = vmatprep.mubr.msk.f32.mxu1 %vm3182_vm1, %v3180_v5 }
 0x861   : > { %2957 = vmatprep.subr.bf16.mxu1 %v3181_v10 }
 0x864   : > { %2959 = vmatpush3.bf16.msra.mxu1 %v3323_v23 }
 0x865   : > { %2966 = vmatprep.subr.bf16.mxu1 %v3181_v10 }
 0x92a   : > { %v1222_v59 = vpop.f32.mrb[12].mxu0 }
 0x92b   : > { %v1226_v60 = vadd.f32 %v1222_v59, %v467_v58  ;;  %v2768_v61 = vpop.f32.mrb[13].mxu0 }
 0x92d   : > { %3082 = vtanh.f32 %v1226_v60  ;;  %v2563_v14 = vmul.f32 -1.442695, %v1226_v60 }
 0x932   : > { %v1299_v0 = vpop.f32.mrb[16].mxu1 }
 0x933   : > { %v1303_v7 = vadd.f32 %v1299_v0, %v475_v62  ;;  %v2779_v8 = vpop.f32.mrb[17].mxu1 }
 0x935   : > { %3084 = vtanh.f32 %v1303_v7  ;;  %v2564_v2 = vmul.f32 -1.442695, %v1303_v7 }
 0x936   : > { %3086 = vpow2.f32 %v2563_v14 }
 0x937   : > { %v3083_v11 = vpop.eup %3082  ;;  %3088 = vpow2.f32 %v2564_v2 }
 0x938   : > { %1313 = vrot.lane.b32.xlu1 %v3083_v11, %s3183_s22 }
 0x93f   : > { %v3085_v13 = vpop.eup %3084 }
 0x940   : > { %1337 = vrot.lane.b32.xlu0 %v3085_v13, %s3183_s22  ;;  %v3087_v15 = vpop.eup %3086 }
 0x941   : > { %v1307_v18 = vadd.f32 1.0, %v3087_v15  ;;  %v3089_v19 = vpop.eup %3088 }
 0x942   : > { %v1331_v21 = vadd.f32 1.0, %v3089_v19 }
 0x943   : > { %3090 = vrcp.f32 %v1307_v18 }
 0x944   : > { %3092 = vrcp.f32 %v1331_v21 }
 0x94d   : > { %v3091_v6 = vpop.eup %3090 }
 0x94e   : > { %v3093_v25 = vpop.eup %3092  ;;  %v1311_v31 = vmul.f32 %v3091_v6, %v3460_v46 }
 0x94f   : > { %v1335_v38 = vmul.f32 %v3093_v25, %v3464_v49 }
 0x9aa   : > { %v1314_v22 = vpop.permute.xlu1 %1313 }
 0x9ab   : > { %v1316_v24 = vmul.f32 %v3091_v6, %v1314_v22 }
 0x9ad   : > { %1318 = vrot.lane.b32.xlu1 %v1316_v24, %s3183_s22 }
 0x9b2   : > { %v1338_v28 = vpop.permute.xlu0 %1337 }
 0x9b3   : > { %v1340_v29 = vmul.f32 %v3093_v25, %v1338_v28 }
 0x9b5   : > { %1342 = vrot.lane.b32.xlu0 %v1340_v29, %s3183_s22 }
 0xa1f   : > { %v1319_v36 = vpop.permute.xlu1 %1318 }
 0xa20   : > { %v3498_v37 = vadd.f32 %v1319_v36, %v1311_v31 }
 0xa22   : > { %3094 = vtanh.f32 %v3498_v37 }
 0xa27   : > { %v1343_v27 = vpop.permute.xlu0 %1342 }
 0xa28   : > { %v3502_v39 = vadd.f32 %v1343_v27, %v1335_v38  ;;  %v479_v38 = vadd.f32 %v3337_v26, %v3350_v34 }
 0xa2a   : > { %3096 = vtanh.f32 %v3502_v39 }
 0xa2c   : > { %v3095_v40 = vpop.eup %3094 }
 0xa2d   : > { %1324 = vrot.lane.b32.xlu1 %v3095_v40, %s3183_s22 }
 0xa34   : > { %v3097_v41 = vpop.eup %3096 }
 0xa35   : > { %1348 = vrot.lane.b32.xlu0 %v3097_v41, %s3183_s22  ;;  %v463_v41 = vadd.f32 %v3427_v1, %v3355_v42 }
 0xa9f   : > { %v1325_v43 = vpop.permute.xlu1 %1324 }
 0xaa0   : > { %v1327_v33 = vmul.f32 %v3091_v6, %v1325_v43 }
 0xaa2   : > { %1353 = vrot.lane.b32.xlu1 %v1327_v33, %s3184_s24 }
 0xaa7   : > { %v1349_v44 = vpop.permute.xlu0 %1348 }
 0xaa8   : > { %v3508_v45 = vmul.f32 %v3093_v25, %v1349_v44 }
 0xaaa   : > { %1439 = vrot.lane.b32.xlu0 %v3508_v45, %s3184_s24 }
 0xb14   : > { %v1354_v46 = vpop.permute.xlu1 %1353 }
 0xb15   : > { %1357 = vst.msk [vmem:[#allocation3 + $0x18] sm:$0xff] %vm520_vm2, %v1354_v46  ;;  %2789 = vmatmul.mubr.msk.f32.vlgmr.msra.gmra.mrb[14].mxu0 %vm520_vm2, %v1354_v46 }
 0xb16   : > { %2962 = vmatpush3.bf16.msra.mxu0 %v3267_v9  ;;  %2810 = vmatprep.mubr.msk.f32.mxu0 %vm3182_vm1, %v3180_v5 }
 0xb17   : > { %2963 = vmatprep.subr.bf16.mxu0 %v3181_v10 }
 0xb1a   : > { %2965 = vmatpush3.bf16.msra.mxu0 %v3290_v16 }
 0xb1b   : > { %2972 = vmatprep.subr.bf16.mxu0 %v3181_v10 }
 0xb1c   : > { %v1440_v47 = vpop.permute.xlu0 %1439 }
 0xb1d   : > { %2800 = vmatmul.mubr.msk.f32.vlgmr.msra.gmra.mrb[18].mxu1 %vm520_vm2, %v1440_v47 }
 0xb1e   : > { %2968 = vmatpush3.bf16.msra.mxu1 %v3313_v20  ;;  %2821 = vmatprep.mubr.msk.f32.mxu1 %vm3182_vm1, %v3180_v5 }
 0xb1f   : > { %2969 = vmatprep.subr.bf16.mxu1 %v3181_v10 }
 0xb22   : > { %2971 = vmatpush3.bf16.msra.mxu1 %v3323_v23 }
 0xb23   : > { %2978 = vmatprep.subr.bf16.mxu1 %v3181_v10 }
 0xbe8   : > { %v1433_v49 = vpop.f32.mrb[14].mxu0 }
 0xbe9   : > { %v1437_v50 = vadd.f32 %v1433_v49, %v473_v48  ;;  %v2790_v52 = vpop.f32.mrb[15].mxu0 }
 0xbeb   : > { %3098 = vtanh.f32 %v1437_v50  ;;  %v2567_v59 = vmul.f32 -1.442695, %v1437_v50 }
 0xbf0   : > { %v1509_v51 = vpop.f32.mrb[18].mxu1 }
 0xbf1   : > { %v1513_v55 = vadd.f32 %v1509_v51, %v469_v53  ;;  %v2801_v54 = vpop.f32.mrb[19].mxu1 }
 0xbf3   : > { %3100 = vtanh.f32 %v1513_v55  ;;  %v2568_v4 = vmul.f32 -1.442695, %v1513_v55 }
 0xbf4   : > { %3102 = vpow2.f32 %v2567_v59 }
 0xbf5   : > { %v3099_v57 = vpop.eup %3098  ;;  %3104 = vpow2.f32 %v2568_v4 }
 0xbf6   : > { %1523 = vrot.lane.b32.xlu1 %v3099_v57, %s3183_s22 }
 0xbfd   : > { %v3101_v58 = vpop.eup %3100 }
 0xbfe   : > { %1547 = vrot.lane.b32.xlu0 %v3101_v58, %s3183_s22  ;;  %v3103_v60 = vpop.eup %3102 }
 0xbff   : > { %v1517_v61 = vadd.f32 1.0, %v3103_v60  ;;  %v3105_v62 = vpop.eup %3104 }
 0xc00   : > { %v1541_v0 = vadd.f32 1.0, %v3105_v62 }
 0xc01   : > { %3106 = vrcp.f32 %v1517_v61 }
 0xc02   : > { %3108 = vrcp.f32 %v1541_v0 }
 0xc0b   : > { %v3107_v3 = vpop.eup %3106 }
 0xc0c   : > { %v3109_v11 = vpop.eup %3108  ;;  %v1521_v2 = vmul.f32 %v3107_v3, %v3498_v37 }
 0xc0d   : > { %v1545_v19 = vmul.f32 %v3109_v11, %v3502_v39 }
 0xc68   : > { %v1524_v7 = vpop.permute.xlu1 %1523 }
 0xc69   : > { %v1526_v8 = vmul.f32 %v3107_v3, %v1524_v7 }
 0xc6b   : > { %1528 = vrot.lane.b32.xlu1 %v1526_v8, %s3183_s22 }
 0xc70   : > { %v1548_v13 = vpop.permute.xlu0 %1547 }
 0xc71   : > { %v1550_v14 = vmul.f32 %v3109_v11, %v1548_v13 }
 0xc73   : > { %1552 = vrot.lane.b32.xlu0 %v1550_v14, %s3183_s22 }
 0xcdd   : > { %v1529_v15 = vpop.permute.xlu1 %1528 }
 0xcde   : > { %v1531_v18 = vadd.f32 %v1529_v15, %v1521_v2 }
 0xce0   : > { %3110 = vtanh.f32 %v1531_v18 }
 0xce5   : > { %v1553_v21 = vpop.permute.xlu0 %1552 }
 0xce6   : > { %v1555_v6 = vadd.f32 %v1553_v21, %v1545_v19 }
 0xce8   : > { %3112 = vtanh.f32 %v1555_v6 }
 0xcea   : > { %v3111_v22 = vpop.eup %3110 }
 0xceb   : > { %1534 = vrot.lane.b32.xlu1 %v3111_v22, %s3183_s22 }
 0xcf2   : > { %v3113_v24 = vpop.eup %3112 }
 0xcf3   : > { %1558 = vrot.lane.b32.xlu0 %v3113_v24, %s3183_s22 }
 0xd5d   : > { %v1535_v25 = vpop.permute.xlu1 %1534 }
 0xd5e   : > { %v1537_v28 = vmul.f32 %v3107_v3, %v1535_v25 }
 0xd60   : > { %1563 = vrot.lane.b32.xlu1 %v1537_v28, %s3184_s24 }
 0xd65   : > { %v1559_v29 = vpop.permute.xlu0 %1558 }
 0xd66   : > { %v3540_v31 = vmul.f32 %v3109_v11, %v1559_v29 }
 0xd68   : > { %1647 = vrot.lane.b32.xlu0 %v3540_v31, %s3184_s24 }
 0xdd2   : > { %v3544_v36 = vpop.permute.xlu1 %1563 }
 0xdd3   : > { %2811 = vmatmul.mubr.msk.f32.vlgmr.msra.gmra.mrb[16].mxu0 %vm520_vm2, %v3544_v36 }
 0xdd4   : > { %2974 = vmatpush3.bf16.msra.mxu0 %v3267_v9  ;;  %2832 = vmatprep.mubr.msk.f32.mxu0 %vm3182_vm1, %v3180_v5 }
 0xdd5   : > { %2975 = vmatprep.subr.bf16.mxu0 %v3181_v10 }
 0xdd8   : > { %2977 = vmatpush3.bf16.msra.mxu0 %v3290_v16 }
 0xdd9   : > { %2984 = vmatprep.subr.bf16.mxu0 %v3181_v10 }
 0xdda   : > { %v1648_v37 = vpop.permute.xlu0 %1647 }
 0xddb   : > { %2822 = vmatmul.mubr.msk.f32.vlgmr.msra.gmra.mrb[20].mxu1 %vm520_vm2, %v1648_v37 }
 0xddc   : > { %2980 = vmatpush3.bf16.msra.mxu1 %v3313_v20  ;;  %2843 = vmatprep.mubr.msk.f32.mxu1 %vm3182_vm1, %v3180_v5 }
 0xddd   : > { %2981 = vmatprep.subr.bf16.mxu1 %v3181_v10 }
 0xde0   : > { %2983 = vmatpush3.bf16.msra.mxu1 %v3323_v23 }
 0xde1   : > { %2990 = vmatprep.subr.bf16.mxu1 %v3181_v10 }
 0xea6   : > { %v1641_v27 = vpop.f32.mrb[16].mxu0 }
 0xea7   : > { %v1645_v39 = vadd.f32 %v1641_v27, %v479_v38  ;;  %v2812_v40 = vpop.f32.mrb[17].mxu0 }
 0xea9   : > { %3114 = vtanh.f32 %v1645_v39  ;;  %v2571_v48 = vmul.f32 -1.442695, %v1645_v39 }
 0xeae   : > { %v1717_v43 = vpop.f32.mrb[20].mxu1 }
 0xeaf   : > { %v1721_v33 = vadd.f32 %v1717_v43, %v463_v41  ;;  %v2823_v44 = vpop.f32.mrb[21].mxu1 }
 0xeb1   : > { %3116 = vtanh.f32 %v1721_v33  ;;  %v2572_v26 = vmul.f32 -1.442695, %v1721_v33 }
 0xeb2   : > { %3118 = vpow2.f32 %v2571_v48 }
 0xeb3   : > { %v3115_v46 = vpop.eup %3114  ;;  %3120 = vpow2.f32 %v2572_v26 }
 0xeb4   : > { %1731 = vrot.lane.b32.xlu1 %v3115_v46, %s3183_s22 }
 0xebb   : > { %v3117_v47 = vpop.eup %3116 }
 0xebc   : > { %1755 = vrot.lane.b32.xlu0 %v3117_v47, %s3183_s22  ;;  %v3119_v49 = vpop.eup %3118 }
 0xebd   : > { %v1725_v50 = vadd.f32 1.0, %v3119_v49  ;;  %v3121_v52 = vpop.eup %3120 }
 0xebe   : > { %v1749_v53 = vadd.f32 1.0, %v3121_v52 }
 0xebf   : > { %3122 = vrcp.f32 %v1725_v50 }
 0xec0   : > { %3124 = vrcp.f32 %v1749_v53 }
 0xec9   : > { %v3123_v1 = vpop.eup %3122 }
 0xeca   : > { %v3125_v54 = vpop.eup %3124  ;;  %v1729_v59 = vmul.f32 %v3123_v1, %v1531_v18 }
 0xecb   : > { %v1753_v61 = vmul.f32 %v3125_v54, %v1555_v6 }
 0xf26   : > { %v1732_v51 = vpop.permute.xlu1 %1731 }
 0xf27   : > { %v1734_v55 = vmul.f32 %v3123_v1, %v1732_v51 }
 0xf29   : > { %1736 = vrot.lane.b32.xlu1 %v1734_v55, %s3183_s22  ;;  %v491_v55 = vadd.f32 %v3352_v35, %v3350_v34 }
 0xf2e   : > { %v1756_v57 = vpop.permute.xlu0 %1755 }
 0xf2f   : > { %v1758_v58 = vmul.f32 %v3125_v54, %v1756_v57 }
 0xf31   : > { %1760 = vrot.lane.b32.xlu0 %v1758_v58, %s3183_s22 }
 0xf9b   : > { %v1737_v4 = vpop.permute.xlu1 %1736 }
 0xf9c   : > { %v1739_v60 = vadd.f32 %v1737_v4, %v1729_v59  ;;  %v451_v59 = vadd.f32 %v3341_v30, %v3355_v42 }
 0xf9e   : > { %3126 = vtanh.f32 %v1739_v60 }
 0xfa3   : > { %v1761_v62 = vpop.permute.xlu0 %1760 }
 0xfa4   : > { %v1763_v0 = vadd.f32 %v1761_v62, %v1753_v61 }
 0xfa6   : > { %3128 = vtanh.f32 %v1763_v0 }
 0xfa8   : > { %v3127_v3 = vpop.eup %3126 }
 0xfa9   : > { %1742 = vrot.lane.b32.xlu1 %v3127_v3, %s3183_s22 }
 0xfb0   : > { %v3129_v7 = vpop.eup %3128 }
 0xfb1   : > { %1766 = vrot.lane.b32.xlu0 %v3129_v7, %s3183_s22 }
0x101b   : > { %v1743_v8 = vpop.permute.xlu1 %1742 }
0x101c   : > { %v1745_v11 = vmul.f32 %v3123_v1, %v1743_v8 }
0x101e   : > { %1771 = vrot.lane.b32.xlu1 %v1745_v11, %s3184_s24 }
0x1023   : > { %v1767_v13 = vpop.permute.xlu0 %1766 }
0x1024   : > { %v3572_v14 = vmul.f32 %v3125_v54, %v1767_v13 }
0x1026   : > { %1855 = vrot.lane.b32.xlu0 %v3572_v14, %s3184_s24 }
0x1090   : > { %v3576_v2 = vpop.permute.xlu1 %1771 }
0x1091   : > { %2833 = vmatmul.mubr.msk.f32.vlgmr.msra.gmra.mrb[18].mxu0 %vm520_vm2, %v3576_v2 }
0x1092   : > { %2986 = vmatpush3.bf16.msra.mxu0 %v3267_v9  ;;  %2854 = vmatprep.mubr.msk.f32.mxu0 %vm3182_vm1, %v3180_v5  ;;  %v485_v9 = vadd.f32 %v3346_v32, %v3350_v34 }
0x1093   : > { %2987 = vmatprep.subr.bf16.mxu0 %v3181_v10 }
0x1096   : > { %2989 = vmatpush3.bf16.msra.mxu0 %v3290_v16  ;;  %v457_v16 = vadd.f32 %v3393_v17, %v3355_v42 }
0x1098   : > { %v1856_v15 = vpop.permute.xlu0 %1855 }
0x1099   : > { %2844 = vmatmul.mubr.msk.f32.vlgmr.msra.gmra.mrb[22].mxu1 %vm520_vm2, %v1856_v15 }
0x109a   : > { %2992 = vmatpush3.bf16.msra.mxu1 %v3313_v20  ;;  %2865 = vmatprep.mubr.msk.f32.mxu1 %vm3182_vm1, %v3180_v5 }
0x109b   : > { %2993 = vmatprep.subr.bf16.mxu1 %v3181_v10 }
0x109e   : > { %2995 = vmatpush3.bf16.msra.mxu1 %v3323_v23 }
0x1164   : > { %v1849_v18 = vpop.f32.mrb[18].mxu0 }
0x1165   : > { %v1853_v19 = vadd.f32 %v1849_v18, %v485_v9  ;;  %v2834_v21 = vpop.f32.mrb[19].mxu0 }
0x1167   : > { %3130 = vtanh.f32 %v1853_v19  ;;  %v2575_v10 = vmul.f32 -1.442695, %v1853_v19 }
0x116c   : > { %v1925_v6 = vpop.f32.mrb[22].mxu1 }
0x116d   : > { %v1929_v22 = vadd.f32 %v1925_v6, %v457_v16  ;;  %v2845_v20 = vpop.f32.mrb[23].mxu1 }
0x116f   : > { %3132 = vtanh.f32 %v1929_v22  ;;  %v2576_v23 = vmul.f32 -1.442695, %v1929_v22 }
0x1170   : > { %3134 = vpow2.f32 %v2575_v10  ;;  %v2204_v10 = vld [vmem:[%s3734_s5] sm:$0xff] }
0x1171   : > { %v3131_v24 = vpop.eup %3130  ;;  %3136 = vpow2.f32 %v2576_v23  ;;  %v2205_v23 = vld [vmem:[%s3734_s5 + $0x8] sm:$0xff] }
0x1172   : > { %1939 = vrot.lane.b32.xlu1 %v3131_v24, %s3183_s22 }
0x1179   : > { %v3133_v5 = vpop.eup %3132 }
0x117a   : > { %1963 = vrot.lane.b32.xlu0 %v3133_v5, %s3183_s22  ;;  %v3135_v32 = vpop.eup %3134 }
0x117b   : > { %v1933_v25 = vadd.f32 1.0, %v3135_v32  ;;  %v3137_v28 = vpop.eup %3136  ;;  %v2206_v32 = vld [vmem:[%s3734_s5 + $0x10] sm:$0xff] }
0x117c   : > { %v1957_v29 = vadd.f32 1.0, %v3137_v28 }
0x117d   : > { %3138 = vrcp.f32 %v1933_v25  ;;  %v2996_v25 = vpack.c.bf16 %v2205_v23, %v2204_v10 }
0x117e   : > { %3140 = vrcp.f32 %v1957_v29  ;;  %v2209_v29 = vld [vmem:[%s3734_s5 + $0x28] sm:$0xff] }
0x117f   : > { %2997 = vmatprep.subr.bf16.mxu0 %v2996_v25 }
0x1187   : > { %v3139_v17 = vpop.eup %3138 }
0x1188   : > { %v3141_v27 = vpop.eup %3140  ;;  %v1937_v41 = vmul.f32 %v3139_v17, %v1739_v60 }
0x1189   : > { %v1961_v44 = vmul.f32 %v3141_v27, %v1763_v0 }
0x11e4   : > { %v1940_v37 = vpop.permute.xlu1 %1939 }
0x11e5   : > { %v1942_v38 = vmul.f32 %v3139_v17, %v1940_v37 }
0x11e7   : > { %1944 = vrot.lane.b32.xlu1 %v1942_v38, %s3183_s22  ;;  %v2211_v38 = vld [vmem:[%s3734_s5 + $0x38] sm:$0xff] }
0x11ec   : > { %v1964_v39 = vpop.permute.xlu0 %1963 }
0x11ed   : > { %v1966_v40 = vmul.f32 %v3141_v27, %v1964_v39 }
0x11ef   : > { %1968 = vrot.lane.b32.xlu0 %v1966_v40, %s3183_s22 }
0x1259   : > { %v1945_v43 = vpop.permute.xlu1 %1944 }
0x125a   : > { %v1947_v33 = vadd.f32 %v1945_v43, %v1937_v41 }
0x125c   : > { %3142 = vtanh.f32 %v1947_v33 }
0x1261   : > { %v1969_v46 = vpop.permute.xlu0 %1968 }
0x1262   : > { %v1971_v47 = vadd.f32 %v1969_v46, %v1961_v44 }
0x1264   : > { %3144 = vtanh.f32 %v1971_v47 }
0x1266   : > { %v3143_v48 = vpop.eup %3142 }
0x1267   : > { %1950 = vrot.lane.b32.xlu1 %v3143_v48, %s3183_s22 }
0x126e   : > { %v3145_v26 = vpop.eup %3144 }
0x126f   : > { %1974 = vrot.lane.b32.xlu0 %v3145_v26, %s3183_s22 }
0x12d9   : > { %v1951_v49 = vpop.permute.xlu1 %1950 }
0x12da   : > { %v1953_v50 = vmul.f32 %v3139_v17, %v1951_v49 }
0x12dc   : > { %1979 = vrot.lane.b32.xlu1 %v1953_v50, %s3184_s24 }
0x12e1   : > { %v1975_v52 = vpop.permute.xlu0 %1974 }
0x12e2   : > { %v1977_v53 = vmul.f32 %v3141_v27, %v1975_v52 }
0x12e4   : > { %2063 = vrot.lane.b32.xlu0 %v1977_v53, %s3184_s24 }
0x134e   : > { %v3603_v1 = vpop.permute.xlu1 %1979 }
0x134f   : > { %2855 = vmatmul.mubr.msk.f32.vlgmr.msra.gmra.mrb[20].mxu0 %vm520_vm2, %v3603_v1 }
0x1350   : > { %2999 = vmatpush3.bf16.msra.mxu0 %v2996_v25 }
0x1356   : > { %v2064_v51 = vpop.permute.xlu0 %2063 }
0x1357   : > { %2866 = vmatmul.mubr.msk.f32.vlgmr.msra.gmra.mrb[24].mxu1 %vm520_vm2, %v2064_v51 }
0x1422   : > { %v2057_v54 = vpop.f32.mrb[20].mxu0 }
0x1423   : > { %v2061_v57 = vadd.f32 %v2057_v54, %v491_v55  ;;  %v2856_v58 = vpop.f32.mrb[21].mxu0 }
0x1425   : > { %3146 = vtanh.f32 %v2061_v57  ;;  %v2579_v3 = vmul.f32 -1.442695, %v2061_v57 }
0x142a   : > { %v2133_v4 = vpop.f32.mrb[24].mxu1 }
0x142b   : > { %v2137_v60 = vadd.f32 %v2133_v4, %v451_v59  ;;  %v2867_v61 = vpop.f32.mrb[25].mxu1 }
0x142d   : > { %3148 = vtanh.f32 %v2137_v60  ;;  %v2580_v34 = vmul.f32 -1.442695, %v2137_v60 }
0x142e   : > { %3150 = vpow2.f32 %v2579_v3 }
0x142f   : > { %v3147_v62 = vpop.eup %3146  ;;  %3152 = vpow2.f32 %v2580_v34 }
0x1430   : > { %2147 = vrot.lane.b32.xlu1 %v3147_v62, %s3183_s22 }
0x1437   : > { %v3149_v0 = vpop.eup %3148 }
0x1438   : > { %2171 = vrot.lane.b32.xlu0 %v3149_v0, %s3183_s22  ;;  %v3151_v35 = vpop.eup %3150 }
0x1439   : > { %v2141_v7 = vadd.f32 1.0, %v3151_v35  ;;  %v3153_v8 = vpop.eup %3152 }
0x143a   : > { %v2165_v11 = vadd.f32 1.0, %v3153_v8 }
0x143b   : > { %3154 = vrcp.f32 %v2141_v7 }
0x143c   : > { %3156 = vrcp.f32 %v2165_v11 }
0x1445   : > { %v3155_v30 = vpop.eup %3154 }
0x1446   : > { %v3157_v15 = vpop.eup %3156  ;;  %v2145_v19 = vmul.f32 %v3155_v30, %v1947_v33 }
0x1447   : > { %v2169_v6 = vmul.f32 %v3157_v15, %v1971_v47 }
0x14a2   : > { %v2148_v42 = vpop.permute.xlu1 %2147 }
0x14a3   : > { %v2150_v13 = vmul.f32 %v3155_v30, %v2148_v42 }
0x14a5   : > { %2152 = vrot.lane.b32.xlu1 %v2150_v13, %s3183_s22 }
0x14aa   : > { %v2172_v9 = vpop.permute.xlu0 %2171 }
0x14ab   : > { %v2174_v18 = vmul.f32 %v3157_v15, %v2172_v9 }
0x14ad   : > { %2176 = vrot.lane.b32.xlu0 %v2174_v18, %s3183_s22 }
0x1517   : > { %v2153_v21 = vpop.permute.xlu1 %2152 }
0x1518   : > { %v2155_v16 = vadd.f32 %v2153_v21, %v2145_v19 }
0x151a   : > { %3158 = vtanh.f32 %v2155_v16 }
0x151f   : > { %v2177_v22 = vpop.permute.xlu0 %2176 }
0x1520   : > { %v2179_v20 = vadd.f32 %v2177_v22, %v2169_v6 }
0x1522   : > { %3160 = vtanh.f32 %v2179_v20 }
0x1524   : > { %v3159_v24 = vpop.eup %3158 }
0x1525   : > { %2158 = vrot.lane.b32.xlu1 %v3159_v24, %s3183_s22 }
0x1529   : > { %1984 = vrot.lane.b32.xlu1 %v1977_v53, %s3185_s25 }
0x152c   : > { %v3161_v5 = vpop.eup %3160 }
0x152d   : > { %2182 = vrot.lane.b32.xlu0 %v3161_v5, %s3183_s22  ;;  %1568 = vrot.lane.b32.xlu1 %v3540_v31, %s3185_s25  ;;  %v2207_v31 = vld [vmem:[%s3734_s5 + $0x18] sm:$0xff] }
0x152e   : > { %v3000_v28 = vpack.c.bf16 %v2207_v31, %v2206_v32 }
0x1530   : > { %3001 = vmatprep.subr.bf16.mxu0 %v3000_v28 }
0x1531   : > { %1147 = vrot.lane.b32.xlu1 %v3470_v56, %s3185_s25  ;;  %3003 = vmatpush3.bf16.msra.mxu0 %v3000_v28  ;;  %v2208_v56 = vld [vmem:[%s3734_s5 + $0x20] sm:$0xff] }
0x1532   : > { %v3004_v17 = vpack.c.bf16 %v2209_v29, %v2208_v56 }
0x1534   : > { %3005 = vmatprep.subr.bf16.mxu0 %v3004_v17 }
0x1535   : > { %722 = vrot.lane.b32.xlu1 %v3374_v12, %s3185_s25  ;;  %3007 = vmatpush3.bf16.msra.mxu0 %v3004_v17  ;;  %v2210_v12 = vld [vmem:[%s3734_s5 + $0x30] sm:$0xff] }
0x1536   : > { %v3008_v27 = vpack.c.bf16 %v2211_v38, %v2210_v12 }
0x1538   : > { %3009 = vmatprep.subr.bf16.mxu0 %v3008_v27 }
0x1539   : > { %3011 = vmatpush3.bf16.msra.mxu0 %v3008_v27 }
0x1597   : > { %v2159_v37 = vpop.permute.xlu1 %2158 }
0x1598   : > { %v2161_v46 = vmul.f32 %v3155_v30, %v2159_v37 }
0x159b   : > { %v1985_v39 = vpop.permute.xlu1 %1984 }
0x159c   : > { %1987 = vst.msk [vmem:[#allocation3 + $0x8] sm:$0xff] %vm726_vm3, %v1985_v39 }
0x159f   : > { %v2183_v40 = vpop.permute.xlu0 %2182  ;;  %v1569_v41 = vpop.permute.xlu1 %1568 }
0x15a0   : > { %v2185_v43 = vmul.f32 %v3157_v15, %v2183_v40  ;;  %1571 = vst.msk [vmem:[#allocation3 + $0x18] sm:$0xff] %vm726_vm3, %v1569_v41 }
0x15a2   : > { %2192 = vrot.lane.b32.xlu0 %v2185_v43, %s3185_s25 }
0x15a3   : > { %v1148_v33 = vpop.permute.xlu1 %1147 }
0x15a4   : > { %1151 = vst.msk [vmem:[#allocation3 + $0x28] sm:$0xff] %vm726_vm3, %v1148_v33 }
0x15a5   : > { %1774 = vst.msk [vmem:[#allocation3 + $0x28] sm:$0xff] %vm520_vm2, %v3576_v2 }
0x15a6   : > { %1776 = vrot.lane.b32.xlu0 %v3572_v14, %s3185_s25 }
0x15a7   : > { %v723_v44 = vpop.permute.xlu1 %722  ;;  %v2199_v49 = vld [vmem:[#allocation3 + $0x18] sm:$0xff] }
0x15a8   : > { %727 = vst.msk [vmem:[#allocation3 + $0x38] sm:$0xff] %vm726_vm3, %v723_v44 }
0x15aa   : > { %1359 = vrot.lane.b32.xlu0 %v3508_v45, %s3185_s25  ;;  %v2197_v45 = vld [vmem:[#allocation3 + $0x8] sm:$0xff] }
0x15ae   : > { %935 = vrot.lane.b32.xlu0 %v3423_v63, %s3185_s25 }
0x15b2   : > { %2187 = vrot.lane.b32.xlu0 %v2161_v46, %s3184_s24 }
0x1614   : > { %v2193_v47 = vpop.permute.xlu0 %2192 }
0x1615   : > { %2195 = vst.msk [vmem:[#allocation3] sm:$0xff] %vm726_vm3, %v2193_v47 }
0x1618   : > { %v1777_v48 = vpop.permute.xlu0 %1776 }
0x1619   : > { %1779 = vst.msk [vmem:[#allocation3 + $0x10] sm:$0xff] %vm726_vm3, %v1777_v48 }
0x161c   : > { %v1360_v14 = vpop.permute.xlu0 %1359  ;;  %v2196_v2 = vld [vmem:[#allocation3] sm:$0xff] }
0x161d   : > { %1363 = vst.msk [vmem:[#allocation3 + $0x20] sm:$0xff] %vm726_vm3, %v1360_v14  ;;  %2884 = vmatprep.mubr.msk.f32.mxu0 %vm2219_vm4, %v2196_v2 }
0x161e   : > { %1566 = vst.msk [vmem:[#allocation3 + $0x20] sm:$0xff] %vm520_vm2, %v3544_v36  ;;  %2885 = vmatmul.mubr.msk.f32.vlgmr.msra.gmra.mrb[22].mxu0 %vm2219_vm4, %v2197_v45  ;;  %v2201_v36 = vld [vmem:[#allocation3 + $0x28] sm:$0xff] }
0x1620   : > { %v936_v63 = vpop.permute.xlu0 %935  ;;  %v2198_v26 = vld [vmem:[#allocation3 + $0x10] sm:$0xff] }
0x1621   : > { %939 = vst.msk [vmem:[#allocation3 + $0x30] sm:$0xff] %vm726_vm3, %v936_v63  ;;  %2887 = vmatprep.mubr.msk.f32.mxu0 %vm2219_vm4, %v2198_v26 }
0x1622   : > { %1982 = vst.msk [vmem:[#allocation3 + $0x30] sm:$0xff] %vm520_vm2, %v3603_v1  ;;  %2888 = vmatmul.mubr.msk.f32.gmra.mrb[24].mxu0 %vm2219_vm4, %v2199_v49  ;;  %v2581_v1 = vld [vmem:[%s3735_s6] ss:$0 sm:$0xff] }
0x1624   : > { %v2188_v50 = vpop.permute.xlu0 %2187 }
0x1625   : > { %2190 = vst.msk [vmem:[#allocation3 + $0x38] sm:$0xff] %vm520_vm2, %v2188_v50  ;;  %v2200_v52 = vld [vmem:[#allocation3 + $0x20] sm:$0xff] }
0x1626   : > { %2890 = vmatprep.mubr.msk.f32.mxu0 %vm2219_vm4, %v2200_v52 }
0x1627   : > { %2891 = vmatmul.mubr.msk.f32.gmra.mrb[26].mxu0 %vm2219_vm4, %v2201_v36 }
0x1629   : > { %v2202_v53 = vld [vmem:[#allocation3 + $0x30] sm:$0xff] }
0x162a   : > { %2893 = vmatprep.mubr.msk.f32.mxu0 %vm2219_vm4, %v2202_v53 }
0x162c   : > { %v2203_v51 = vld [vmem:[#allocation3 + $0x38] sm:$0xff] }
0x162d   : > { %2894 = vmatmul.mubr.msk.f32.gmra.mrb[28].mxu0 %vm2219_vm4, %v2203_v51 }
0x16f1   : > { %v2886_v55 = vpop.f32.mrb[22].mxu0 }
0x16f2   : > { %v2316_v54 = vadd.f32 %v2886_v55, %v2581_v1  ;;  %v2310_v57 = vpop.f32.mrb[23].mxu0 }
0x16f3   : > { %v2311_v58 = vadd.f32 %v2581_v1, %v2310_v57 }
0x16f4   : > { %v2350_v59 = vsel %vm357_vm0, %v2316_v54, 0.0 }
0x16f5   : > { %v2349_v4 = vsel %vm357_vm0, %v2311_v58, 0.0  ;;  %v2889_v60 = vpop.f32.mrb[24].mxu0 }
0x16f6   : > { %v2320_v61 = vpop.f32.mrb[25].mxu0  ;;  %v2326_v62 = vadd.f32 %v2889_v60, %v2581_v1  ;;  %v2351_v3 = vadd.f32 %v2350_v59, %v2349_v4 }
0x16f7   : > { %v2321_v0 = vadd.f32 %v2581_v1, %v2320_v61 }
0x16f8   : > { %v2354_v8 = vsel %vm357_vm0, %v2326_v62, 0.0 }
0x16f9   : > { %v2352_v34 = vsel %vm357_vm0, %v2321_v0, 0.0 }
0x16fa   : > { %v2353_v35 = vadd.f32 %v2352_v34, %v2351_v3  ;;  %v2892_v7 = vpop.f32.mrb[26].mxu0 }
0x16fb   : > { %v2330_v11 = vpop.f32.mrb[27].mxu0  ;;  %v2336_v13 = vadd.f32 %v2892_v7, %v2581_v1 }
0x16fc   : > { %v2331_v30 = vadd.f32 %v2581_v1, %v2330_v11  ;;  %v2355_v42 = vadd.f32 %v2354_v8, %v2353_v35 }
0x16fd   : > { %v2358_v21 = vsel %vm357_vm0, %v2336_v13, 0.0 }
0x16fe   : > { %v2356_v15 = vsel %vm357_vm0, %v2331_v30, 0.0 }
0x16ff   : > { %v2357_v9 = vadd.f32 %v2356_v15, %v2355_v42 }
0x1700   : > { %v2895_v18 = vpop.f32.mrb[28].mxu0 }
0x1701   : > { %v2340_v19 = vpop.f32.mrb[29].mxu0  ;;  %v2346_v16 = vadd.f32 %v2895_v18, %v2581_v1  ;;  %v2359_v22 = vadd.f32 %v2358_v21, %v2357_v9 }
0x1702   : > { %v2341_v6 = vadd.f32 %v2581_v1, %v2340_v19 }
0x1703   : > { %v2362_v5 = vsel %vm357_vm0, %v2346_v16, 0.0 }
0x1704   : > { %v2360_v20 = vsel %vm357_vm0, %v2341_v6, 0.0 }
0x1705   : > { %v2361_v24 = vadd.f32 %v2360_v20, %v2359_v22 }
0x1707   : > { %v2363_v10 = vadd.f32 %v2362_v5, %v2361_v24 }
0x1709   : > { %2364 = vadd.xlane.f32.xlu1 %v2363_v10 }
0x1796   : > { %v2365_v23 = vpop.xlane.xlu1 %2364 }
0x1797   : > { %v2366_v32 = vrot.slane %v2365_v23, 4 }
0x1799   : > { %v2367_v25 = vadd.f32 %v2366_v32, %v2365_v23 }
0x179b   : > { %v2368_v31 = vrot.slane %v2367_v25, 2 }
0x179d   : > { %v2369_v28 = vadd.f32 %v2368_v31, %v2367_v25 }
0x179f   : > { %v2370_v56 = vrot.slane %v2369_v28, 1 }
0x17a1   : > { %v2371_v29 = vadd.f32 %v2370_v56, %v2369_v28 }
0x17a3   : > { %3014 = vpush %v2371_v29 }
0x17d4   : > { %s3015_s28 = spop %3014 }
0x17d5   : > { %s2375_s29 = smul.f32 0.0009765625, %s3015_s28 }
0x17d7   : > { %v2376_v17 = vstv %s2375_s29 }
0x17d8   : > { %v2377_v37 = vsub.f32 %v2311_v58, %v2376_v17  ;;  %v2378_v12 = vsub.f32 %v2316_v54, %v2376_v17  ;;  %v2379_v38 = vsub.f32 %v2321_v0, %v2376_v17  ;;  %v2380_v27 = vsub.f32 %v2326_v62, %v2376_v17 }
0x17d9   : > { %v2381_v39 = vsub.f32 %v2331_v30, %v2376_v17  ;;  %v2382_v33 = vsub.f32 %v2336_v13, %v2376_v17  ;;  %v2383_v14 = vsub.f32 %v2341_v6, %v2376_v17  ;;  %v2384_v26 = vsub.f32 %v2346_v16, %v2376_v17  ;;  %v2590_v30 = vld [vmem:[%s3736_s7] ss:$0 sm:$0xff] }
0x17da   : > { %v2385_v40 = vmul.f32 %v2377_v37, %v2377_v37  ;;  %v2386_v41 = vmul.f32 %v2378_v12, %v2378_v12  ;;  %v2387_v43 = vmul.f32 %v2379_v38, %v2379_v38  ;;  %v2388_v44 = vmul.f32 %v2380_v27, %v2380_v27  ;;  %v2591_v6 = vld [vmem:[%s3737_s8] ss:$0 sm:$0xff] }
0x17db   : > { %v2389_v2 = vmul.f32 %v2381_v39, %v2381_v39  ;;  %v2390_v49 = vmul.f32 %v2382_v33, %v2382_v33  ;;  %v2391_v36 = vmul.f32 %v2383_v14, %v2383_v14  ;;  %v2392_v1 = vmul.f32 %v2384_v26, %v2384_v26 }
0x17dc   : > { %v2393_v46 = vsel %vm357_vm0, %v2385_v40, 0.0  ;;  %v2394_v47 = vsel %vm357_vm0, %v2386_v41, 0.0  ;;  %v2396_v45 = vsel %vm357_vm0, %v2387_v43, 0.0  ;;  %v2398_v50 = vsel %vm357_vm0, %v2388_v44, 0.0  ;;  %v3165_v40 = vld [vmem:[%s3274_s26 + $0x8] sm:$0xff]  ;;  %v3166_v43 = vld [vmem:[%s3274_s26 + $0x10] sm:$0xff] }
0x17dd   : > { %v2395_v48 = vadd.f32 %v2394_v47, %v2393_v46  ;;  %v2400_v53 = vsel %vm357_vm0, %v2389_v2, 0.0  ;;  %v2402_v55 = vsel %vm357_vm0, %v2390_v49, 0.0  ;;  %v2404_v57 = vsel %vm357_vm0, %v2391_v36, 0.0  ;;  %v3167_v44 = vld [vmem:[%s3274_s26 + $0x18] sm:$0xff]  ;;  %v3168_v47 = vld [vmem:[%s3274_s26 + $0x20] sm:$0xff] }
0x17de   : > { %v2406_v59 = vsel %vm357_vm0, %v2392_v1, 0.0 }
0x17df   : > { %v2397_v63 = vadd.f32 %v2396_v45, %v2395_v48  ;;  %v3170_v45 = vld [vmem:[%s3274_s26 + $0x30] sm:$0xff] }
0x17e1   : > { %v2399_v52 = vadd.f32 %v2398_v50, %v2397_v63 }
0x17e3   : > { %v2401_v51 = vadd.f32 %v2400_v53, %v2399_v52 }
0x17e5   : > { %v2403_v54 = vadd.f32 %v2402_v55, %v2401_v51 }
0x17e7   : > { %v2405_v58 = vadd.f32 %v2404_v57, %v2403_v54 }
0x17e9   : > { %v2407_v4 = vadd.f32 %v2406_v59, %v2405_v58 }
0x17eb   : > { %2408 = vadd.xlane.f32.xlu0 %v2407_v4 }
0x1878   : > { %v2409_v60 = vpop.xlane.xlu0 %2408 }
0x1879   : > { %v2410_v61 = vrot.slane %v2409_v60, 4 }
0x187b   : > { %v2411_v62 = vadd.f32 %v2410_v61, %v2409_v60 }
0x187d   : > { %v2412_v0 = vrot.slane %v2411_v62, 2 }
0x187f   : > { %v2413_v3 = vadd.f32 %v2412_v0, %v2411_v62 }
0x1881   : > { %v2414_v34 = vrot.slane %v2413_v3, 1 }
0x1883   : > { %v2415_v35 = vadd.f32 %v2414_v34, %v2413_v3 }
0x1885   : > { %3016 = vpush %v2415_v35 }
0x18b6   : > { %s3017_s11 = spop %3016 }
0x18b7   : > { %s2419_s12 = smul.f32 0.0009765625, %s3017_s11 }
0x18b9   : > { %s2420_s13 = sadd.f32 1e-05, %s2419_s12 }
0x18bb   : > { %v2421_v7 = vstv %s2420_s13 }
0x18bc   : > { %3162 = vrsqrt.f32 %v2421_v7 }
0x18c6   : > { %v3163_v8 = vpop.eup %3162 }
0x18c7   : > { %3018 = vpush %v3163_v8 }
0x18f8   : > { %s3019_s14 = spop %3018 }
0x18f9   : > { %v2424_v11 = vstv %s3019_s14 }
0x18fa   : > { %v2425_v42 = vmul.f32 %v2424_v11, %v2377_v37  ;;  %v2426_v13 = vmul.f32 %v2424_v11, %v2378_v12  ;;  %v2427_v15 = vmul.f32 %v2424_v11, %v2379_v38  ;;  %v2428_v9 = vmul.f32 %v2424_v11, %v2380_v27  ;;  %v3164_v27 = vld [vmem:[%s3274_s26] sm:$0xff] }
0x18fb   : > { %v2429_v18 = vmul.f32 %v2424_v11, %v2381_v39  ;;  %v2430_v19 = vmul.f32 %v2424_v11, %v2382_v33  ;;  %v2431_v21 = vmul.f32 %v2424_v11, %v2383_v14  ;;  %v2432_v16 = vmul.f32 %v2424_v11, %v2384_v26  ;;  %v3169_v14 = vld [vmem:[%s3274_s26 + $0x28] sm:$0xff]  ;;  %v3171_v26 = vld [vmem:[%s3274_s26 + $0x38] sm:$0xff] }
0x18fc   : > { %v2440_v22 = vmul.f32 %v2590_v30, %v2425_v42  ;;  %v2441_v20 = vmul.f32 %v2590_v30, %v2426_v13  ;;  %v2442_v24 = vmul.f32 %v2590_v30, %v2427_v15  ;;  %v2443_v5 = vmul.f32 %v2590_v30, %v2428_v9 }
0x18fd   : > { %v2444_v10 = vmul.f32 %v2590_v30, %v2429_v18  ;;  %v2445_v23 = vmul.f32 %v2590_v30, %v2430_v19  ;;  %v2446_v32 = vmul.f32 %v2590_v30, %v2431_v21  ;;  %v2447_v25 = vmul.f32 %v2590_v30, %v2432_v16 }
0x18fe   : > { %v2455_v31 = vadd.f32 %v2591_v6, %v2440_v22  ;;  %v2456_v28 = vadd.f32 %v2591_v6, %v2441_v20  ;;  %v2457_v56 = vadd.f32 %v2591_v6, %v2442_v24  ;;  %v2458_v29 = vadd.f32 %v2591_v6, %v2443_v5 }
0x18ff   : > { %v2459_v17 = vadd.f32 %v2591_v6, %v2444_v10  ;;  %v2460_v37 = vadd.f32 %v2591_v6, %v2445_v23  ;;  %v2461_v12 = vadd.f32 %v2591_v6, %v2446_v32  ;;  %v2462_v38 = vadd.f32 %v2591_v6, %v2447_v25 }
0x1900   : > { %v2463_v39 = vadd.f32 %v3164_v27, %v2455_v31  ;;  %v2464_v41 = vadd.f32 %v3165_v40, %v2456_v28  ;;  %v2465_v33 = vadd.f32 %v3166_v43, %v2457_v56  ;;  %v2466_v46 = vadd.f32 %v3167_v44, %v2458_v29 }
0x1901   : > { %v2467_v48 = vadd.f32 %v3168_v47, %v2459_v17  ;;  %v2468_v2 = vadd.f32 %v3169_v14, %v2460_v37  ;;  %v2469_v63 = vadd.f32 %v3170_v45, %v2461_v12  ;;  %v2470_v49 = vadd.f32 %v3171_v26, %v2462_v38 }
0x1902   : > { %2471 = vst.msk [vmem:[%s332_s21] sm:$0xff] %vm357_vm0, %v2463_v39  ;;  %2472 = vst.msk [vmem:[%s332_s21 + $0x8] sm:$0xff] %vm357_vm0, %v2464_v41 }
0x1903   : > { %2473 = vst.msk [vmem:[%s332_s21 + $0x10] sm:$0xff] %vm357_vm0, %v2465_v33  ;;  %2474 = vst.msk [vmem:[%s332_s21 + $0x18] sm:$0xff] %vm357_vm0, %v2466_v46 }
0x1904   : > { %2475 = vst.msk [vmem:[%s332_s21 + $0x20] sm:$0xff] %vm357_vm0, %v2467_v48  ;;  %2476 = vst.msk [vmem:[%s332_s21 + $0x28] sm:$0xff] %vm357_vm0, %v2468_v2 }
0x1905   : > { %2477 = vst.msk [vmem:[%s332_s21 + $0x30] sm:$0xff] %vm357_vm0, %v2469_v63  ;;  %2478 = vst.msk [vmem:[%s332_s21 + $0x38] sm:$0xff] %vm357_vm0, %v2470_v49 }
0x1906 PF: > { %s19_s30 = sadd.s32 1, %s3178_s30  }
0x1907   : > { %p16_p4 = scmp.ge.s32.totalorder %s19_s30, 4  }
0x1909   :  { %18 = sbr.rel (!%p16_p4) target bundleno = 1 (0x1), region = 100 }

</bundles_post_ra>
